<compile_context>
chip_gen: v6e
topology: v6e:2x2x1
jax: 0.10.0
libtpu: 0.0.40
codegen_flags: <defaults>
</compile_context>

<pallas_src>
import math
from functools import partial

import jax
import jax.numpy as jnp
from jax import lax
from jax.experimental import pallas as pl
from jax.experimental.pallas import tpu as pltpu

# ------------------------- configuration (small, TPU-friendly) -------------------------
B = 2            # batch_size
L = 16           # src_len
D_MODEL = 128    # d_model
HEADS = 8
HEAD_DIM = D_MODEL // HEADS
D_FF = 256       # d_ff
LN_EPS = 1e-6


# ------------------------- fused Pallas kernel -------------------------
def _layer_norm(x, g, b):
    mu = jnp.mean(x, axis=-1, keepdims=True)
    var = jnp.mean(jnp.square(x - mu), axis=-1, keepdims=True)
    return (x - mu) * lax.rsqrt(var + jnp.float32(LN_EPS)) * g + b


def _encoder_layer_kernel(x_ref, mask_ref, wqkv_ref, wo_ref, w1_ref, w2_ref,
                          vec_ref, out_ref, *, batch, seq, heads, head_dim, d_ff):
    """Whole TransformerEncoderLayer forward, both batch rows folded into one slab."""
    d = heads * head_dim
    x = x_ref[...]                                  # (B*L, D) f32

    # --- unpack small params from the single packed vector (128-lane-aligned slices) ---
    ln1_g = vec_ref[:, 0 * d:1 * d]
    ln1_b = vec_ref[:, 1 * d:2 * d]
    bqkv = vec_ref[:, 2 * d:5 * d]
    bo = vec_ref[:, 5 * d:6 * d]
    ln2_g = vec_ref[:, 6 * d:7 * d]
    ln2_b = vec_ref[:, 7 * d:8 * d]
    b1 = vec_ref[:, 8 * d:8 * d + d_ff]
    b2 = vec_ref[:, 8 * d + d_ff:9 * d + d_ff]

    # --- pre-attention LayerNorm (f32) ---
    xn = _layer_norm(x, ln1_g, ln1_b)

    # --- fused Q/K/V projection: one (B*L, D) @ (D, 3D) bf16 MXU matmul ---
    # (1/sqrt(head_dim) is pre-folded into the Q columns of wqkv / bqkv)
    qkv = jnp.dot(xn.astype(jnp.bfloat16), wqkv_ref[...],
                  preferred_element_type=jnp.float32) + bqkv     # (B*L, 3D) f32

    wo = wo_ref[...]                                # (D, D) bf16, loaded once
    neg_big = jnp.float32(-1e18)

    attn_rows = []
    for b in range(batch):                          # B=2, statically unrolled
        rows = slice(b * seq, (b + 1) * seq)
        qb = qkv[rows, 0 * d:1 * d]                                  # (L, D) f32 (scaled q)
        kb16 = qkv[rows, 1 * d:2 * d].astype(jnp.bfloat16)           # (L, D) bf16
        vb16 = qkv[rows, 2 * d:3 * d].astype(jnp.bfloat16)           # (L, D) bf16
        masked = mask_ref[b] > 0                                     # (L, L) bool, >0 = pad
        acc = jnp.zeros((seq, d), jnp.float32)      # fused ctx @ Wo accumulator (lane-dense)
        for h in range(heads):                      # statically unrolled
            sl = slice(h * head_dim, (h + 1) * head_dim)
            # scores via trans_b contraction: no k.T materialization (no XLU transpose)
            s = lax.dot_general(qb[:, sl].astype(jnp.bfloat16), kb16[:, sl],
                                dimension_numbers=(((1,), (1,)), ((), ())),
                                preferred_element_type=jnp.float32)  # (L, L)
            s = jnp.where(masked, neg_big, s)       # == masked_fill(mask, -1e18)
            s = s - jnp.max(s, axis=-1, keepdims=True)
            p = jnp.exp(s)
            p = p * pl.reciprocal(jnp.sum(p, axis=-1, keepdims=True), approx=True)
            # attention dropout == identity (inference)
            ctx_h = jnp.dot(p.astype(jnp.bfloat16), vb16[:, sl],
                            preferred_element_type=jnp.float32)      # (L, hd)
            # output projection fused into the head loop -> (L, D) lane-dense result
            acc = acc + jnp.dot(ctx_h.astype(jnp.bfloat16), wo[sl, :],
                                preferred_element_type=jnp.float32)
        attn_rows.append(acc)
    attn = jnp.concatenate(attn_rows, axis=0)       # (B*L, D): sublane stacking only

    # --- residual: dropout(context) + inputs ---
    res = attn + bo + x

    # --- PositionwiseFeedForward: w2(relu(w1(LN(res)))) + res ---
    rn = _layer_norm(res, ln2_g, ln2_b)
    inter = jnp.maximum(
        jnp.dot(rn.astype(jnp.bfloat16), w1_ref[...],
                preferred_element_type=jnp.float32) + b1,
        jnp.float32(0.0))
    y = jnp.dot(inter.astype(jnp.bfloat16), w2_ref[...],
                preferred_element_type=jnp.float32) + b2 + res

    out_ref[...] = y


# ------------------------- wrapper -------------------------
def transformer_encoder_layer(packed, query, inputs, mask):
    """Mirrors TransformerEncoderLayer.forward(query, inputs, mask); `query` is unused
    by the reference forward.  inputs: (B, L, D) f32, mask: (B, L, L) {0,1}."""
    del query
    bsz, seq, d = inputs.shape
    wqkv, wo, w1, w2, vecs = packed

    x2d = inputs.reshape(bsz * seq, d)              # free XLA reshape: lane-dense slab
    mask_i = mask.astype(jnp.int32)

    def vmem_spec():
        return pl.BlockSpec(memory_space=pltpu.MemorySpace.VMEM)

    kernel = partial(_encoder_layer_kernel, batch=bsz, seq=seq,
                     heads=HEADS, head_dim=HEAD_DIM, d_ff=D_FF)
    out2d = pl.pallas_call(
        kernel,
        out_shape=jax.ShapeDtypeStruct((bsz * seq, d), jnp.float32),
        in_specs=[vmem_spec() for _ in range(7)],
        out_specs=vmem_spec(),
    )(x2d, mask_i, wqkv, wo, w1, w2, vecs)
    return out2d.reshape(bsz, seq, d)


# ------------------------- parameter init / packing -------------------------
def init_raw_params(key):
    """Torch-equivalent raw parameters; weights stored as (in, out) = W.T of nn.Linear."""
    ks = iter(jax.random.split(key, 16))

    def linear(din, dout, scale=0.05):
        w = jax.random.normal(next(ks), (din, dout), jnp.float32) * scale
        b = jax.random.normal(next(ks), (1, dout), jnp.float32) * 0.02
        return w, b

    wq, bq = linear(D_MODEL, D_MODEL)
    wk, bk = linear(D_MODEL, D_MODEL)
    wv, bv = linear(D_MODEL, D_MODEL)
    wo, bo = linear(D_MODEL, D_MODEL)
    w1, b1 = linear(D_MODEL, D_FF)
    w2, b2 = linear(D_FF, D_MODEL)
    return dict(
        wq=wq, bq=bq, wk=wk, bk=bk, wv=wv, bv=bv, wo=wo, bo=bo,
        w1=w1, b1=b1, w2=w2, b2=b2,
        ln1_g=jnp.ones((1, D_MODEL), jnp.float32),
        ln1_b=jnp.zeros((1, D_MODEL), jnp.float32),
        ln2_g=jnp.ones((1, D_MODEL), jnp.float32),
        ln2_b=jnp.zeros((1, D_MODEL), jnp.float32),
    )


def pack_params(raw):
    """Static (one-time, outside jit) transform into kernel-ready params:
    fold 1/sqrt(head_dim) into Q, fuse QKV, cast matmul weights to bf16, pack all
    small (1, .) vectors into one (1, 9*D + D_FF) f32 array."""
    scale = jnp.float32(1.0 / math.sqrt(HEAD_DIM))
    wqkv = jnp.concatenate([raw["wq"] * scale, raw["wk"], raw["wv"]], axis=1)  # (D, 3D)
    bqkv = jnp.concatenate([raw["bq"] * scale, raw["bk"], raw["bv"]], axis=1)  # (1, 3D)
    vecs = jnp.concatenate(
        [raw["ln1_g"], raw["ln1_b"], bqkv, raw["bo"],
         raw["ln2_g"], raw["ln2_b"], raw["b1"], raw["b2"]],
        axis=1).astype(jnp.float32)                                            # (1, 1408)
    return (wqkv.astype(jnp.bfloat16),
            raw["wo"].astype(jnp.bfloat16),
            raw["w1"].astype(jnp.bfloat16),
            raw["w2"].astype(jnp.bfloat16),
            vecs)


# ------------------------- pure-JAX f32 reference (sanity check) -------------------------
def reference_forward(raw, query, inputs, mask):
    del query

    def ln(x, g, b):
        mu = jnp.mean(x, -1, keepdims=True)
        var = jnp.mean(jnp.square(x - mu), -1, keepdims=True)
        return (x - mu) / jnp.sqrt(var + LN_EPS) * g + b

    x = inputs
    xn = ln(x, raw["ln1_g"], raw["ln1_b"])
    q = xn @ raw["wq"] + raw["bq"]
    k = xn @ raw["wk"] + raw["bk"]
    v = xn @ raw["wv"] + raw["bv"]

    def split_heads(t):
        return t.reshape(B, L, HEADS, HEAD_DIM).transpose(0, 2, 1, 3)

    qh, kh, vh = split_heads(q), split_heads(k), split_heads(v)
    s = jnp.einsum('bhqd,bhkd->bhqk', qh, kh) / math.sqrt(HEAD_DIM)
    s = jnp.where(mask[:, None, :, :] > 0, -1e18, s)
    p = jax.nn.softmax(s, axis=-1)
    ctx = jnp.einsum('bhqk,bhkd->bhqd', p, vh).transpose(0, 2, 1, 3).reshape(B, L, D_MODEL)
    res = ctx @ raw["wo"] + raw["bo"] + x
    rn = ln(res, raw["ln2_g"], raw["ln2_b"])
    inter = jax.nn.relu(rn @ raw["w1"] + raw["b1"])
    return inter @ raw["w2"] + raw["b2"] + res


# ------------------------- main -------------------------
if __name__ == "__main__":
    key = jax.random.PRNGKey(0)
    k_in, k_q, k_p = jax.random.split(key, 3)

    inputs = jax.random.normal(k_in, (B, L, D_MODEL), jnp.float32)
    query = jax.random.normal(k_q, (B, L, D_MODEL), jnp.float32)   # unused by forward
    # padding-style src mask: mask[b, :, j] = 1 where key position j is padding
    lengths = jnp.array([L, L - 4], dtype=jnp.int32)
    key_pad = jnp.arange(L)[None, :] >= lengths[:, None]           # (B, L)
    mask = jnp.broadcast_to(key_pad[:, None, :], (B, L, L)).astype(jnp.int32)

    raw = init_raw_params(k_p)
    packed = pack_params(raw)

    fwd = jax.jit(transformer_encoder_layer)
    out = jax.block_until_ready(fwd(packed, query, inputs, mask))

    ref = jax.block_until_ready(jax.jit(reference_forward)(raw, query, inputs, mask))

    assert out.shape == (B, L, D_MODEL)
    assert bool(jnp.all(jnp.isfinite(out)))
    max_err = float(jnp.max(jnp.abs(out - ref)))
    # bf16 matmul weights/activations (f32 accumulation) dominate the residual error
    assert max_err < 5e-2, f"mismatch vs reference: {max_err}"

    print("KERNEL_OK")
</pallas_src>

<mosaic_0001>
module attributes {stable_mosaic.version = 11 : i64} {
  func.func @_encoder_layer_kernel(%arg0: memref<32x128xf32, #tpu.memory_space<vmem>>, %arg1: memref<2x16x16xi32, #tpu.memory_space<vmem>>, %arg2: memref<128x384xbf16, #tpu.memory_space<vmem>>, %arg3: memref<128x128xbf16, #tpu.memory_space<vmem>>, %arg4: memref<128x256xbf16, #tpu.memory_space<vmem>>, %arg5: memref<256x128xbf16, #tpu.memory_space<vmem>>, %arg6: memref<1x1408xf32, #tpu.memory_space<vmem>>, %arg7: memref<32x128xf32, #tpu.memory_space<vmem>>) attributes {dimension_semantics = [], scalar_prefetch = 0 : i64, scratch_operands = 0 : i64, tpu.core_type = #tpu.core_type<tc>} {
    %c0 = arith.constant 0 : index
    %c0_0 = arith.constant 0 : index
    %0 = vector.load %arg0[%c0, %c0_0] : memref<32x128xf32, #tpu.memory_space<vmem>>, vector<32x128xf32>
    %c0_1 = arith.constant 0 : index
    %c0_2 = arith.constant 0 : index
    %1 = vector.load %arg6[%c0_1, %c0_2] : memref<1x1408xf32, #tpu.memory_space<vmem>>, vector<1x128xf32>
    %c0_3 = arith.constant 0 : index
    %c128 = arith.constant 128 : index
    %2 = vector.load %arg6[%c0_3, %c128] : memref<1x1408xf32, #tpu.memory_space<vmem>>, vector<1x128xf32>
    %c0_4 = arith.constant 0 : index
    %c256 = arith.constant 256 : index
    %3 = vector.load %arg6[%c0_4, %c256] : memref<1x1408xf32, #tpu.memory_space<vmem>>, vector<1x384xf32>
    %c0_5 = arith.constant 0 : index
    %c640 = arith.constant 640 : index
    %4 = vector.load %arg6[%c0_5, %c640] : memref<1x1408xf32, #tpu.memory_space<vmem>>, vector<1x128xf32>
    %c0_6 = arith.constant 0 : index
    %c768 = arith.constant 768 : index
    %5 = vector.load %arg6[%c0_6, %c768] : memref<1x1408xf32, #tpu.memory_space<vmem>>, vector<1x128xf32>
    %c0_7 = arith.constant 0 : index
    %c896 = arith.constant 896 : index
    %6 = vector.load %arg6[%c0_7, %c896] : memref<1x1408xf32, #tpu.memory_space<vmem>>, vector<1x128xf32>
    %c0_8 = arith.constant 0 : index
    %c1024 = arith.constant 1024 : index
    %7 = vector.load %arg6[%c0_8, %c1024] : memref<1x1408xf32, #tpu.memory_space<vmem>>, vector<1x256xf32>
    %c0_9 = arith.constant 0 : index
    %c1280 = arith.constant 1280 : index
    %8 = vector.load %arg6[%c0_9, %c1280] : memref<1x1408xf32, #tpu.memory_space<vmem>>, vector<1x128xf32>
    %cst = arith.constant dense<0.000000e+00> : vector<32xf32>
    %9 = vector.multi_reduction <add>, %0, %cst [1] : vector<32x128xf32> to vector<32xf32>
    %10 = vector.shape_cast %9 : vector<32xf32> to vector<32x1xf32>
    %cst_10 = arith.constant 1.280000e+02 : f32
    %11 = vector.broadcast %cst_10 : f32 to vector<32x1xf32>
    %12 = arith.divf %10, %11 : vector<32x1xf32>
    %13 = vector.broadcast %12 : vector<32x1xf32> to vector<32x128xf32>
    %14 = arith.subf %0, %13 : vector<32x128xf32>
    %15 = arith.mulf %14, %14 : vector<32x128xf32>
    %cst_11 = arith.constant dense<0.000000e+00> : vector<32xf32>
    %16 = vector.multi_reduction <add>, %15, %cst_11 [1] : vector<32x128xf32> to vector<32xf32>
    %17 = vector.shape_cast %16 : vector<32xf32> to vector<32x1xf32>
    %cst_12 = arith.constant 1.280000e+02 : f32
    %18 = vector.broadcast %cst_12 : f32 to vector<32x1xf32>
    %19 = arith.divf %17, %18 : vector<32x1xf32>
    %20 = vector.broadcast %12 : vector<32x1xf32> to vector<32x128xf32>
    %21 = arith.subf %0, %20 : vector<32x128xf32>
    %cst_13 = arith.constant 9.99999997E-7 : f32
    %22 = vector.broadcast %cst_13 : f32 to vector<32x1xf32>
    %23 = arith.addf %19, %22 : vector<32x1xf32>
    %24 = math.rsqrt %23 : vector<32x1xf32>
    %25 = vector.broadcast %24 : vector<32x1xf32> to vector<32x128xf32>
    %26 = arith.mulf %21, %25 : vector<32x128xf32>
    %27 = vector.broadcast %1 : vector<1x128xf32> to vector<32x128xf32>
    %28 = arith.mulf %26, %27 : vector<32x128xf32>
    %29 = vector.broadcast %2 : vector<1x128xf32> to vector<32x128xf32>
    %30 = arith.addf %28, %29 : vector<32x128xf32>
    %31 = arith.truncf %30 : vector<32x128xf32> to vector<32x128xbf16>
    %c0_14 = arith.constant 0 : index
    %c0_15 = arith.constant 0 : index
    %32 = vector.load %arg2[%c0_14, %c0_15] : memref<128x384xbf16, #tpu.memory_space<vmem>>, vector<128x384xbf16>
    %cst_16 = arith.constant dense<0.000000e+00> : vector<32x384xf32>
    %33 = tpu.matmul %31, %32, %cst_16 {dimension_numbers = #tpu.dot_dimension_numbers<[1], [0], [0], [1], [0, 0, 1, 1], [], []>} : vector<32x128xbf16>, vector<128x384xbf16>, vector<32x384xf32> -> vector<32x384xf32>
    %34 = vector.broadcast %3 : vector<1x384xf32> to vector<32x384xf32>
    %35 = arith.addf %33, %34 : vector<32x384xf32>
    %c0_17 = arith.constant 0 : index
    %c0_18 = arith.constant 0 : index
    %36 = vector.load %arg3[%c0_17, %c0_18] : memref<128x128xbf16, #tpu.memory_space<vmem>>, vector<128x128xbf16>
    %37 = vector.extract_strided_slice %35 {offsets = [0, 0], sizes = [16, 128], strides = [1, 1]} : vector<32x384xf32> to vector<16x128xf32>
    %38 = vector.extract_strided_slice %35 {offsets = [0, 128], sizes = [16, 128], strides = [1, 1]} : vector<32x384xf32> to vector<16x128xf32>
    %39 = arith.truncf %38 : vector<16x128xf32> to vector<16x128xbf16>
    %40 = vector.extract_strided_slice %35 {offsets = [0, 256], sizes = [16, 128], strides = [1, 1]} : vector<32x384xf32> to vector<16x128xf32>
    %41 = arith.truncf %40 : vector<16x128xf32> to vector<16x128xbf16>
    %c0_19 = arith.constant 0 : index
    %c0_20 = arith.constant 0 : index
    %c0_21 = arith.constant 0 : index
    %42 = vector.load %arg1[%c0_19, %c0_20, %c0_21] : memref<2x16x16xi32, #tpu.memory_space<vmem>>, vector<1x16x16xi32>
    %43 = vector.shape_cast %42 : vector<1x16x16xi32> to vector<16x16xi32>
    %c0_i32 = arith.constant 0 : i32
    %44 = vector.broadcast %c0_i32 : i32 to vector<16x16xi32>
    %45 = arith.cmpi sgt, %43, %44 : vector<16x16xi32>
    %cst_22 = arith.constant 0.000000e+00 : f32
    %46 = vector.broadcast %cst_22 : f32 to vector<16x128xf32>
    %47 = vector.extract_strided_slice %37 {offsets = [0, 0], sizes = [16, 16], strides = [1, 1]} : vector<16x128xf32> to vector<16x16xf32>
    %48 = arith.truncf %47 : vector<16x16xf32> to vector<16x16xbf16>
    %49 = vector.extract_strided_slice %39 {offsets = [0, 0], sizes = [16, 16], strides = [1, 1]} : vector<16x128xbf16> to vector<16x16xbf16>
    %cst_23 = arith.constant dense<0.000000e+00> : vector<16x16xf32>
    %50 = tpu.matmul %48, %49, %cst_23 {dimension_numbers = #tpu.dot_dimension_numbers<[1], [1], [0], [0], [0, 0, 1, 0], [], []>} : vector<16x16xbf16>, vector<16x16xbf16>, vector<16x16xf32> -> vector<16x16xf32>
    %cst_24 = arith.constant -9.99999984E+17 : f32
    %51 = vector.broadcast %cst_24 : f32 to vector<16x16xf32>
    %52 = arith.select %45, %51, %50 : vector<16x16xi1>, vector<16x16xf32>
    %cst_25 = arith.constant dense<0xFF800000> : vector<16xf32>
    %53 = vector.multi_reduction <maximumf>, %52, %cst_25 [1] : vector<16x16xf32> to vector<16xf32>
    %54 = vector.shape_cast %53 : vector<16xf32> to vector<16x1xf32>
    %55 = vector.broadcast %54 : vector<16x1xf32> to vector<16x16xf32>
    %56 = arith.subf %52, %55 : vector<16x16xf32>
    %57 = math.exp %56 : vector<16x16xf32>
    %cst_26 = arith.constant dense<0.000000e+00> : vector<16xf32>
    %58 = vector.multi_reduction <add>, %57, %cst_26 [1] : vector<16x16xf32> to vector<16xf32>
    %59 = vector.shape_cast %58 : vector<16xf32> to vector<16x1xf32>
    %60 = tpu.reciprocal %59 {approx = true} : vector<16x1xf32> -> vector<16x1xf32>
    %61 = vector.broadcast %60 : vector<16x1xf32> to vector<16x16xf32>
    %62 = arith.mulf %57, %61 : vector<16x16xf32>
    %63 = arith.truncf %62 : vector<16x16xf32> to vector<16x16xbf16>
    %64 = vector.extract_strided_slice %41 {offsets = [0, 0], sizes = [16, 16], strides = [1, 1]} : vector<16x128xbf16> to vector<16x16xbf16>
    %cst_27 = arith.constant dense<0.000000e+00> : vector<16x16xf32>
    %65 = tpu.matmul %63, %64, %cst_27 {dimension_numbers = #tpu.dot_dimension_numbers<[1], [0], [0], [1], [0, 0, 1, 1], [], []>} : vector<16x16xbf16>, vector<16x16xbf16>, vector<16x16xf32> -> vector<16x16xf32>
    %66 = arith.truncf %65 : vector<16x16xf32> to vector<16x16xbf16>
    %67 = vector.extract_strided_slice %36 {offsets = [0, 0], sizes = [16, 128], strides = [1, 1]} : vector<128x128xbf16> to vector<16x128xbf16>
    %cst_28 = arith.constant dense<0.000000e+00> : vector<16x128xf32>
    %68 = tpu.matmul %66, %67, %cst_28 {dimension_numbers = #tpu.dot_dimension_numbers<[1], [0], [0], [1], [0, 0, 1, 1], [], []>} : vector<16x16xbf16>, vector<16x128xbf16>, vector<16x128xf32> -> vector<16x128xf32>
    %69 = arith.addf %46, %68 : vector<16x128xf32>
    %70 = vector.extract_strided_slice %37 {offsets = [0, 16], sizes = [16, 16], strides = [1, 1]} : vector<16x128xf32> to vector<16x16xf32>
    %71 = arith.truncf %70 : vector<16x16xf32> to vector<16x16xbf16>
    %72 = vector.extract_strided_slice %39 {offsets = [0, 16], sizes = [16, 16], strides = [1, 1]} : vector<16x128xbf16> to vector<16x16xbf16>
    %cst_29 = arith.constant dense<0.000000e+00> : vector<16x16xf32>
    %73 = tpu.matmul %71, %72, %cst_29 {dimension_numbers = #tpu.dot_dimension_numbers<[1], [1], [0], [0], [0, 0, 1, 0], [], []>} : vector<16x16xbf16>, vector<16x16xbf16>, vector<16x16xf32> -> vector<16x16xf32>
    %cst_30 = arith.constant -9.99999984E+17 : f32
    %74 = vector.broadcast %cst_30 : f32 to vector<16x16xf32>
    %75 = arith.select %45, %74, %73 : vector<16x16xi1>, vector<16x16xf32>
    %cst_31 = arith.constant dense<0xFF800000> : vector<16xf32>
    %76 = vector.multi_reduction <maximumf>, %75, %cst_31 [1] : vector<16x16xf32> to vector<16xf32>
    %77 = vector.shape_cast %76 : vector<16xf32> to vector<16x1xf32>
    %78 = vector.broadcast %77 : vector<16x1xf32> to vector<16x16xf32>
    %79 = arith.subf %75, %78 : vector<16x16xf32>
    %80 = math.exp %79 : vector<16x16xf32>
    %cst_32 = arith.constant dense<0.000000e+00> : vector<16xf32>
    %81 = vector.multi_reduction <add>, %80, %cst_32 [1] : vector<16x16xf32> to vector<16xf32>
    %82 = vector.shape_cast %81 : vector<16xf32> to vector<16x1xf32>
    %83 = tpu.reciprocal %82 {approx = true} : vector<16x1xf32> -> vector<16x1xf32>
    %84 = vector.broadcast %83 : vector<16x1xf32> to vector<16x16xf32>
    %85 = arith.mulf %80, %84 : vector<16x16xf32>
    %86 = arith.truncf %85 : vector<16x16xf32> to vector<16x16xbf16>
    %87 = vector.extract_strided_slice %41 {offsets = [0, 16], sizes = [16, 16], strides = [1, 1]} : vector<16x128xbf16> to vector<16x16xbf16>
    %cst_33 = arith.constant dense<0.000000e+00> : vector<16x16xf32>
    %88 = tpu.matmul %86, %87, %cst_33 {dimension_numbers = #tpu.dot_dimension_numbers<[1], [0], [0], [1], [0, 0, 1, 1], [], []>} : vector<16x16xbf16>, vector<16x16xbf16>, vector<16x16xf32> -> vector<16x16xf32>
    %89 = arith.truncf %88 : vector<16x16xf32> to vector<16x16xbf16>
    %90 = vector.extract_strided_slice %36 {offsets = [16, 0], sizes = [16, 128], strides = [1, 1]} : vector<128x128xbf16> to vector<16x128xbf16>
    %cst_34 = arith.constant dense<0.000000e+00> : vector<16x128xf32>
    %91 = tpu.matmul %89, %90, %cst_34 {dimension_numbers = #tpu.dot_dimension_numbers<[1], [0], [0], [1], [0, 0, 1, 1], [], []>} : vector<16x16xbf16>, vector<16x128xbf16>, vector<16x128xf32> -> vector<16x128xf32>
    %92 = arith.addf %69, %91 : vector<16x128xf32>
    %93 = vector.extract_strided_slice %37 {offsets = [0, 32], sizes = [16, 16], strides = [1, 1]} : vector<16x128xf32> to vector<16x16xf32>
    %94 = arith.truncf %93 : vector<16x16xf32> to vector<16x16xbf16>
    %95 = vector.extract_strided_slice %39 {offsets = [0, 32], sizes = [16, 16], strides = [1, 1]} : vector<16x128xbf16> to vector<16x16xbf16>
    %cst_35 = arith.constant dense<0.000000e+00> : vector<16x16xf32>
    %96 = tpu.matmul %94, %95, %cst_35 {dimension_numbers = #tpu.dot_dimension_numbers<[1], [1], [0], [0], [0, 0, 1, 0], [], []>} : vector<16x16xbf16>, vector<16x16xbf16>, vector<16x16xf32> -> vector<16x16xf32>
    %cst_36 = arith.constant -9.99999984E+17 : f32
    %97 = vector.broadcast %cst_36 : f32 to vector<16x16xf32>
    %98 = arith.select %45, %97, %96 : vector<16x16xi1>, vector<16x16xf32>
    %cst_37 = arith.constant dense<0xFF800000> : vector<16xf32>
    %99 = vector.multi_reduction <maximumf>, %98, %cst_37 [1] : vector<16x16xf32> to vector<16xf32>
    %100 = vector.shape_cast %99 : vector<16xf32> to vector<16x1xf32>
    %101 = vector.broadcast %100 : vector<16x1xf32> to vector<16x16xf32>
    %102 = arith.subf %98, %101 : vector<16x16xf32>
    %103 = math.exp %102 : vector<16x16xf32>
    %cst_38 = arith.constant dense<0.000000e+00> : vector<16xf32>
    %104 = vector.multi_reduction <add>, %103, %cst_38 [1] : vector<16x16xf32> to vector<16xf32>
    %105 = vector.shape_cast %104 : vector<16xf32> to vector<16x1xf32>
    %106 = tpu.reciprocal %105 {approx = true} : vector<16x1xf32> -> vector<16x1xf32>
    %107 = vector.broadcast %106 : vector<16x1xf32> to vector<16x16xf32>
    %108 = arith.mulf %103, %107 : vector<16x16xf32>
    %109 = arith.truncf %108 : vector<16x16xf32> to vector<16x16xbf16>
    %110 = vector.extract_strided_slice %41 {offsets = [0, 32], sizes = [16, 16], strides = [1, 1]} : vector<16x128xbf16> to vector<16x16xbf16>
    %cst_39 = arith.constant dense<0.000000e+00> : vector<16x16xf32>
    %111 = tpu.matmul %109, %110, %cst_39 {dimension_numbers = #tpu.dot_dimension_numbers<[1], [0], [0], [1], [0, 0, 1, 1], [], []>} : vector<16x16xbf16>, vector<16x16xbf16>, vector<16x16xf32> -> vector<16x16xf32>
    %112 = arith.truncf %111 : vector<16x16xf32> to vector<16x16xbf16>
    %113 = vector.extract_strided_slice %36 {offsets = [32, 0], sizes = [16, 128], strides = [1, 1]} : vector<128x128xbf16> to vector<16x128xbf16>
    %cst_40 = arith.constant dense<0.000000e+00> : vector<16x128xf32>
    %114 = tpu.matmul %112, %113, %cst_40 {dimension_numbers = #tpu.dot_dimension_numbers<[1], [0], [0], [1], [0, 0, 1, 1], [], []>} : vector<16x16xbf16>, vector<16x128xbf16>, vector<16x128xf32> -> vector<16x128xf32>
    %115 = arith.addf %92, %114 : vector<16x128xf32>
    %116 = vector.extract_strided_slice %37 {offsets = [0, 48], sizes = [16, 16], strides = [1, 1]} : vector<16x128xf32> to vector<16x16xf32>
    %117 = arith.truncf %116 : vector<16x16xf32> to vector<16x16xbf16>
    %118 = vector.extract_strided_slice %39 {offsets = [0, 48], sizes = [16, 16], strides = [1, 1]} : vector<16x128xbf16> to vector<16x16xbf16>
    %cst_41 = arith.constant dense<0.000000e+00> : vector<16x16xf32>
    %119 = tpu.matmul %117, %118, %cst_41 {dimension_numbers = #tpu.dot_dimension_numbers<[1], [1], [0], [0], [0, 0, 1, 0], [], []>} : vector<16x16xbf16>, vector<16x16xbf16>, vector<16x16xf32> -> vector<16x16xf32>
    %cst_42 = arith.constant -9.99999984E+17 : f32
    %120 = vector.broadcast %cst_42 : f32 to vector<16x16xf32>
    %121 = arith.select %45, %120, %119 : vector<16x16xi1>, vector<16x16xf32>
    %cst_43 = arith.constant dense<0xFF800000> : vector<16xf32>
    %122 = vector.multi_reduction <maximumf>, %121, %cst_43 [1] : vector<16x16xf32> to vector<16xf32>
    %123 = vector.shape_cast %122 : vector<16xf32> to vector<16x1xf32>
    %124 = vector.broadcast %123 : vector<16x1xf32> to vector<16x16xf32>
    %125 = arith.subf %121, %124 : vector<16x16xf32>
    %126 = math.exp %125 : vector<16x16xf32>
    %cst_44 = arith.constant dense<0.000000e+00> : vector<16xf32>
    %127 = vector.multi_reduction <add>, %126, %cst_44 [1] : vector<16x16xf32> to vector<16xf32>
    %128 = vector.shape_cast %127 : vector<16xf32> to vector<16x1xf32>
    %129 = tpu.reciprocal %128 {approx = true} : vector<16x1xf32> -> vector<16x1xf32>
    %130 = vector.broadcast %129 : vector<16x1xf32> to vector<16x16xf32>
    %131 = arith.mulf %126, %130 : vector<16x16xf32>
    %132 = arith.truncf %131 : vector<16x16xf32> to vector<16x16xbf16>
    %133 = vector.extract_strided_slice %41 {offsets = [0, 48], sizes = [16, 16], strides = [1, 1]} : vector<16x128xbf16> to vector<16x16xbf16>
    %cst_45 = arith.constant dense<0.000000e+00> : vector<16x16xf32>
    %134 = tpu.matmul %132, %133, %cst_45 {dimension_numbers = #tpu.dot_dimension_numbers<[1], [0], [0], [1], [0, 0, 1, 1], [], []>} : vector<16x16xbf16>, vector<16x16xbf16>, vector<16x16xf32> -> vector<16x16xf32>
    %135 = arith.truncf %134 : vector<16x16xf32> to vector<16x16xbf16>
    %136 = vector.extract_strided_slice %36 {offsets = [48, 0], sizes = [16, 128], strides = [1, 1]} : vector<128x128xbf16> to vector<16x128xbf16>
    %cst_46 = arith.constant dense<0.000000e+00> : vector<16x128xf32>
    %137 = tpu.matmul %135, %136, %cst_46 {dimension_numbers = #tpu.dot_dimension_numbers<[1], [0], [0], [1], [0, 0, 1, 1], [], []>} : vector<16x16xbf16>, vector<16x128xbf16>, vector<16x128xf32> -> vector<16x128xf32>
    %138 = arith.addf %115, %137 : vector<16x128xf32>
    %139 = vector.extract_strided_slice %37 {offsets = [0, 64], sizes = [16, 16], strides = [1, 1]} : vector<16x128xf32> to vector<16x16xf32>
    %140 = arith.truncf %139 : vector<16x16xf32> to vector<16x16xbf16>
    %141 = vector.extract_strided_slice %39 {offsets = [0, 64], sizes = [16, 16], strides = [1, 1]} : vector<16x128xbf16> to vector<16x16xbf16>
    %cst_47 = arith.constant dense<0.000000e+00> : vector<16x16xf32>
    %142 = tpu.matmul %140, %141, %cst_47 {dimension_numbers = #tpu.dot_dimension_numbers<[1], [1], [0], [0], [0, 0, 1, 0], [], []>} : vector<16x16xbf16>, vector<16x16xbf16>, vector<16x16xf32> -> vector<16x16xf32>
    %cst_48 = arith.constant -9.99999984E+17 : f32
    %143 = vector.broadcast %cst_48 : f32 to vector<16x16xf32>
    %144 = arith.select %45, %143, %142 : vector<16x16xi1>, vector<16x16xf32>
    %cst_49 = arith.constant dense<0xFF800000> : vector<16xf32>
    %145 = vector.multi_reduction <maximumf>, %144, %cst_49 [1] : vector<16x16xf32> to vector<16xf32>
    %146 = vector.shape_cast %145 : vector<16xf32> to vector<16x1xf32>
    %147 = vector.broadcast %146 : vector<16x1xf32> to vector<16x16xf32>
    %148 = arith.subf %144, %147 : vector<16x16xf32>
    %149 = math.exp %148 : vector<16x16xf32>
    %cst_50 = arith.constant dense<0.000000e+00> : vector<16xf32>
    %150 = vector.multi_reduction <add>, %149, %cst_50 [1] : vector<16x16xf32> to vector<16xf32>
    %151 = vector.shape_cast %150 : vector<16xf32> to vector<16x1xf32>
    %152 = tpu.reciprocal %151 {approx = true} : vector<16x1xf32> -> vector<16x1xf32>
    %153 = vector.broadcast %152 : vector<16x1xf32> to vector<16x16xf32>
    %154 = arith.mulf %149, %153 : vector<16x16xf32>
    %155 = arith.truncf %154 : vector<16x16xf32> to vector<16x16xbf16>
    %156 = vector.extract_strided_slice %41 {offsets = [0, 64], sizes = [16, 16], strides = [1, 1]} : vector<16x128xbf16> to vector<16x16xbf16>
    %cst_51 = arith.constant dense<0.000000e+00> : vector<16x16xf32>
    %157 = tpu.matmul %155, %156, %cst_51 {dimension_numbers = #tpu.dot_dimension_numbers<[1], [0], [0], [1], [0, 0, 1, 1], [], []>} : vector<16x16xbf16>, vector<16x16xbf16>, vector<16x16xf32> -> vector<16x16xf32>
    %158 = arith.truncf %157 : vector<16x16xf32> to vector<16x16xbf16>
    %159 = vector.extract_strided_slice %36 {offsets = [64, 0], sizes = [16, 128], strides = [1, 1]} : vector<128x128xbf16> to vector<16x128xbf16>
    %cst_52 = arith.constant dense<0.000000e+00> : vector<16x128xf32>
    %160 = tpu.matmul %158, %159, %cst_52 {dimension_numbers = #tpu.dot_dimension_numbers<[1], [0], [0], [1], [0, 0, 1, 1], [], []>} : vector<16x16xbf16>, vector<16x128xbf16>, vector<16x128xf32> -> vector<16x128xf32>
    %161 = arith.addf %138, %160 : vector<16x128xf32>
    %162 = vector.extract_strided_slice %37 {offsets = [0, 80], sizes = [16, 16], strides = [1, 1]} : vector<16x128xf32> to vector<16x16xf32>
    %163 = arith.truncf %162 : vector<16x16xf32> to vector<16x16xbf16>
    %164 = vector.extract_strided_slice %39 {offsets = [0, 80], sizes = [16, 16], strides = [1, 1]} : vector<16x128xbf16> to vector<16x16xbf16>
    %cst_53 = arith.constant dense<0.000000e+00> : vector<16x16xf32>
    %165 = tpu.matmul %163, %164, %cst_53 {dimension_numbers = #tpu.dot_dimension_numbers<[1], [1], [0], [0], [0, 0, 1, 0], [], []>} : vector<16x16xbf16>, vector<16x16xbf16>, vector<16x16xf32> -> vector<16x16xf32>
    %cst_54 = arith.constant -9.99999984E+17 : f32
    %166 = vector.broadcast %cst_54 : f32 to vector<16x16xf32>
    %167 = arith.select %45, %166, %165 : vector<16x16xi1>, vector<16x16xf32>
    %cst_55 = arith.constant dense<0xFF800000> : vector<16xf32>
    %168 = vector.multi_reduction <maximumf>, %167, %cst_55 [1] : vector<16x16xf32> to vector<16xf32>
    %169 = vector.shape_cast %168 : vector<16xf32> to vector<16x1xf32>
    %170 = vector.broadcast %169 : vector<16x1xf32> to vector<16x16xf32>
    %171 = arith.subf %167, %170 : vector<16x16xf32>
    %172 = math.exp %171 : vector<16x16xf32>
    %cst_56 = arith.constant dense<0.000000e+00> : vector<16xf32>
    %173 = vector.multi_reduction <add>, %172, %cst_56 [1] : vector<16x16xf32> to vector<16xf32>
    %174 = vector.shape_cast %173 : vector<16xf32> to vector<16x1xf32>
    %175 = tpu.reciprocal %174 {approx = true} : vector<16x1xf32> -> vector<16x1xf32>
    %176 = vector.broadcast %175 : vector<16x1xf32> to vector<16x16xf32>
    %177 = arith.mulf %172, %176 : vector<16x16xf32>
    %178 = arith.truncf %177 : vector<16x16xf32> to vector<16x16xbf16>
    %179 = vector.extract_strided_slice %41 {offsets = [0, 80], sizes = [16, 16], strides = [1, 1]} : vector<16x128xbf16> to vector<16x16xbf16>
    %cst_57 = arith.constant dense<0.000000e+00> : vector<16x16xf32>
    %180 = tpu.matmul %178, %179, %cst_57 {dimension_numbers = #tpu.dot_dimension_numbers<[1], [0], [0], [1], [0, 0, 1, 1], [], []>} : vector<16x16xbf16>, vector<16x16xbf16>, vector<16x16xf32> -> vector<16x16xf32>
    %181 = arith.truncf %180 : vector<16x16xf32> to vector<16x16xbf16>
    %182 = vector.extract_strided_slice %36 {offsets = [80, 0], sizes = [16, 128], strides = [1, 1]} : vector<128x128xbf16> to vector<16x128xbf16>
    %cst_58 = arith.constant dense<0.000000e+00> : vector<16x128xf32>
    %183 = tpu.matmul %181, %182, %cst_58 {dimension_numbers = #tpu.dot_dimension_numbers<[1], [0], [0], [1], [0, 0, 1, 1], [], []>} : vector<16x16xbf16>, vector<16x128xbf16>, vector<16x128xf32> -> vector<16x128xf32>
    %184 = arith.addf %161, %183 : vector<16x128xf32>
    %185 = vector.extract_strided_slice %37 {offsets = [0, 96], sizes = [16, 16], strides = [1, 1]} : vector<16x128xf32> to vector<16x16xf32>
    %186 = arith.truncf %185 : vector<16x16xf32> to vector<16x16xbf16>
    %187 = vector.extract_strided_slice %39 {offsets = [0, 96], sizes = [16, 16], strides = [1, 1]} : vector<16x128xbf16> to vector<16x16xbf16>
    %cst_59 = arith.constant dense<0.000000e+00> : vector<16x16xf32>
    %188 = tpu.matmul %186, %187, %cst_59 {dimension_numbers = #tpu.dot_dimension_numbers<[1], [1], [0], [0], [0, 0, 1, 0], [], []>} : vector<16x16xbf16>, vector<16x16xbf16>, vector<16x16xf32> -> vector<16x16xf32>
    %cst_60 = arith.constant -9.99999984E+17 : f32
    %189 = vector.broadcast %cst_60 : f32 to vector<16x16xf32>
    %190 = arith.select %45, %189, %188 : vector<16x16xi1>, vector<16x16xf32>
    %cst_61 = arith.constant dense<0xFF800000> : vector<16xf32>
    %191 = vector.multi_reduction <maximumf>, %190, %cst_61 [1] : vector<16x16xf32> to vector<16xf32>
    %192 = vector.shape_cast %191 : vector<16xf32> to vector<16x1xf32>
    %193 = vector.broadcast %192 : vector<16x1xf32> to vector<16x16xf32>
    %194 = arith.subf %190, %193 : vector<16x16xf32>
    %195 = math.exp %194 : vector<16x16xf32>
    %cst_62 = arith.constant dense<0.000000e+00> : vector<16xf32>
    %196 = vector.multi_reduction <add>, %195, %cst_62 [1] : vector<16x16xf32> to vector<16xf32>
    %197 = vector.shape_cast %196 : vector<16xf32> to vector<16x1xf32>
    %198 = tpu.reciprocal %197 {approx = true} : vector<16x1xf32> -> vector<16x1xf32>
    %199 = vector.broadcast %198 : vector<16x1xf32> to vector<16x16xf32>
    %200 = arith.mulf %195, %199 : vector<16x16xf32>
    %201 = arith.truncf %200 : vector<16x16xf32> to vector<16x16xbf16>
    %202 = vector.extract_strided_slice %41 {offsets = [0, 96], sizes = [16, 16], strides = [1, 1]} : vector<16x128xbf16> to vector<16x16xbf16>
    %cst_63 = arith.constant dense<0.000000e+00> : vector<16x16xf32>
    %203 = tpu.matmul %201, %202, %cst_63 {dimension_numbers = #tpu.dot_dimension_numbers<[1], [0], [0], [1], [0, 0, 1, 1], [], []>} : vector<16x16xbf16>, vector<16x16xbf16>, vector<16x16xf32> -> vector<16x16xf32>
    %204 = arith.truncf %203 : vector<16x16xf32> to vector<16x16xbf16>
    %205 = vector.extract_strided_slice %36 {offsets = [96, 0], sizes = [16, 128], strides = [1, 1]} : vector<128x128xbf16> to vector<16x128xbf16>
    %cst_64 = arith.constant dense<0.000000e+00> : vector<16x128xf32>
    %206 = tpu.matmul %204, %205, %cst_64 {dimension_numbers = #tpu.dot_dimension_numbers<[1], [0], [0], [1], [0, 0, 1, 1], [], []>} : vector<16x16xbf16>, vector<16x128xbf16>, vector<16x128xf32> -> vector<16x128xf32>
    %207 = arith.addf %184, %206 : vector<16x128xf32>
    %208 = vector.extract_strided_slice %37 {offsets = [0, 112], sizes = [16, 16], strides = [1, 1]} : vector<16x128xf32> to vector<16x16xf32>
    %209 = arith.truncf %208 : vector<16x16xf32> to vector<16x16xbf16>
    %210 = vector.extract_strided_slice %39 {offsets = [0, 112], sizes = [16, 16], strides = [1, 1]} : vector<16x128xbf16> to vector<16x16xbf16>
    %cst_65 = arith.constant dense<0.000000e+00> : vector<16x16xf32>
    %211 = tpu.matmul %209, %210, %cst_65 {dimension_numbers = #tpu.dot_dimension_numbers<[1], [1], [0], [0], [0, 0, 1, 0], [], []>} : vector<16x16xbf16>, vector<16x16xbf16>, vector<16x16xf32> -> vector<16x16xf32>
    %cst_66 = arith.constant -9.99999984E+17 : f32
    %212 = vector.broadcast %cst_66 : f32 to vector<16x16xf32>
    %213 = arith.select %45, %212, %211 : vector<16x16xi1>, vector<16x16xf32>
    %cst_67 = arith.constant dense<0xFF800000> : vector<16xf32>
    %214 = vector.multi_reduction <maximumf>, %213, %cst_67 [1] : vector<16x16xf32> to vector<16xf32>
    %215 = vector.shape_cast %214 : vector<16xf32> to vector<16x1xf32>
    %216 = vector.broadcast %215 : vector<16x1xf32> to vector<16x16xf32>
    %217 = arith.subf %213, %216 : vector<16x16xf32>
    %218 = math.exp %217 : vector<16x16xf32>
    %cst_68 = arith.constant dense<0.000000e+00> : vector<16xf32>
    %219 = vector.multi_reduction <add>, %218, %cst_68 [1] : vector<16x16xf32> to vector<16xf32>
    %220 = vector.shape_cast %219 : vector<16xf32> to vector<16x1xf32>
    %221 = tpu.reciprocal %220 {approx = true} : vector<16x1xf32> -> vector<16x1xf32>
    %222 = vector.broadcast %221 : vector<16x1xf32> to vector<16x16xf32>
    %223 = arith.mulf %218, %222 : vector<16x16xf32>
    %224 = arith.truncf %223 : vector<16x16xf32> to vector<16x16xbf16>
    %225 = vector.extract_strided_slice %41 {offsets = [0, 112], sizes = [16, 16], strides = [1, 1]} : vector<16x128xbf16> to vector<16x16xbf16>
    %cst_69 = arith.constant dense<0.000000e+00> : vector<16x16xf32>
    %226 = tpu.matmul %224, %225, %cst_69 {dimension_numbers = #tpu.dot_dimension_numbers<[1], [0], [0], [1], [0, 0, 1, 1], [], []>} : vector<16x16xbf16>, vector<16x16xbf16>, vector<16x16xf32> -> vector<16x16xf32>
    %227 = arith.truncf %226 : vector<16x16xf32> to vector<16x16xbf16>
    %228 = vector.extract_strided_slice %36 {offsets = [112, 0], sizes = [16, 128], strides = [1, 1]} : vector<128x128xbf16> to vector<16x128xbf16>
    %cst_70 = arith.constant dense<0.000000e+00> : vector<16x128xf32>
    %229 = tpu.matmul %227, %228, %cst_70 {dimension_numbers = #tpu.dot_dimension_numbers<[1], [0], [0], [1], [0, 0, 1, 1], [], []>} : vector<16x16xbf16>, vector<16x128xbf16>, vector<16x128xf32> -> vector<16x128xf32>
    %230 = arith.addf %207, %229 : vector<16x128xf32>
    %231 = vector.extract_strided_slice %35 {offsets = [16, 0], sizes = [16, 128], strides = [1, 1]} : vector<32x384xf32> to vector<16x128xf32>
    %232 = vector.extract_strided_slice %35 {offsets = [16, 128], sizes = [16, 128], strides = [1, 1]} : vector<32x384xf32> to vector<16x128xf32>
    %233 = arith.truncf %232 : vector<16x128xf32> to vector<16x128xbf16>
    %234 = vector.extract_strided_slice %35 {offsets = [16, 256], sizes = [16, 128], strides = [1, 1]} : vector<32x384xf32> to vector<16x128xf32>
    %235 = arith.truncf %234 : vector<16x128xf32> to vector<16x128xbf16>
    %c1 = arith.constant 1 : index
    %c0_71 = arith.constant 0 : index
    %c0_72 = arith.constant 0 : index
    %236 = vector.load %arg1[%c1, %c0_71, %c0_72] : memref<2x16x16xi32, #tpu.memory_space<vmem>>, vector<1x16x16xi32>
    %237 = vector.shape_cast %236 : vector<1x16x16xi32> to vector<16x16xi32>
    %c0_i32_73 = arith.constant 0 : i32
    %238 = vector.broadcast %c0_i32_73 : i32 to vector<16x16xi32>
    %239 = arith.cmpi sgt, %237, %238 : vector<16x16xi32>
    %cst_74 = arith.constant 0.000000e+00 : f32
    %240 = vector.broadcast %cst_74 : f32 to vector<16x128xf32>
    %241 = vector.extract_strided_slice %231 {offsets = [0, 0], sizes = [16, 16], strides = [1, 1]} : vector<16x128xf32> to vector<16x16xf32>
    %242 = arith.truncf %241 : vector<16x16xf32> to vector<16x16xbf16>
    %243 = vector.extract_strided_slice %233 {offsets = [0, 0], sizes = [16, 16], strides = [1, 1]} : vector<16x128xbf16> to vector<16x16xbf16>
    %cst_75 = arith.constant dense<0.000000e+00> : vector<16x16xf32>
    %244 = tpu.matmul %242, %243, %cst_75 {dimension_numbers = #tpu.dot_dimension_numbers<[1], [1], [0], [0], [0, 0, 1, 0], [], []>} : vector<16x16xbf16>, vector<16x16xbf16>, vector<16x16xf32> -> vector<16x16xf32>
    %cst_76 = arith.constant -9.99999984E+17 : f32
    %245 = vector.broadcast %cst_76 : f32 to vector<16x16xf32>
    %246 = arith.select %239, %245, %244 : vector<16x16xi1>, vector<16x16xf32>
    %cst_77 = arith.constant dense<0xFF800000> : vector<16xf32>
    %247 = vector.multi_reduction <maximumf>, %246, %cst_77 [1] : vector<16x16xf32> to vector<16xf32>
    %248 = vector.shape_cast %247 : vector<16xf32> to vector<16x1xf32>
    %249 = vector.broadcast %248 : vector<16x1xf32> to vector<16x16xf32>
    %250 = arith.subf %246, %249 : vector<16x16xf32>
    %251 = math.exp %250 : vector<16x16xf32>
    %cst_78 = arith.constant dense<0.000000e+00> : vector<16xf32>
    %252 = vector.multi_reduction <add>, %251, %cst_78 [1] : vector<16x16xf32> to vector<16xf32>
    %253 = vector.shape_cast %252 : vector<16xf32> to vector<16x1xf32>
    %254 = tpu.reciprocal %253 {approx = true} : vector<16x1xf32> -> vector<16x1xf32>
    %255 = vector.broadcast %254 : vector<16x1xf32> to vector<16x16xf32>
    %256 = arith.mulf %251, %255 : vector<16x16xf32>
    %257 = arith.truncf %256 : vector<16x16xf32> to vector<16x16xbf16>
    %258 = vector.extract_strided_slice %235 {offsets = [0, 0], sizes = [16, 16], strides = [1, 1]} : vector<16x128xbf16> to vector<16x16xbf16>
    %cst_79 = arith.constant dense<0.000000e+00> : vector<16x16xf32>
    %259 = tpu.matmul %257, %258, %cst_79 {dimension_numbers = #tpu.dot_dimension_numbers<[1], [0], [0], [1], [0, 0, 1, 1], [], []>} : vector<16x16xbf16>, vector<16x16xbf16>, vector<16x16xf32> -> vector<16x16xf32>
    %260 = arith.truncf %259 : vector<16x16xf32> to vector<16x16xbf16>
    %261 = vector.extract_strided_slice %36 {offsets = [0, 0], sizes = [16, 128], strides = [1, 1]} : vector<128x128xbf16> to vector<16x128xbf16>
    %cst_80 = arith.constant dense<0.000000e+00> : vector<16x128xf32>
    %262 = tpu.matmul %260, %261, %cst_80 {dimension_numbers = #tpu.dot_dimension_numbers<[1], [0], [0], [1], [0, 0, 1, 1], [], []>} : vector<16x16xbf16>, vector<16x128xbf16>, vector<16x128xf32> -> vector<16x128xf32>
    %263 = arith.addf %240, %262 : vector<16x128xf32>
    %264 = vector.extract_strided_slice %231 {offsets = [0, 16], sizes = [16, 16], strides = [1, 1]} : vector<16x128xf32> to vector<16x16xf32>
    %265 = arith.truncf %264 : vector<16x16xf32> to vector<16x16xbf16>
    %266 = vector.extract_strided_slice %233 {offsets = [0, 16], sizes = [16, 16], strides = [1, 1]} : vector<16x128xbf16> to vector<16x16xbf16>
    %cst_81 = arith.constant dense<0.000000e+00> : vector<16x16xf32>
    %267 = tpu.matmul %265, %266, %cst_81 {dimension_numbers = #tpu.dot_dimension_numbers<[1], [1], [0], [0], [0, 0, 1, 0], [], []>} : vector<16x16xbf16>, vector<16x16xbf16>, vector<16x16xf32> -> vector<16x16xf32>
    %cst_82 = arith.constant -9.99999984E+17 : f32
    %268 = vector.broadcast %cst_82 : f32 to vector<16x16xf32>
    %269 = arith.select %239, %268, %267 : vector<16x16xi1>, vector<16x16xf32>
    %cst_83 = arith.constant dense<0xFF800000> : vector<16xf32>
    %270 = vector.multi_reduction <maximumf>, %269, %cst_83 [1] : vector<16x16xf32> to vector<16xf32>
    %271 = vector.shape_cast %270 : vector<16xf32> to vector<16x1xf32>
    %272 = vector.broadcast %271 : vector<16x1xf32> to vector<16x16xf32>
    %273 = arith.subf %269, %272 : vector<16x16xf32>
    %274 = math.exp %273 : vector<16x16xf32>
    %cst_84 = arith.constant dense<0.000000e+00> : vector<16xf32>
    %275 = vector.multi_reduction <add>, %274, %cst_84 [1] : vector<16x16xf32> to vector<16xf32>
    %276 = vector.shape_cast %275 : vector<16xf32> to vector<16x1xf32>
    %277 = tpu.reciprocal %276 {approx = true} : vector<16x1xf32> -> vector<16x1xf32>
    %278 = vector.broadcast %277 : vector<16x1xf32> to vector<16x16xf32>
    %279 = arith.mulf %274, %278 : vector<16x16xf32>
    %280 = arith.truncf %279 : vector<16x16xf32> to vector<16x16xbf16>
    %281 = vector.extract_strided_slice %235 {offsets = [0, 16], sizes = [16, 16], strides = [1, 1]} : vector<16x128xbf16> to vector<16x16xbf16>
    %cst_85 = arith.constant dense<0.000000e+00> : vector<16x16xf32>
    %282 = tpu.matmul %280, %281, %cst_85 {dimension_numbers = #tpu.dot_dimension_numbers<[1], [0], [0], [1], [0, 0, 1, 1], [], []>} : vector<16x16xbf16>, vector<16x16xbf16>, vector<16x16xf32> -> vector<16x16xf32>
    %283 = arith.truncf %282 : vector<16x16xf32> to vector<16x16xbf16>
    %284 = vector.extract_strided_slice %36 {offsets = [16, 0], sizes = [16, 128], strides = [1, 1]} : vector<128x128xbf16> to vector<16x128xbf16>
    %cst_86 = arith.constant dense<0.000000e+00> : vector<16x128xf32>
    %285 = tpu.matmul %283, %284, %cst_86 {dimension_numbers = #tpu.dot_dimension_numbers<[1], [0], [0], [1], [0, 0, 1, 1], [], []>} : vector<16x16xbf16>, vector<16x128xbf16>, vector<16x128xf32> -> vector<16x128xf32>
    %286 = arith.addf %263, %285 : vector<16x128xf32>
    %287 = vector.extract_strided_slice %231 {offsets = [0, 32], sizes = [16, 16], strides = [1, 1]} : vector<16x128xf32> to vector<16x16xf32>
    %288 = arith.truncf %287 : vector<16x16xf32> to vector<16x16xbf16>
    %289 = vector.extract_strided_slice %233 {offsets = [0, 32], sizes = [16, 16], strides = [1, 1]} : vector<16x128xbf16> to vector<16x16xbf16>
    %cst_87 = arith.constant dense<0.000000e+00> : vector<16x16xf32>
    %290 = tpu.matmul %288, %289, %cst_87 {dimension_numbers = #tpu.dot_dimension_numbers<[1], [1], [0], [0], [0, 0, 1, 0], [], []>} : vector<16x16xbf16>, vector<16x16xbf16>, vector<16x16xf32> -> vector<16x16xf32>
    %cst_88 = arith.constant -9.99999984E+17 : f32
    %291 = vector.broadcast %cst_88 : f32 to vector<16x16xf32>
    %292 = arith.select %239, %291, %290 : vector<16x16xi1>, vector<16x16xf32>
    %cst_89 = arith.constant dense<0xFF800000> : vector<16xf32>
    %293 = vector.multi_reduction <maximumf>, %292, %cst_89 [1] : vector<16x16xf32> to vector<16xf32>
    %294 = vector.shape_cast %293 : vector<16xf32> to vector<16x1xf32>
    %295 = vector.broadcast %294 : vector<16x1xf32> to vector<16x16xf32>
    %296 = arith.subf %292, %295 : vector<16x16xf32>
    %297 = math.exp %296 : vector<16x16xf32>
    %cst_90 = arith.constant dense<0.000000e+00> : vector<16xf32>
    %298 = vector.multi_reduction <add>, %297, %cst_90 [1] : vector<16x16xf32> to vector<16xf32>
    %299 = vector.shape_cast %298 : vector<16xf32> to vector<16x1xf32>
    %300 = tpu.reciprocal %299 {approx = true} : vector<16x1xf32> -> vector<16x1xf32>
    %301 = vector.broadcast %300 : vector<16x1xf32> to vector<16x16xf32>
    %302 = arith.mulf %297, %301 : vector<16x16xf32>
    %303 = arith.truncf %302 : vector<16x16xf32> to vector<16x16xbf16>
    %304 = vector.extract_strided_slice %235 {offsets = [0, 32], sizes = [16, 16], strides = [1, 1]} : vector<16x128xbf16> to vector<16x16xbf16>
    %cst_91 = arith.constant dense<0.000000e+00> : vector<16x16xf32>
    %305 = tpu.matmul %303, %304, %cst_91 {dimension_numbers = #tpu.dot_dimension_numbers<[1], [0], [0], [1], [0, 0, 1, 1], [], []>} : vector<16x16xbf16>, vector<16x16xbf16>, vector<16x16xf32> -> vector<16x16xf32>
    %306 = arith.truncf %305 : vector<16x16xf32> to vector<16x16xbf16>
    %307 = vector.extract_strided_slice %36 {offsets = [32, 0], sizes = [16, 128], strides = [1, 1]} : vector<128x128xbf16> to vector<16x128xbf16>
    %cst_92 = arith.constant dense<0.000000e+00> : vector<16x128xf32>
    %308 = tpu.matmul %306, %307, %cst_92 {dimension_numbers = #tpu.dot_dimension_numbers<[1], [0], [0], [1], [0, 0, 1, 1], [], []>} : vector<16x16xbf16>, vector<16x128xbf16>, vector<16x128xf32> -> vector<16x128xf32>
    %309 = arith.addf %286, %308 : vector<16x128xf32>
    %310 = vector.extract_strided_slice %231 {offsets = [0, 48], sizes = [16, 16], strides = [1, 1]} : vector<16x128xf32> to vector<16x16xf32>
    %311 = arith.truncf %310 : vector<16x16xf32> to vector<16x16xbf16>
    %312 = vector.extract_strided_slice %233 {offsets = [0, 48], sizes = [16, 16], strides = [1, 1]} : vector<16x128xbf16> to vector<16x16xbf16>
    %cst_93 = arith.constant dense<0.000000e+00> : vector<16x16xf32>
    %313 = tpu.matmul %311, %312, %cst_93 {dimension_numbers = #tpu.dot_dimension_numbers<[1], [1], [0], [0], [0, 0, 1, 0], [], []>} : vector<16x16xbf16>, vector<16x16xbf16>, vector<16x16xf32> -> vector<16x16xf32>
    %cst_94 = arith.constant -9.99999984E+17 : f32
    %314 = vector.broadcast %cst_94 : f32 to vector<16x16xf32>
    %315 = arith.select %239, %314, %313 : vector<16x16xi1>, vector<16x16xf32>
    %cst_95 = arith.constant dense<0xFF800000> : vector<16xf32>
    %316 = vector.multi_reduction <maximumf>, %315, %cst_95 [1] : vector<16x16xf32> to vector<16xf32>
    %317 = vector.shape_cast %316 : vector<16xf32> to vector<16x1xf32>
    %318 = vector.broadcast %317 : vector<16x1xf32> to vector<16x16xf32>
    %319 = arith.subf %315, %318 : vector<16x16xf32>
    %320 = math.exp %319 : vector<16x16xf32>
    %cst_96 = arith.constant dense<0.000000e+00> : vector<16xf32>
    %321 = vector.multi_reduction <add>, %320, %cst_96 [1] : vector<16x16xf32> to vector<16xf32>
    %322 = vector.shape_cast %321 : vector<16xf32> to vector<16x1xf32>
    %323 = tpu.reciprocal %322 {approx = true} : vector<16x1xf32> -> vector<16x1xf32>
    %324 = vector.broadcast %323 : vector<16x1xf32> to vector<16x16xf32>
    %325 = arith.mulf %320, %324 : vector<16x16xf32>
    %326 = arith.truncf %325 : vector<16x16xf32> to vector<16x16xbf16>
    %327 = vector.extract_strided_slice %235 {offsets = [0, 48], sizes = [16, 16], strides = [1, 1]} : vector<16x128xbf16> to vector<16x16xbf16>
    %cst_97 = arith.constant dense<0.000000e+00> : vector<16x16xf32>
    %328 = tpu.matmul %326, %327, %cst_97 {dimension_numbers = #tpu.dot_dimension_numbers<[1], [0], [0], [1], [0, 0, 1, 1], [], []>} : vector<16x16xbf16>, vector<16x16xbf16>, vector<16x16xf32> -> vector<16x16xf32>
    %329 = arith.truncf %328 : vector<16x16xf32> to vector<16x16xbf16>
    %330 = vector.extract_strided_slice %36 {offsets = [48, 0], sizes = [16, 128], strides = [1, 1]} : vector<128x128xbf16> to vector<16x128xbf16>
    %cst_98 = arith.constant dense<0.000000e+00> : vector<16x128xf32>
    %331 = tpu.matmul %329, %330, %cst_98 {dimension_numbers = #tpu.dot_dimension_numbers<[1], [0], [0], [1], [0, 0, 1, 1], [], []>} : vector<16x16xbf16>, vector<16x128xbf16>, vector<16x128xf32> -> vector<16x128xf32>
    %332 = arith.addf %309, %331 : vector<16x128xf32>
    %333 = vector.extract_strided_slice %231 {offsets = [0, 64], sizes = [16, 16], strides = [1, 1]} : vector<16x128xf32> to vector<16x16xf32>
    %334 = arith.truncf %333 : vector<16x16xf32> to vector<16x16xbf16>
    %335 = vector.extract_strided_slice %233 {offsets = [0, 64], sizes = [16, 16], strides = [1, 1]} : vector<16x128xbf16> to vector<16x16xbf16>
    %cst_99 = arith.constant dense<0.000000e+00> : vector<16x16xf32>
    %336 = tpu.matmul %334, %335, %cst_99 {dimension_numbers = #tpu.dot_dimension_numbers<[1], [1], [0], [0], [0, 0, 1, 0], [], []>} : vector<16x16xbf16>, vector<16x16xbf16>, vector<16x16xf32> -> vector<16x16xf32>
    %cst_100 = arith.constant -9.99999984E+17 : f32
    %337 = vector.broadcast %cst_100 : f32 to vector<16x16xf32>
    %338 = arith.select %239, %337, %336 : vector<16x16xi1>, vector<16x16xf32>
    %cst_101 = arith.constant dense<0xFF800000> : vector<16xf32>
    %339 = vector.multi_reduction <maximumf>, %338, %cst_101 [1] : vector<16x16xf32> to vector<16xf32>
    %340 = vector.shape_cast %339 : vector<16xf32> to vector<16x1xf32>
    %341 = vector.broadcast %340 : vector<16x1xf32> to vector<16x16xf32>
    %342 = arith.subf %338, %341 : vector<16x16xf32>
    %343 = math.exp %342 : vector<16x16xf32>
    %cst_102 = arith.constant dense<0.000000e+00> : vector<16xf32>
    %344 = vector.multi_reduction <add>, %343, %cst_102 [1] : vector<16x16xf32> to vector<16xf32>
    %345 = vector.shape_cast %344 : vector<16xf32> to vector<16x1xf32>
    %346 = tpu.reciprocal %345 {approx = true} : vector<16x1xf32> -> vector<16x1xf32>
    %347 = vector.broadcast %346 : vector<16x1xf32> to vector<16x16xf32>
    %348 = arith.mulf %343, %347 : vector<16x16xf32>
    %349 = arith.truncf %348 : vector<16x16xf32> to vector<16x16xbf16>
    %350 = vector.extract_strided_slice %235 {offsets = [0, 64], sizes = [16, 16], strides = [1, 1]} : vector<16x128xbf16> to vector<16x16xbf16>
    %cst_103 = arith.constant dense<0.000000e+00> : vector<16x16xf32>
    %351 = tpu.matmul %349, %350, %cst_103 {dimension_numbers = #tpu.dot_dimension_numbers<[1], [0], [0], [1], [0, 0, 1, 1], [], []>} : vector<16x16xbf16>, vector<16x16xbf16>, vector<16x16xf32> -> vector<16x16xf32>
    %352 = arith.truncf %351 : vector<16x16xf32> to vector<16x16xbf16>
    %353 = vector.extract_strided_slice %36 {offsets = [64, 0], sizes = [16, 128], strides = [1, 1]} : vector<128x128xbf16> to vector<16x128xbf16>
    %cst_104 = arith.constant dense<0.000000e+00> : vector<16x128xf32>
    %354 = tpu.matmul %352, %353, %cst_104 {dimension_numbers = #tpu.dot_dimension_numbers<[1], [0], [0], [1], [0, 0, 1, 1], [], []>} : vector<16x16xbf16>, vector<16x128xbf16>, vector<16x128xf32> -> vector<16x128xf32>
    %355 = arith.addf %332, %354 : vector<16x128xf32>
    %356 = vector.extract_strided_slice %231 {offsets = [0, 80], sizes = [16, 16], strides = [1, 1]} : vector<16x128xf32> to vector<16x16xf32>
    %357 = arith.truncf %356 : vector<16x16xf32> to vector<16x16xbf16>
    %358 = vector.extract_strided_slice %233 {offsets = [0, 80], sizes = [16, 16], strides = [1, 1]} : vector<16x128xbf16> to vector<16x16xbf16>
    %cst_105 = arith.constant dense<0.000000e+00> : vector<16x16xf32>
    %359 = tpu.matmul %357, %358, %cst_105 {dimension_numbers = #tpu.dot_dimension_numbers<[1], [1], [0], [0], [0, 0, 1, 0], [], []>} : vector<16x16xbf16>, vector<16x16xbf16>, vector<16x16xf32> -> vector<16x16xf32>
    %cst_106 = arith.constant -9.99999984E+17 : f32
    %360 = vector.broadcast %cst_106 : f32 to vector<16x16xf32>
    %361 = arith.select %239, %360, %359 : vector<16x16xi1>, vector<16x16xf32>
    %cst_107 = arith.constant dense<0xFF800000> : vector<16xf32>
    %362 = vector.multi_reduction <maximumf>, %361, %cst_107 [1] : vector<16x16xf32> to vector<16xf32>
    %363 = vector.shape_cast %362 : vector<16xf32> to vector<16x1xf32>
    %364 = vector.broadcast %363 : vector<16x1xf32> to vector<16x16xf32>
    %365 = arith.subf %361, %364 : vector<16x16xf32>
    %366 = math.exp %365 : vector<16x16xf32>
    %cst_108 = arith.constant dense<0.000000e+00> : vector<16xf32>
    %367 = vector.multi_reduction <add>, %366, %cst_108 [1] : vector<16x16xf32> to vector<16xf32>
    %368 = vector.shape_cast %367 : vector<16xf32> to vector<16x1xf32>
    %369 = tpu.reciprocal %368 {approx = true} : vector<16x1xf32> -> vector<16x1xf32>
    %370 = vector.broadcast %369 : vector<16x1xf32> to vector<16x16xf32>
    %371 = arith.mulf %366, %370 : vector<16x16xf32>
    %372 = arith.truncf %371 : vector<16x16xf32> to vector<16x16xbf16>
    %373 = vector.extract_strided_slice %235 {offsets = [0, 80], sizes = [16, 16], strides = [1, 1]} : vector<16x128xbf16> to vector<16x16xbf16>
    %cst_109 = arith.constant dense<0.000000e+00> : vector<16x16xf32>
    %374 = tpu.matmul %372, %373, %cst_109 {dimension_numbers = #tpu.dot_dimension_numbers<[1], [0], [0], [1], [0, 0, 1, 1], [], []>} : vector<16x16xbf16>, vector<16x16xbf16>, vector<16x16xf32> -> vector<16x16xf32>
    %375 = arith.truncf %374 : vector<16x16xf32> to vector<16x16xbf16>
    %376 = vector.extract_strided_slice %36 {offsets = [80, 0], sizes = [16, 128], strides = [1, 1]} : vector<128x128xbf16> to vector<16x128xbf16>
    %cst_110 = arith.constant dense<0.000000e+00> : vector<16x128xf32>
    %377 = tpu.matmul %375, %376, %cst_110 {dimension_numbers = #tpu.dot_dimension_numbers<[1], [0], [0], [1], [0, 0, 1, 1], [], []>} : vector<16x16xbf16>, vector<16x128xbf16>, vector<16x128xf32> -> vector<16x128xf32>
    %378 = arith.addf %355, %377 : vector<16x128xf32>
    %379 = vector.extract_strided_slice %231 {offsets = [0, 96], sizes = [16, 16], strides = [1, 1]} : vector<16x128xf32> to vector<16x16xf32>
    %380 = arith.truncf %379 : vector<16x16xf32> to vector<16x16xbf16>
    %381 = vector.extract_strided_slice %233 {offsets = [0, 96], sizes = [16, 16], strides = [1, 1]} : vector<16x128xbf16> to vector<16x16xbf16>
    %cst_111 = arith.constant dense<0.000000e+00> : vector<16x16xf32>
    %382 = tpu.matmul %380, %381, %cst_111 {dimension_numbers = #tpu.dot_dimension_numbers<[1], [1], [0], [0], [0, 0, 1, 0], [], []>} : vector<16x16xbf16>, vector<16x16xbf16>, vector<16x16xf32> -> vector<16x16xf32>
    %cst_112 = arith.constant -9.99999984E+17 : f32
    %383 = vector.broadcast %cst_112 : f32 to vector<16x16xf32>
    %384 = arith.select %239, %383, %382 : vector<16x16xi1>, vector<16x16xf32>
    %cst_113 = arith.constant dense<0xFF800000> : vector<16xf32>
    %385 = vector.multi_reduction <maximumf>, %384, %cst_113 [1] : vector<16x16xf32> to vector<16xf32>
    %386 = vector.shape_cast %385 : vector<16xf32> to vector<16x1xf32>
    %387 = vector.broadcast %386 : vector<16x1xf32> to vector<16x16xf32>
    %388 = arith.subf %384, %387 : vector<16x16xf32>
    %389 = math.exp %388 : vector<16x16xf32>
    %cst_114 = arith.constant dense<0.000000e+00> : vector<16xf32>
    %390 = vector.multi_reduction <add>, %389, %cst_114 [1] : vector<16x16xf32> to vector<16xf32>
    %391 = vector.shape_cast %390 : vector<16xf32> to vector<16x1xf32>
    %392 = tpu.reciprocal %391 {approx = true} : vector<16x1xf32> -> vector<16x1xf32>
    %393 = vector.broadcast %392 : vector<16x1xf32> to vector<16x16xf32>
    %394 = arith.mulf %389, %393 : vector<16x16xf32>
    %395 = arith.truncf %394 : vector<16x16xf32> to vector<16x16xbf16>
    %396 = vector.extract_strided_slice %235 {offsets = [0, 96], sizes = [16, 16], strides = [1, 1]} : vector<16x128xbf16> to vector<16x16xbf16>
    %cst_115 = arith.constant dense<0.000000e+00> : vector<16x16xf32>
    %397 = tpu.matmul %395, %396, %cst_115 {dimension_numbers = #tpu.dot_dimension_numbers<[1], [0], [0], [1], [0, 0, 1, 1], [], []>} : vector<16x16xbf16>, vector<16x16xbf16>, vector<16x16xf32> -> vector<16x16xf32>
    %398 = arith.truncf %397 : vector<16x16xf32> to vector<16x16xbf16>
    %399 = vector.extract_strided_slice %36 {offsets = [96, 0], sizes = [16, 128], strides = [1, 1]} : vector<128x128xbf16> to vector<16x128xbf16>
    %cst_116 = arith.constant dense<0.000000e+00> : vector<16x128xf32>
    %400 = tpu.matmul %398, %399, %cst_116 {dimension_numbers = #tpu.dot_dimension_numbers<[1], [0], [0], [1], [0, 0, 1, 1], [], []>} : vector<16x16xbf16>, vector<16x128xbf16>, vector<16x128xf32> -> vector<16x128xf32>
    %401 = arith.addf %378, %400 : vector<16x128xf32>
    %402 = vector.extract_strided_slice %231 {offsets = [0, 112], sizes = [16, 16], strides = [1, 1]} : vector<16x128xf32> to vector<16x16xf32>
    %403 = arith.truncf %402 : vector<16x16xf32> to vector<16x16xbf16>
    %404 = vector.extract_strided_slice %233 {offsets = [0, 112], sizes = [16, 16], strides = [1, 1]} : vector<16x128xbf16> to vector<16x16xbf16>
    %cst_117 = arith.constant dense<0.000000e+00> : vector<16x16xf32>
    %405 = tpu.matmul %403, %404, %cst_117 {dimension_numbers = #tpu.dot_dimension_numbers<[1], [1], [0], [0], [0, 0, 1, 0], [], []>} : vector<16x16xbf16>, vector<16x16xbf16>, vector<16x16xf32> -> vector<16x16xf32>
    %cst_118 = arith.constant -9.99999984E+17 : f32
    %406 = vector.broadcast %cst_118 : f32 to vector<16x16xf32>
    %407 = arith.select %239, %406, %405 : vector<16x16xi1>, vector<16x16xf32>
    %cst_119 = arith.constant dense<0xFF800000> : vector<16xf32>
    %408 = vector.multi_reduction <maximumf>, %407, %cst_119 [1] : vector<16x16xf32> to vector<16xf32>
    %409 = vector.shape_cast %408 : vector<16xf32> to vector<16x1xf32>
    %410 = vector.broadcast %409 : vector<16x1xf32> to vector<16x16xf32>
    %411 = arith.subf %407, %410 : vector<16x16xf32>
    %412 = math.exp %411 : vector<16x16xf32>
    %cst_120 = arith.constant dense<0.000000e+00> : vector<16xf32>
    %413 = vector.multi_reduction <add>, %412, %cst_120 [1] : vector<16x16xf32> to vector<16xf32>
    %414 = vector.shape_cast %413 : vector<16xf32> to vector<16x1xf32>
    %415 = tpu.reciprocal %414 {approx = true} : vector<16x1xf32> -> vector<16x1xf32>
    %416 = vector.broadcast %415 : vector<16x1xf32> to vector<16x16xf32>
    %417 = arith.mulf %412, %416 : vector<16x16xf32>
    %418 = arith.truncf %417 : vector<16x16xf32> to vector<16x16xbf16>
    %419 = vector.extract_strided_slice %235 {offsets = [0, 112], sizes = [16, 16], strides = [1, 1]} : vector<16x128xbf16> to vector<16x16xbf16>
    %cst_121 = arith.constant dense<0.000000e+00> : vector<16x16xf32>
    %420 = tpu.matmul %418, %419, %cst_121 {dimension_numbers = #tpu.dot_dimension_numbers<[1], [0], [0], [1], [0, 0, 1, 1], [], []>} : vector<16x16xbf16>, vector<16x16xbf16>, vector<16x16xf32> -> vector<16x16xf32>
    %421 = arith.truncf %420 : vector<16x16xf32> to vector<16x16xbf16>
    %422 = vector.extract_strided_slice %36 {offsets = [112, 0], sizes = [16, 128], strides = [1, 1]} : vector<128x128xbf16> to vector<16x128xbf16>
    %cst_122 = arith.constant dense<0.000000e+00> : vector<16x128xf32>
    %423 = tpu.matmul %421, %422, %cst_122 {dimension_numbers = #tpu.dot_dimension_numbers<[1], [0], [0], [1], [0, 0, 1, 1], [], []>} : vector<16x16xbf16>, vector<16x128xbf16>, vector<16x128xf32> -> vector<16x128xf32>
    %424 = arith.addf %401, %423 : vector<16x128xf32>
    %425 = tpu.concatenate %230, %424 in 0 : vector<16x128xf32>, vector<16x128xf32> -> vector<32x128xf32>
    %426 = vector.broadcast %4 : vector<1x128xf32> to vector<32x128xf32>
    %427 = arith.addf %425, %426 : vector<32x128xf32>
    %428 = arith.addf %427, %0 : vector<32x128xf32>
    %cst_123 = arith.constant dense<0.000000e+00> : vector<32xf32>
    %429 = vector.multi_reduction <add>, %428, %cst_123 [1] : vector<32x128xf32> to vector<32xf32>
    %430 = vector.shape_cast %429 : vector<32xf32> to vector<32x1xf32>
    %cst_124 = arith.constant 1.280000e+02 : f32
    %431 = vector.broadcast %cst_124 : f32 to vector<32x1xf32>
    %432 = arith.divf %430, %431 : vector<32x1xf32>
    %433 = vector.broadcast %432 : vector<32x1xf32> to vector<32x128xf32>
    %434 = arith.subf %428, %433 : vector<32x128xf32>
    %435 = arith.mulf %434, %434 : vector<32x128xf32>
    %cst_125 = arith.constant dense<0.000000e+00> : vector<32xf32>
    %436 = vector.multi_reduction <add>, %435, %cst_125 [1] : vector<32x128xf32> to vector<32xf32>
    %437 = vector.shape_cast %436 : vector<32xf32> to vector<32x1xf32>
    %cst_126 = arith.constant 1.280000e+02 : f32
    %438 = vector.broadcast %cst_126 : f32 to vector<32x1xf32>
    %439 = arith.divf %437, %438 : vector<32x1xf32>
    %440 = vector.broadcast %432 : vector<32x1xf32> to vector<32x128xf32>
    %441 = arith.subf %428, %440 : vector<32x128xf32>
    %cst_127 = arith.constant 9.99999997E-7 : f32
    %442 = vector.broadcast %cst_127 : f32 to vector<32x1xf32>
    %443 = arith.addf %439, %442 : vector<32x1xf32>
    %444 = math.rsqrt %443 : vector<32x1xf32>
    %445 = vector.broadcast %444 : vector<32x1xf32> to vector<32x128xf32>
    %446 = arith.mulf %441, %445 : vector<32x128xf32>
    %447 = vector.broadcast %5 : vector<1x128xf32> to vector<32x128xf32>
    %448 = arith.mulf %446, %447 : vector<32x128xf32>
    %449 = vector.broadcast %6 : vector<1x128xf32> to vector<32x128xf32>
    %450 = arith.addf %448, %449 : vector<32x128xf32>
    %451 = arith.truncf %450 : vector<32x128xf32> to vector<32x128xbf16>
    %c0_128 = arith.constant 0 : index
    %c0_129 = arith.constant 0 : index
    %452 = vector.load %arg4[%c0_128, %c0_129] : memref<128x256xbf16, #tpu.memory_space<vmem>>, vector<128x256xbf16>
    %cst_130 = arith.constant dense<0.000000e+00> : vector<32x256xf32>
    %453 = tpu.matmul %451, %452, %cst_130 {dimension_numbers = #tpu.dot_dimension_numbers<[1], [0], [0], [1], [0, 0, 1, 1], [], []>} : vector<32x128xbf16>, vector<128x256xbf16>, vector<32x256xf32> -> vector<32x256xf32>
    %454 = vector.broadcast %7 : vector<1x256xf32> to vector<32x256xf32>
    %455 = arith.addf %453, %454 : vector<32x256xf32>
    %cst_131 = arith.constant 0.000000e+00 : f32
    %456 = vector.broadcast %cst_131 : f32 to vector<32x256xf32>
    %457 = arith.maximumf %455, %456 : vector<32x256xf32>
    %458 = arith.truncf %457 : vector<32x256xf32> to vector<32x256xbf16>
    %c0_132 = arith.constant 0 : index
    %c0_133 = arith.constant 0 : index
    %459 = vector.load %arg5[%c0_132, %c0_133] : memref<256x128xbf16, #tpu.memory_space<vmem>>, vector<256x128xbf16>
    %cst_134 = arith.constant dense<0.000000e+00> : vector<32x128xf32>
    %460 = tpu.matmul %458, %459, %cst_134 {dimension_numbers = #tpu.dot_dimension_numbers<[1], [0], [0], [1], [0, 0, 1, 1], [], []>} : vector<32x256xbf16>, vector<256x128xbf16>, vector<32x128xf32> -> vector<32x128xf32>
    %461 = vector.broadcast %8 : vector<1x128xf32> to vector<32x128xf32>
    %462 = arith.addf %460, %461 : vector<32x128xf32>
    %463 = arith.addf %462, %428 : vector<32x128xf32>
    %c0_135 = arith.constant 0 : index
    %c0_136 = arith.constant 0 : index
    %464 = vector.load %arg7[%c0_135, %c0_136] : memref<32x128xf32, #tpu.memory_space<vmem>>, vector<32x128xf32>
    tpu.vector_store %arg7[%c0_135, %c0_136], %463 {strides = array<i32>} : memref<32x128xf32, #tpu.memory_space<vmem>>, vector<32x128xf32>,
    return
  }
}

</mosaic_0001>

<bundles_post_ra>
// kernel: transformer_encoder_layer.1
= control target key start
LH: loop header
LB: loop body
LE: loop exit
PB: predicated region body
PF: predicated region fallthrough
CT: control target
= control target key end

     0   :  { %12 = vsyncpa [#allocation3], 0  ;;  %s5427_s0 = inlined_call_operand.hbm [shape: f32[32,128], index: 0, kind: input, shape index: {}]   ;;  %s5428_s1 = inlined_call_operand.hbm [shape: s32[2,16,16], index: 1, kind: input, shape index: {}]   ;;  %s5429_s2 = inlined_call_operand.hbm [shape: bf16[128,384], index: 2, kind: input, shape index: {}]   ;;  %s5430_s3 = inlined_call_operand.hbm [shape: bf16[128,128], index: 3, kind: input, shape index: {}]   ;;  %s5431_s4 = inlined_call_operand.hbm [shape: bf16[128,256], index: 4, kind: input, shape index: {}]   ;;  %s5432_s5 = inlined_call_operand.hbm [shape: bf16[256,128], index: 5, kind: input, shape index: {}]   ;;  %s5433_s6 = inlined_call_operand.hbm [shape: f32[1,1408], index: 6, kind: input, shape index: {}]   ;;  %s5434_s7 = inlined_call_operand.hbm [shape: f32[32,128], index: 7, kind: output, shape index: {}]  }
   0x1   :  { %13 = vsyncpa [#allocation6], 0 }
   0x2   :  { %14 = vsyncpa [#allocation9], 0 }
   0x3   :  { %15 = vsyncpa [#allocation12], 0 }
   0x4   :  { %16 = vsyncpa [#allocation4], 0  ;;  %s4707_s24 = smov [#allocation5]   ;;  %s4708_s26 = smov [#allocation8]  }
   0x5   :  { %s34_s25 = sshll.u32 %s4707_s24, 4  ;;  %s58_s27 = sshll.u32 %s4708_s26, 4  ;;  %s35_s25 = int_to_ptr.vmem [resolvable:$true] %s34_s25  ;;  %s59_s27 = int_to_ptr.vmem [resolvable:$true] %s58_s27 }
   0x6   :  { %s4545_s28 = scalar_lea.vmem %s35_s25, 512  ;;  %p4550_p1 = scmp.lt.s32.totalorder %s35_s25, %s35_s25 }
   0x7   :  { %p4546_p0 = scmp.ne.s32.totalorder %s35_s25, %s4545_s28  ;;  %p4551_p2 = scmp.lt.s32.totalorder %s4545_s28, %s4545_s28 }
   0x9   :  { %p4552_p3 = por %p4551_p2, %p4550_p1 }
   0xb   :  { %p4553_p4 = pnand %p4552_p3, %p4546_p0 }
   0xd   :  { %4556 = shalt.err (!%p4553_p4)
}
   0xe   :  { %s4709_s29 = smov 128   ;;  %s4710_s30 = smov 8  }
   0xf   :  { %40 = dma.hbm_to_vmem [thread:$0]  %s5428_s1, 512, %s35_s25, [#allocation6], %s4709_s29, %s4709_s29, %s4710_s30  }
  0x10   :  { %s4565_s10 = scalar_lea.vmem %s59_s27, 1024  ;;  %p4570_p6 = scmp.lt.s32.totalorder %s59_s27, %s59_s27 }
  0x11   :  { %p4566_p5 = scmp.ne.s32.totalorder %s59_s27, %s4565_s10  ;;  %p4571_p7 = scmp.lt.s32.totalorder %s4565_s10, %s4565_s10 }
  0x13   :  { %p4572_p8 = por %p4571_p7, %p4570_p6 }
  0x15   :  { %p4573_p9 = pnand %p4572_p8, %p4566_p5 }
  0x17   :  { %4576 = shalt.err (!%p4573_p9)
}
  0x18   :  { %s4711_s11 = smov 64   ;;  %s4712_s12 = smov 4  }
  0x19   :  { %64 = dma.hbm_to_vmem [thread:$0]  %s5430_s3, 1024, %s59_s27, [#allocation9], %s4711_s11, %s4711_s11, %s4712_s12  }
  0x1a   :  { %s4713_s15 = smov [#allocation11]   ;;  %s4714_s17 = smov [#allocation2]  }
  0x1b   :  { %s82_s16 = sshll.u32 %s4713_s15, 4  ;;  %s22_s18 = sshll.u32 %s4714_s17, 4  ;;  %s83_s16 = int_to_ptr.vmem [resolvable:$true] %s82_s16  ;;  %s23_s18 = int_to_ptr.vmem [resolvable:$true] %s22_s18 }
  0x1c   :  { %s4585_s1 = scalar_lea.vmem %s83_s16, 2048  ;;  %p4590_p11 = scmp.lt.s32.totalorder %s83_s16, %s83_s16 }
  0x1d   :  { %p4586_p10 = scmp.ne.s32.totalorder %s83_s16, %s4585_s1  ;;  %p4591_p12 = scmp.lt.s32.totalorder %s4585_s1, %s4585_s1 }
  0x1f   :  { %p4592_p13 = por %p4591_p12, %p4590_p11 }
  0x21   :  { %p4593_p0 = pnand %p4592_p13, %p4586_p10 }
  0x23   :  { %4596 = shalt.err (!%p4593_p0)
}
  0x24   :  { %88 = dma.hbm_to_vmem [thread:$0]  %s5432_s5, 2048, %s83_s16, [#allocation12], %s4711_s11, %s4711_s11, %s4712_s12  }
  0x25   :  { %s4605_s3 = scalar_lea.vmem %s23_s18, 512  ;;  %p4610_p2 = scmp.lt.s32.totalorder %s23_s18, %s23_s18 }
  0x26   :  { %p4606_p1 = scmp.ne.s32.totalorder %s23_s18, %s4605_s3  ;;  %p4611_p3 = scmp.lt.s32.totalorder %s4605_s3, %s4605_s3 }
  0x28   :  { %p4612_p4 = por %p4611_p3, %p4610_p2 }
  0x2a   :  { %p4613_p5 = pnand %p4612_p4, %p4606_p1 }
  0x2c   :  { %4616 = shalt.err (!%p4613_p5)
}
  0x2d   :  { %28 = dma.hbm_to_vmem [thread:$0]  %s5427_s0, 512, %s23_s18, [#allocation3], %s4709_s29, %s4709_s29, %s4710_s30  }
  0x2e   :  { %s4715_s23 = smov [#allocation7]  }
  0x2f   :  { %s46_s24 = sshll.u32 %s4715_s23, 4  ;;  %s47_s24 = int_to_ptr.vmem [resolvable:$true] %s46_s24 }
  0x30   :  { %s4625_s25 = scalar_lea.vmem %s47_s24, 3072  ;;  %p4630_p7 = scmp.lt.s32.totalorder %s47_s24, %s47_s24 }
  0x31   :  { %p4626_p6 = scmp.ne.s32.totalorder %s47_s24, %s4625_s25  ;;  %p4631_p8 = scmp.lt.s32.totalorder %s4625_s25, %s4625_s25 }
  0x33   :  { %p4632_p9 = por %p4631_p8, %p4630_p7 }
  0x35   :  { %p4633_p10 = pnand %p4632_p9, %p4626_p6 }
  0x37   :  { %4636 = shalt.err (!%p4633_p10)
}
  0x38   :  { %s4716_s5 = smov 192   ;;  %s4717_s26 = smov 12  }
  0x39   :  { %52 = dma.hbm_to_vmem [thread:$0]  %s5429_s2, 3072, %s47_s24, [#allocation6], %s4716_s5, %s4716_s5, %s4717_s26  }
  0x3a   :  { %s4718_s8 = smov [#allocation10]   ;;  %s4719_s0 = smov [#allocation13]  }
  0x3b   :  { %s70_s9 = sshll.u32 %s4718_s8, 4  ;;  %s95_s10 = sshll.u32 %s4719_s0, 4  ;;  %s71_s9 = int_to_ptr.vmem [resolvable:$true] %s70_s9  ;;  %s96_s10 = int_to_ptr.vmem [resolvable:$true] %s95_s10 }
  0x3c   :  { %s4645_s12 = scalar_lea.vmem %s71_s9, 2048  ;;  %p4650_p12 = scmp.lt.s32.totalorder %s71_s9, %s71_s9 }
  0x3d   :  { %p4646_p11 = scmp.ne.s32.totalorder %s71_s9, %s4645_s12  ;;  %p4651_p13 = scmp.lt.s32.totalorder %s4645_s12, %s4645_s12 }
  0x3f   :  { %p4652_p0 = por %p4651_p13, %p4650_p12 }
  0x41   :  { %p4653_p1 = pnand %p4652_p0, %p4646_p11 }
  0x43   :  { %4656 = shalt.err (!%p4653_p1)
}
  0x44   :  { %76 = dma.hbm_to_vmem [thread:$0]  %s5431_s4, 2048, %s71_s9, [#allocation9], %s4709_s29, %s4709_s29, %s4710_s30  }
  0x45   :  { %s4665_s2 = scalar_lea.vmem %s96_s10, 176  ;;  %s4669_s15 = scalar_lea.vmem %s96_s10, 192 }
  0x46   :  { %p4666_p2 = scmp.ne.s32.totalorder %s96_s10, %s4665_s2  ;;  %p4670_p3 = scmp.lt.s32.totalorder %s96_s10, %s96_s10 }
  0x47   :  { %p4671_p4 = scmp.lt.s32.totalorder %s4669_s15, %s4665_s2 }
  0x49   :  { %p4672_p5 = por %p4671_p4, %p4670_p3 }
  0x4b   :  { %p4673_p6 = pnand %p4672_p5, %p4666_p2 }
  0x4d   :  { %4676 = shalt.err (!%p4673_p6)
}
  0x4e   :  { %98 = dma.hbm_to_vmem [thread:$0]  %s5433_s6, 176, %s96_s10, [#allocation12]  }
  0x4f   :  { %4697 = dma.done.wait [#allocation3], 512  }
  0x50   :  { %4698 = vsyncadd [#allocation3], 4294966784 }
  0x51   :  { %4699 = dma.done.wait [#allocation6], 3584  }
  0x52   :  { %4700 = vsyncadd [#allocation6], 4294963712 }
  0x53   :  { %4701 = dma.done.wait [#allocation9], 3072  }
  0x54   :  { %4702 = vsyncadd [#allocation9], 4294964224 }
  0x55   :  { %4703 = dma.done.wait [#allocation12], 2224  }
  0x56   :  { %4704 = vsyncadd [#allocation12], 4294965072  ;;  %v121_v0 = vld [vmem:[#allocation2] sm:$0xff]  ;;  %v122_v1 = vld [vmem:[#allocation2 + $0x8] sm:$0xff]  ;;  %v4720_v29 = vmov 0   ;;  %v4721_v62 = vmov 0.0  }
  0x57   :  { %133 = vadd.xlane.f32.xlu0 %v121_v0  ;;  %v123_v2 = vld [vmem:[#allocation2 + $0x10] sm:$0xff]  ;;  %v4308_v3 = vld [vmem:[#allocation7 + $0xac] ss:$12 sps:$4 sm:$0xff]   ;;  %v4314_v16 = vld [vmem:[#allocation7 + $0x7c] ss:$12 sps:$4 sm:$0xff]   ;;  %408 = vmatprep.mubr.bf16.mxu0 %v4720_v29  ;;  %vm4722_vm0 = vmmov 0  }
  0x58   :  { %v4310_v4 = vld [vmem:[#allocation7 + $0xa8] ss:$12 sps:$4 sm:$0xff]   ;;  %376 = vmatprep.subr.bf16.mxu0 %v4308_v3  ;;  %v124_v13 = vld [vmem:[#allocation2 + $0x18] sm:$0xff]  ;;  %v4317_v20 = vld [vmem:[#allocation7 + $0x64] ss:$12 sps:$4 sm:$0xff]   ;;  %vm501_vm1 = vcmask 130048  }
  0x59   :  { %377 = vmatpush1.bf16.msra.mxu0 %v4310_v4  ;;  %v4311_v14 = vld [vmem:[#allocation7 + $0x94] ss:$12 sps:$4 sm:$0xff]   ;;  %v4313_v15 = vld [vmem:[#allocation7 + $0x90] ss:$12 sps:$4 sm:$0xff]   ;;  %v4316_v17 = vld [vmem:[#allocation7 + $0x78] ss:$12 sps:$4 sm:$0xff]  }
  0x5a   :  { %378 = vmatprep.subr.bf16.mxu0 %v4311_v14  ;;  %v4319_v21 = vld [vmem:[#allocation7 + $0x60] ss:$12 sps:$4 sm:$0xff]   ;;  %v4322_v25 = vld [vmem:[#allocation7 + $0x48] ss:$12 sps:$4 sm:$0xff]   ;;  %v4325_v27 = vld [vmem:[#allocation7 + $0x30] ss:$12 sps:$4 sm:$0xff]   ;;  %v233_v14 = vlaneseq }
  0x5b   :  { %135 = vadd.xlane.f32.xlu0 %v122_v1  ;;  %v4320_v22 = vld [vmem:[#allocation7 + $0x4c] ss:$12 sps:$4 sm:$0xff]   ;;  %v4323_v26 = vld [vmem:[#allocation7 + $0x34] ss:$12 sps:$4 sm:$0xff]   ;;  %v4326_v28 = vld [vmem:[#allocation7 + $0x1c] ss:$12 sps:$4 sm:$0xff]  }
  0x5c   :  { %v4328_v30 = vld [vmem:[#allocation7 + $0x18] ss:$12 sps:$4 sm:$0xff]   ;;  %v4331_v32 = vld [vmem:[#allocation7] ss:$12 sps:$4 sm:$0xff]   ;;  %v4332_v33 = vld [vmem:[#allocation7 + $0xb0] ss:$12 sps:$4 sm:$0xff]  }
  0x5d   :  { %379 = vmatpush1.bf16.msra.mxu0 %v4313_v15  ;;  %v4329_v31 = vld [vmem:[#allocation7 + $0x4] ss:$12 sps:$4 sm:$0xff]   ;;  %3977 = vmatprep.subr.bf16.mxu1 %v4332_v33  ;;  %v3725_v47 = vld [vmem:[#allocation13] ss:$0 sm:$0xff]  ;;  %v3726_v51 = vld [vmem:[#allocation13 + $0x1] ss:$0 sm:$0xff] }
  0x5e   :  { %380 = vmatprep.subr.bf16.mxu0 %v4314_v16  ;;  %v4333_v34 = vld [vmem:[#allocation7 + $0x98] ss:$12 sps:$4 sm:$0xff]   ;;  %3978 = vmatpush3.bf16.msra.mxu1 %v4332_v33  ;;  %v4334_v53 = vld [vmem:[#allocation7 + $0x80] ss:$12 sps:$4 sm:$0xff]   ;;  %v4335_v57 = vld [vmem:[#allocation7 + $0x68] ss:$12 sps:$4 sm:$0xff]  }
  0x5f   :  { %137 = vadd.xlane.f32.xlu0 %v123_v2  ;;  %3979 = vmatprep.subr.bf16.mxu1 %v4333_v34  ;;  %v4336_v58 = vld [vmem:[#allocation7 + $0x50] ss:$12 sps:$4 sm:$0xff]   ;;  %v4337_v59 = vld [vmem:[#allocation7 + $0x38] ss:$12 sps:$4 sm:$0xff]   ;;  %v4338_v60 = vld [vmem:[#allocation7 + $0x20] ss:$12 sps:$4 sm:$0xff]  }
  0x60   :  { %v4339_v61 = vld [vmem:[#allocation7 + $0x8] ss:$12 sps:$4 sm:$0xff]   ;;  %v4827_v15 = vshrl.u32 %v233_v14, 7  ;;  %s4723_s4 = smov 112   ;;  %s4724_s6 = smov 96  }
  0x61   :  { %381 = vmatpush1.bf16.msra.mxu0 %v4316_v17  ;;  %v127_v17 = vld [vmem:[#allocation13 + $0x2] sm:$0x7]  ;;  %s4725_s18 = smov 80   ;;  %s4726_s1 = smov 48  }
  0x62   :  { %382 = vmatprep.subr.bf16.mxu0 %v4317_v20  ;;  %3980 = vmatpush3.bf16.msra.mxu1 %v4333_v34  ;;  %v235_v16 = vsub.s32 0, %v4827_v15  ;;  %s4727_s19 = smov 32   ;;  %s4728_s20 = smov 16  }
  0x63   :  { %3981 = vmatprep.subr.bf16.mxu1 %v4334_v53 }
  0x64   :  { %v236_v20 = vrot.slane %v127_v17, %v235_v16 }
  0x65   :  { %383 = vmatpush1.bf16.msra.mxu0 %v4319_v21 }
  0x66   :  { %384 = vmatprep.subr.bf16.mxu0 %v4320_v22  ;;  %3982 = vmatpush3.bf16.msra.mxu1 %v4334_v53 }
  0x67   :  { %3983 = vmatprep.subr.bf16.mxu1 %v4335_v57 }
  0x69   :  { %385 = vmatpush1.bf16.msra.mxu0 %v4322_v25 }
  0x6a   :  { %386 = vmatprep.subr.bf16.mxu0 %v4323_v26  ;;  %3984 = vmatpush3.bf16.msra.mxu1 %v4335_v57 }
  0x6b   :  { %3985 = vmatprep.subr.bf16.mxu1 %v4336_v58 }
  0x6d   :  { %387 = vmatpush1.bf16.msra.mxu0 %v4325_v27 }
  0x6e   :  { %388 = vmatprep.subr.bf16.mxu0 %v4326_v28  ;;  %3986 = vmatpush3.bf16.msra.mxu1 %v4336_v58 }
  0x6f   :  { %3987 = vmatprep.subr.bf16.mxu1 %v4337_v59 }
  0x71   :  { %389 = vmatpush1.bf16.msra.mxu0 %v4328_v30 }
  0x72   :  { %390 = vmatprep.subr.bf16.mxu0 %v4329_v31  ;;  %3988 = vmatpush3.bf16.msra.mxu1 %v4337_v59 }
  0x73   :  { %3989 = vmatprep.subr.bf16.mxu1 %v4338_v60 }
  0x75   :  { %391 = vmatpush1.bf16.msra.mxu0 %v4331_v32 }
  0x76   :  { %3990 = vmatpush3.bf16.msra.mxu1 %v4338_v60  ;;  %4003 = vmatprep.subr.bf16.mxu0 %v4721_v62 }
  0x77   :  { %3991 = vmatprep.subr.bf16.mxu1 %v4339_v61 }
  0x7a   :  { %3992 = vmatpush3.bf16.msra.mxu1 %v4339_v61 }
  0x7b   :  { %3997 = vmatprep.subr.bf16.mxu1 %v4721_v62 }
  0xe0   :  { %v134_v5 = vpop.xlane.xlu0 %133 }
  0xe1   :  { %v142_v6 = vmul.f32 0.0078125, %v134_v5 }
  0xe3   :  { %v4804_v7 = vsub.f32 %v121_v0, %v142_v6 }
  0xe4   :  { %v136_v8 = vpop.xlane.xlu0 %135 }
  0xe5   :  { %v143_v9 = vmul.f32 0.0078125, %v136_v8  ;;  %v150_v10 = vmul.f32 %v4804_v7, %v4804_v7 }
  0xe7   :  { %154 = vadd.xlane.f32.xlu1 %v150_v10  ;;  %v4808_v11 = vsub.f32 %v122_v1, %v143_v9 }
  0xe8   :  { %v138_v18 = vpop.xlane.xlu0 %137 }
  0xe9   :  { %v151_v12 = vmul.f32 %v4808_v11, %v4808_v11  ;;  %v144_v19 = vmul.f32 0.0078125, %v138_v18  ;;  %v239_v18 = vsub.s32 1, %v4827_v15 }
  0xeb   :  { %156 = vadd.xlane.f32.xlu1 %v151_v12  ;;  %v4812_v23 = vsub.f32 %v123_v2, %v144_v19  ;;  %v4835_v22 = vrot.slane %v127_v17, %v239_v18 }
  0xed   :  { %v152_v24 = vmul.f32 %v4812_v23, %v4812_v23 }
  0xef   :  { %139 = vadd.xlane.f32.xlu1 %v124_v13  ;;  %158 = vadd.xlane.f32.xlu0 %v152_v24 }
 0x170   :  { %v155_v35 = vpop.xlane.xlu1 %154 }
 0x171   :  { %v162_v36 = vmul.f32 0.0078125, %v155_v35 }
 0x173   :  { %v166_v37 = vadd.f32 1e-06, %v162_v36  ;;  %v243_v36 = vsub.s32 2, %v4827_v15 }
 0x174   :  { %v157_v38 = vpop.xlane.xlu1 %156 }
 0x175   :  { %4388 = vrsqrt.f32 %v166_v37  ;;  %v163_v39 = vmul.f32 0.0078125, %v157_v38  ;;  %v244_v37 = vrot.slane %v127_v17, %v243_v36 }
 0x177   :  { %v167_v40 = vadd.f32 1e-06, %v163_v39 }
 0x178   :  { %v140_v41 = vpop.xlane.xlu1 %139  ;;  %v159_v63 = vpop.xlane.xlu0 %158 }
 0x179   :  { %4390 = vrsqrt.f32 %v167_v40  ;;  %v145_v42 = vmul.f32 0.0078125, %v140_v41  ;;  %v164_v0 = vmul.f32 0.0078125, %v159_v63 }
 0x17b   :  { %v149_v43 = vsub.f32 %v124_v13, %v145_v42  ;;  %v168_v1 = vadd.f32 1e-06, %v164_v0 }
 0x17d   :  { %v153_v44 = vmul.f32 %v149_v43, %v149_v43  ;;  %4392 = vrsqrt.f32 %v168_v1 }
 0x17f   :  { %160 = vadd.xlane.f32.xlu1 %v153_v44 }
 0x182   :  { %v4389_v45 = vpop.eup %4388 }
 0x183   :  { %v174_v46 = vmul.f32 %v4389_v45, %v4804_v7 }
 0x185   :  { %v184_v50 = vmul.f32 %v3725_v47, %v174_v46 }
 0x186   :  { %v4391_v48 = vpop.eup %4390 }
 0x187   :  { %v175_v49 = vmul.f32 %v4391_v48, %v4808_v11  ;;  %v194_v54 = vadd.f32 %v3726_v51, %v184_v50 }
 0x189   :  { %v185_v52 = vmul.f32 %v3725_v47, %v175_v49 }
 0x18a   :  { %v4393_v5 = vpop.eup %4392 }
 0x18b   :  { %v195_v55 = vadd.f32 %v3726_v51, %v185_v52  ;;  %v176_v6 = vmul.f32 %v4393_v5, %v4812_v23 }
 0x18d   :  { %v198_v56 = vpack.c.bf16 %v195_v55, %v194_v54  ;;  %v186_v7 = vmul.f32 %v3725_v47, %v176_v6  ;;  %v4870_v54 = vld [vmem:[#allocation5] sm:$0xff]  ;;  %v4873_v55 = vld [vmem:[#allocation5 + $0x8] sm:$0xff] }
 0x18e   :  { %vm498_vm2 = vcmp.gt.s32.totalorder %v4870_v54, 0  ;;  %vm499_vm3 = vcmp.gt.s32.totalorder %v4873_v55, 0 }
 0x18f   :  { %409 = vmatmul.mubr.bf16.vlgmr.msra.gmra.mxu0 %v198_v56  ;;  %3993 = vmatprep.mubr.bf16.mxu1 %v198_v56  ;;  %v196_v11 = vadd.f32 %v3726_v51, %v186_v7 }
 0x190   :  { %418 = vmatprep.mubr.bf16.mxu0 %v4720_v29 }
 0x208   :  { %v161_v2 = vpop.xlane.xlu1 %160 }
 0x209   :  { %v165_v3 = vmul.f32 0.0078125, %v161_v2 }
 0x20b   :  { %v169_v4 = vadd.f32 1e-06, %v165_v3 }
 0x20d   :  { %4394 = vrsqrt.f32 %v169_v4 }
 0x21a   :  { %v4395_v8 = vpop.eup %4394 }
 0x21b   :  { %v177_v9 = vmul.f32 %v4395_v8, %v149_v43 }
 0x21d   :  { %v187_v10 = vmul.f32 %v3725_v47, %v177_v9 }
 0x21f   :  { %v197_v12 = vadd.f32 %v3726_v51, %v187_v10 }
 0x221   :  { %v199_v13 = vpack.c.bf16 %v197_v12, %v196_v11 }
 0x223   :  { %419 = vmatmul.mubr.bf16.gmra.mxu0 %v199_v13  ;;  %3994 = vmatmul.mubr.bf16.vlgmr.msra.gmra.mxu1 %v199_v13 }
 0x224   :  { %3999 = vmatprep.mubr.msk.bf16.mxu1 %vm4722_vm0, %v4721_v62  ;;  %4005 = vmatprep.mubr.msk.bf16.mxu0 %vm4722_vm0, %v4721_v62 }
 0x24f   :  { %v410_v19 = vpop.f32.mrf.mxu0 }
 0x250   :  { %v411_v24 = vadd.f32 %v410_v19, %v236_v20 }
 0x251   :  { %v412_v21 = vpop.f32.mrf.mxu0 }
 0x252   :  { %v413_v27 = vadd.f32 %v412_v21, %v4835_v22 }
 0x253   :  { %v414_v23 = vpop.f32.mrf.mxu0 }
 0x254   :  { %v415_v25 = vadd.f32 %v414_v23, %v236_v20 }
 0x255   :  { %v416_v26 = vpop.f32.mrf.mxu0 }
 0x256   :  { %v4838_v28 = vpack.c.bf16 %v415_v25, %v411_v24  ;;  %v417_v30 = vadd.f32 %v416_v26, %v4835_v22 }
 0x258   :  { %v4841_v31 = vpack.c.bf16 %v417_v30, %v413_v27  ;;  %620 = vrot.lane.b32.xlu1 %v4838_v28, %s4723_s4 }
 0x25a   :  { %623 = vrot.lane.b32.xlu0 %v4841_v31, %s4723_s4  ;;  %v506_v32 = vsel %vm501_vm1, %v4841_v31, 0 }
 0x25b   :  { %3998 = vmatpush3.bf16.xpose.msra.mxu1 %v506_v32 }
 0x25c   :  { %4009 = vmatprep.subr.bf16.mxu1 %v4721_v62 }
 0x262   :  { %4000 = vmatmul.mubr.msk.bf16.vlgmr.msra.gmra.mxu1 %vm501_vm1, %v4838_v28 }
 0x263   :  { %4011 = vmatprep.mubr.msk.bf16.mxu1 %vm4722_vm0, %v4721_v62 }
 0x2ca   :  { %v621_v35 = vpop.permute.xlu1 %620 }
 0x2cc   :  { %v624_v33 = vpop.permute.xlu0 %623 }
 0x2cd   :  { %v629_v34 = vsel %vm501_vm1, %v624_v33, 0 }
 0x2ce   :  { %4010 = vmatpush3.bf16.xpose.msra.mxu1 %v629_v34 }
 0x2cf   :  { %4021 = vmatprep.subr.bf16.mxu1 %v4721_v62 }
 0x2d5   :  { %4012 = vmatmul.mubr.msk.bf16.vlgmr.msra.gmra.mxu1 %vm501_vm1, %v621_v35 }
 0x2d6   :  { %4023 = vmatprep.mubr.msk.bf16.mxu1 %vm4722_vm0, %v4721_v62 }
 0x2e3   :  { %v420_v38 = vpop.f32.mrf.mxu0  ;;  %v3995_v39 = vpop.f32.mrf.mxu1 }
 0x2e4   :  { %v472_v40 = vadd.f32 %v3995_v39, %v244_v37  ;;  %v421_v43 = vadd.f32 %v420_v38, %v236_v20 }
 0x2e5   :  { %v4860_v41 = vpop.f32.mrf.mxu0  ;;  %v463_v42 = vpop.f32.mrf.mxu1 }
 0x2e6   :  { %v464_v49 = vadd.f32 %v463_v42, %v244_v37 }
 0x2e7   :  { %v424_v44 = vpop.f32.mrf.mxu0  ;;  %v3996_v45 = vpop.f32.mrf.mxu1 }
 0x2e8   :  { %v425_v46 = vadd.f32 %v424_v44, %v236_v20  ;;  %v475_v47 = vadd.f32 %v3996_v45, %v244_v37 }
 0x2e9   :  { %v466_v48 = vpop.f32.mrf.mxu1 }
 0x2ea   :  { %v4862_v50 = vpack.c.bf16 %v425_v46, %v421_v43  ;;  %v4864_v51 = vpack.c.bf16 %v475_v47, %v472_v40  ;;  %v467_v52 = vadd.f32 %v466_v48, %v244_v37 }
 0x2ec   :  { %v4866_v53 = vpack.c.bf16 %v467_v52, %v464_v49 }
 0x2ee   :  { %4004 = vmatpush3.bf16.msra.mxu0 %v4866_v53 }
 0x2ef   :  { %4015 = vmatprep.subr.bf16.mxu0 %v4721_v62 }
 0x322   :  { %v542_v56 = vpop.f32.mrf.mxu1 }
 0x323   :  { %v549_v57 = vsel %vm498_vm2, -1e+18, %v542_v56  ;;  %v4340_v56 = vld [vmem:[#allocation8] sm:$0xff]  }
 0x324   :  { %v4001_v58 = vpop.f32.mrf.mxu1  ;;  %v551_v59 = vsel %vm501_vm1, %v549_v57, -inf }
 0x325   :  { %552 = vmax.xlane.f32.xlu1 %v551_v59  ;;  %v4906_v58 = vld [vmem:[#allocation8 + $0x8] sm:$0xff]   ;;  %v4910_v59 = vpop.f32.mrf.mxu0 }
 0x326   :  { %v545_v60 = vpop.f32.mrf.mxu1  ;;  %4022 = vmatpush3.bf16.msra.mxu1 %v4906_v58 }
 0x327   :  { %v550_v61 = vsel %vm499_vm3, -1e+18, %v545_v60  ;;  %4033 = vmatprep.subr.bf16.mxu1 %v4721_v62 }
 0x328   :  { %v4002_v63 = vpop.f32.mrf.mxu1  ;;  %v554_v0 = vsel %vm501_vm1, %v550_v61, -inf }
 0x329   :  { %555 = vmax.xlane.f32.xlu0 %v554_v0 }
 0x395   :  { %v665_v1 = vpop.f32.mrf.mxu1 }
 0x396   :  { %v672_v2 = vsel %vm498_vm2, -1e+18, %v665_v1 }
 0x397   :  { %v4013_v3 = vpop.f32.mrf.mxu1  ;;  %v674_v4 = vsel %vm501_vm1, %v672_v2, -inf }
 0x398   :  { %675 = vmax.xlane.f32.xlu0 %v674_v4 }
 0x399   :  { %v668_v5 = vpop.f32.mrf.mxu1 }
 0x39a   :  { %v673_v6 = vsel %vm499_vm3, -1e+18, %v668_v5 }
 0x39b   :  { %v4014_v7 = vpop.f32.mrf.mxu1  ;;  %v677_v8 = vsel %vm501_vm1, %v673_v6, -inf }
 0x39c   :  { %678 = vmax.xlane.f32.xlu1 %v677_v8 }
 0x3ae   :  { %v553_v9 = vpop.xlane.xlu1 %552 }
 0x3af   :  { %v557_v10 = vsub.f32 %v549_v57, %v553_v9 }
 0x3b1   :  { %v559_v11 = vmul.f32 1.442695, %v557_v10 }
 0x3b2   :  { %v556_v12 = vpop.xlane.xlu0 %555 }
 0x3b3   :  { %4396 = vpow2.f32 %v559_v11  ;;  %v558_v13 = vsub.f32 %v550_v61, %v556_v12 }
 0x3b5   :  { %v561_v14 = vmul.f32 1.442695, %v558_v13 }
 0x3b7   :  { %4398 = vpow2.f32 %v561_v14 }
 0x3c0   :  { %v4397_v17 = vpop.eup %4396 }
 0x3c1   :  { %v563_v19 = vsel %vm501_vm1, %v4397_v17, 0.0 }
 0x3c2   :  { %564 = vadd.xlane.f32.xlu0 %v563_v19 }
 0x3c4   :  { %v4399_v20 = vpop.eup %4398 }
 0x3c5   :  { %v566_v21 = vsel %vm501_vm1, %v4399_v20, 0.0 }
 0x3c6   :  { %567 = vadd.xlane.f32.xlu1 %v566_v21 }
 0x421   :  { %v676_v23 = vpop.xlane.xlu0 %675 }
 0x422   :  { %v680_v24 = vsub.f32 %v672_v2, %v676_v23 }
 0x424   :  { %v682_v25 = vmul.f32 1.442695, %v680_v24 }
 0x425   :  { %v679_v26 = vpop.xlane.xlu1 %678 }
 0x426   :  { %4400 = vpow2.f32 %v682_v25  ;;  %v681_v27 = vsub.f32 %v673_v6, %v679_v26 }
 0x428   :  { %v684_v30 = vmul.f32 1.442695, %v681_v27 }
 0x42a   :  { %4402 = vpow2.f32 %v684_v30 }
 0x433   :  { %v4401_v32 = vpop.eup %4400 }
 0x434   :  { %v686_v33 = vsel %vm501_vm1, %v4401_v32, 0.0 }
 0x435   :  { %687 = vadd.xlane.f32.xlu0 %v686_v33 }
 0x437   :  { %v4403_v34 = vpop.eup %4402 }
 0x438   :  { %v689_v35 = vsel %vm501_vm1, %v4403_v34, 0.0 }
 0x439   :  { %690 = vadd.xlane.f32.xlu1 %v689_v35 }
 0x44a   :  { %848 = vrot.lane.b32.xlu1 %v4841_v31, %s4724_s6 }
 0x44b   :  { %698 = vrot.lane.b32.xlu0 %v4866_v53, %s4723_s4  ;;  %v565_v36 = vpop.xlane.xlu0 %564 }
 0x44c   :  { %4404 = vrcp.f32 %v565_v36 }
 0x44e   :  { %846 = vrot.lane.b32.xlu1 %v4838_v28, %s4724_s6 }
 0x44f   :  { %v568_v37 = vpop.xlane.xlu1 %567 }
 0x450   :  { %4406 = vrcp.f32 %v568_v37 }
 0x459   :  { %v4405_v38 = vpop.eup %4404 }
 0x45a   :  { %v571_v40 = vmul.f32 %v4405_v38, %v4397_v17 }
 0x45d   :  { %v4407_v39 = vpop.eup %4406 }
 0x45e   :  { %v572_v42 = vmul.f32 %v4407_v39, %v4399_v20 }
 0x460   :  { %v573_v43 = vpack.c.bf16 %v572_v42, %v571_v40 }
 0x462   :  { %4006 = vmatmul.mubr.msk.bf16.vlgmr.msra.gmra.mxu0 %vm501_vm1, %v573_v43 }
 0x463   :  { %4017 = vmatprep.mubr.msk.bf16.mxu0 %vm4722_vm0, %v4721_v62 }
 0x4be   :  { %v688_v44 = vpop.xlane.xlu0 %687 }
 0x4bf   :  { %4408 = vrcp.f32 %v688_v44 }
 0x4c2   :  { %v691_v45 = vpop.xlane.xlu1 %690  ;;  %v699_v46 = vpop.permute.xlu0 %698 }
 0x4c3   :  { %4410 = vrcp.f32 %v691_v45  ;;  %4016 = vmatpush3.bf16.msra.mxu0 %v699_v46 }
 0x4c4   :  { %4027 = vmatprep.subr.bf16.mxu0 %v4721_v62 }
 0x4c6   :  { %v849_v4 = vpop.permute.xlu1 %848 }
 0x4c7   :  { %v854_v8 = vsel %vm501_vm1, %v849_v4, 0 }
 0x4ca   :  { %v847_v9 = vpop.permute.xlu1 %846 }
 0x4cc   :  { %v4409_v47 = vpop.eup %4408 }
 0x4cd   :  { %v694_v49 = vmul.f32 %v4409_v47, %v4401_v32 }
 0x4d0   :  { %v4411_v48 = vpop.eup %4410 }
 0x4d1   :  { %v695_v52 = vmul.f32 %v4411_v48, %v4403_v34 }
 0x4d3   :  { %v696_v57 = vpack.c.bf16 %v695_v52, %v694_v49 }
 0x4d5   :  { %4018 = vmatmul.mubr.msk.bf16.vlgmr.msra.gmra.mxu0 %vm501_vm1, %v696_v57 }
 0x4d6   :  { %4028 = vmatpush3.bf16.msra.mxu0 %v4340_v56  ;;  %4029 = vmatprep.mubr.msk.bf16.mxu0 %vm4722_vm0, %v4721_v62 }
 0x4d7   :  { %4039 = vmatprep.subr.bf16.mxu0 %v4721_v62 }
 0x522   :  { %v611_v60 = vpop.f32.mrf.mxu0 }
 0x524   :  { %v4007_v61 = vpop.f32.mrf.mxu0 }
 0x526   :  { %v614_v63 = vpop.f32.mrf.mxu0 }
 0x527   :  { %v618_v0 = vpack.c.bf16 %v614_v63, %v611_v60  ;;  %v4954_v63 = vld [vmem:[#allocation8 + $0x10] sm:$0xff]  }
 0x528   :  { %v4008_v1 = vpop.f32.mrf.mxu0 }
 0x529   :  { %4030 = vmatmul.mubr.msk.bf16.vlgmr.msra.gmra.mxu0 %vm501_vm1, %v618_v0 }
 0x52a   :  { %4041 = vmatprep.mubr.msk.bf16.mxu0 %vm4722_vm0, %v4721_v62 }
 0x595   :  { %v738_v2 = vpop.f32.mrf.mxu0 }
 0x597   :  { %v4019_v3 = vpop.f32.mrf.mxu0 }
 0x599   :  { %v741_v5 = vpop.f32.mrf.mxu0 }
 0x59a   :  { %v745_v6 = vpack.c.bf16 %v741_v5, %v738_v2 }
 0x59b   :  { %v4020_v7 = vpop.f32.mrf.mxu0 }
 0x59c   :  { %4024 = vmatmul.mubr.msk.bf16.vlgmr.msra.gmra.mxu1 %vm501_vm1, %v745_v6 }
 0x59d   :  { %4034 = vmatpush3.bf16.xpose.msra.mxu1 %v854_v8  ;;  %4035 = vmatprep.mubr.msk.bf16.mxu1 %vm4722_vm0, %v4721_v62 }
 0x59e   :  { %4045 = vmatprep.subr.bf16.mxu1 %v4721_v62 }
 0x5a4   :  { %4036 = vmatmul.mubr.msk.bf16.vlgmr.msra.gmra.mxu1 %vm501_vm1, %v847_v9 }
 0x5a5   :  { %4047 = vmatprep.mubr.msk.bf16.mxu1 %vm4722_vm0, %v4721_v62  ;;  %4046 = vmatpush3.bf16.msra.mxu1 %v4954_v63 }
 0x5a6   :  { %4057 = vmatprep.subr.bf16.mxu1 %v4721_v62 }
 0x5e9   :  { %v4923_v10 = vpop.f32.mrf.mxu0 }
 0x5eb   :  { %v4031_v11 = vpop.f32.mrf.mxu0 }
 0x5ed   :  { %v4925_v12 = vpop.f32.mrf.mxu0 }
 0x5ef   :  { %v4032_v13 = vpop.f32.mrf.mxu0 }
 0x65c   :  { %v4927_v14 = vpop.f32.mrf.mxu1 }
 0x65e   :  { %v4025_v17 = vpop.f32.mrf.mxu1 }
 0x660   :  { %v4929_v19 = vpop.f32.mrf.mxu1 }
 0x662   :  { %v4026_v20 = vpop.f32.mrf.mxu1 }
 0x664   :  { %v890_v21 = vpop.f32.mrf.mxu1 }
 0x665   :  { %v897_v23 = vsel %vm498_vm2, -1e+18, %v890_v21 }
 0x666   :  { %v4037_v24 = vpop.f32.mrf.mxu1  ;;  %v899_v25 = vsel %vm501_vm1, %v897_v23, -inf }
 0x667   :  { %900 = vmax.xlane.f32.xlu1 %v899_v25 }
 0x668   :  { %v893_v26 = vpop.f32.mrf.mxu1 }
 0x669   :  { %v898_v27 = vsel %vm499_vm3, -1e+18, %v893_v26 }
 0x66a   :  { %v4038_v30 = vpop.f32.mrf.mxu1  ;;  %v902_v32 = vsel %vm501_vm1, %v898_v27, -inf }
 0x66b   :  { %903 = vmax.xlane.f32.xlu0 %v902_v32 }
 0x678   :  { %922 = vrot.lane.b32.xlu1 %v4866_v53, %s4724_s6 }
 0x67c   :  { %1022 = vrot.lane.b32.xlu1 %v4838_v28, %s4725_s18 }
 0x6f0   :  { %v901_v33 = vpop.xlane.xlu1 %900 }
 0x6f1   :  { %v905_v34 = vsub.f32 %v897_v23, %v901_v33 }
 0x6f3   :  { %v907_v35 = vmul.f32 1.442695, %v905_v34  ;;  %v840_v34 = vadd.f32 %v4923_v10, %v4927_v14 }
 0x6f4   :  { %v923_v36 = vpop.permute.xlu1 %922  ;;  %v904_v37 = vpop.xlane.xlu0 %903 }
 0x6f5   :  { %4412 = vpow2.f32 %v907_v35  ;;  %v906_v38 = vsub.f32 %v898_v27, %v904_v37  ;;  %4040 = vmatpush3.bf16.msra.mxu0 %v923_v36 }
 0x6f6   :  { %4051 = vmatprep.subr.bf16.mxu0 %v4721_v62 }
 0x6f7   :  { %v909_v39 = vmul.f32 1.442695, %v906_v38  ;;  %v843_v38 = vadd.f32 %v4925_v12, %v4929_v19 }
 0x6f8   :  { %v1023_v61 = vpop.permute.xlu1 %1022 }
 0x6f9   :  { %4414 = vpow2.f32 %v909_v39 }
 0x702   :  { %v4413_v40 = vpop.eup %4412 }
 0x703   :  { %v911_v42 = vsel %vm501_vm1, %v4413_v40, 0.0 }
 0x704   :  { %912 = vadd.xlane.f32.xlu0 %v911_v42 }
 0x706   :  { %v4415_v43 = vpop.eup %4414 }
 0x707   :  { %v914_v44 = vsel %vm501_vm1, %v4415_v43, 0.0 }
 0x708   :  { %915 = vadd.xlane.f32.xlu0 %v914_v44 }
 0x71e   :  { %1024 = vrot.lane.b32.xlu0 %v4841_v31, %s4725_s18 }
 0x78d   :  { %v913_v45 = vpop.xlane.xlu0 %912 }
 0x78e   :  { %4416 = vrcp.f32 %v913_v45 }
 0x791   :  { %v916_v46 = vpop.xlane.xlu0 %915 }
 0x792   :  { %4418 = vrcp.f32 %v916_v46 }
 0x795   :  { %v1025_v56 = vpop.permute.xlu0 %1024 }
 0x796   :  { %v1030_v60 = vsel %vm501_vm1, %v1025_v56, 0 }
 0x79b   :  { %v4417_v47 = vpop.eup %4416 }
 0x79c   :  { %v919_v49 = vmul.f32 %v4417_v47, %v4413_v40 }
 0x79f   :  { %v4419_v48 = vpop.eup %4418 }
 0x7a0   :  { %v920_v52 = vmul.f32 %v4419_v48, %v4415_v43 }
 0x7a2   :  { %v921_v57 = vpack.c.bf16 %v920_v52, %v919_v49  ;;  %v4992_v52 = vld [vmem:[#allocation8 + $0x18] sm:$0xff]  }
 0x7a4   :  { %4042 = vmatmul.mubr.msk.bf16.vlgmr.msra.gmra.mxu0 %vm501_vm1, %v921_v57 }
 0x7a5   :  { %4052 = vmatpush3.bf16.xpose.msra.mxu0 %v1030_v60  ;;  %4053 = vmatprep.mubr.msk.bf16.mxu0 %vm4722_vm0, %v4721_v62 }
 0x7a6   :  { %4063 = vmatprep.subr.bf16.mxu0 %v4721_v62 }
 0x7ac   :  { %4054 = vmatmul.mubr.msk.bf16.vlgmr.msra.gmra.mxu0 %vm501_vm1, %v1023_v61 }
 0x7ad   :  { %4065 = vmatprep.mubr.msk.bf16.mxu0 %vm4722_vm0, %v4721_v62  ;;  %4064 = vmatpush3.bf16.msra.mxu0 %v4992_v52 }
 0x7ae   :  { %4075 = vmatprep.subr.bf16.mxu0 %v4721_v62 }
 0x864   :  { %v962_v0 = vpop.f32.mrf.mxu0 }
 0x866   :  { %v4043_v1 = vpop.f32.mrf.mxu0 }
 0x868   :  { %v965_v2 = vpop.f32.mrf.mxu0 }
 0x869   :  { %v969_v3 = vpack.c.bf16 %v965_v2, %v962_v0 }
 0x86a   :  { %v4044_v4 = vpop.f32.mrf.mxu0 }
 0x86b   :  { %4048 = vmatmul.mubr.msk.bf16.vlgmr.msra.gmra.mxu1 %vm501_vm1, %v969_v3 }
 0x86c   :  { %v1066_v5 = vpop.f32.mrf.mxu0  ;;  %4059 = vmatprep.mubr.msk.bf16.mxu1 %vm4722_vm0, %v4721_v62 }
 0x86d   :  { %v1073_v6 = vsel %vm498_vm2, -1e+18, %v1066_v5 }
 0x86e   :  { %v4055_v7 = vpop.f32.mrf.mxu0  ;;  %v1075_v8 = vsel %vm501_vm1, %v1073_v6, -inf }
 0x86f   :  { %1076 = vmax.xlane.f32.xlu1 %v1075_v8 }
 0x870   :  { %v1069_v9 = vpop.f32.mrf.mxu0 }
 0x871   :  { %v1074_v11 = vsel %vm499_vm3, -1e+18, %v1069_v9 }
 0x872   :  { %v4056_v13 = vpop.f32.mrf.mxu0  ;;  %v1078_v17 = vsel %vm501_vm1, %v1074_v11, -inf }
 0x873   :  { %1079 = vmax.xlane.f32.xlu0 %v1078_v17 }
 0x8f8   :  { %v1077_v20 = vpop.xlane.xlu1 %1076 }
 0x8f9   :  { %v1081_v21 = vsub.f32 %v1073_v6, %v1077_v20 }
 0x8fb   :  { %v1083_v23 = vmul.f32 1.442695, %v1081_v21 }
 0x8fc   :  { %v1080_v24 = vpop.xlane.xlu0 %1079 }
 0x8fd   :  { %4420 = vpow2.f32 %v1083_v23  ;;  %v1082_v25 = vsub.f32 %v1074_v11, %v1080_v24 }
 0x8ff   :  { %v1085_v26 = vmul.f32 1.442695, %v1082_v25 }
 0x901   :  { %4422 = vpow2.f32 %v1085_v26 }
 0x90a   :  { %v4421_v27 = vpop.eup %4420 }
 0x90b   :  { %v1087_v30 = vsel %vm501_vm1, %v4421_v27, 0.0 }
 0x90c   :  { %1088 = vadd.xlane.f32.xlu0 %v1087_v30 }
 0x90e   :  { %v4423_v32 = vpop.eup %4422 }
 0x90f   :  { %v1090_v33 = vsel %vm501_vm1, %v4423_v32, 0.0 }
 0x910   :  { %1091 = vadd.xlane.f32.xlu1 %v1090_v33 }
 0x921   :  { %1200 = vrot.lane.b32.xlu1 %v4841_v31, %s4711_s11 }
 0x922   :  { %1098 = vrot.lane.b32.xlu0 %v4866_v53, %s4725_s18 }
 0x925   :  { %1198 = vrot.lane.b32.xlu1 %v4838_v28, %s4711_s11 }
 0x92b   :  { %v1013_v35 = vpop.f32.mrf.mxu1 }
 0x92c   :  { %v4977_v36 = vadd.f32 %v1013_v35, %v840_v34 }
 0x92d   :  { %v4049_v37 = vpop.f32.mrf.mxu1 }
 0x92f   :  { %v1016_v39 = vpop.f32.mrf.mxu1 }
 0x930   :  { %v4981_v40 = vadd.f32 %v1016_v39, %v843_v38 }
 0x931   :  { %v4050_v42 = vpop.f32.mrf.mxu1 }
 0x995   :  { %v1089_v43 = vpop.xlane.xlu0 %1088 }
 0x996   :  { %4424 = vrcp.f32 %v1089_v43 }
 0x999   :  { %v1092_v44 = vpop.xlane.xlu1 %1091  ;;  %v1099_v45 = vpop.permute.xlu0 %1098 }
 0x99a   :  { %4426 = vrcp.f32 %v1092_v44  ;;  %4058 = vmatpush3.bf16.msra.mxu1 %v1099_v45 }
 0x99b   :  { %4069 = vmatprep.subr.bf16.mxu1 %v4721_v62 }
 0x99d   :  { %v1201_v48 = vpop.permute.xlu1 %1200 }
 0x99e   :  { %v1206_v12 = vsel %vm501_vm1, %v1201_v48, 0 }
 0x9a1   :  { %v1199_v19 = vpop.permute.xlu1 %1198 }
 0x9a3   :  { %v4425_v10 = vpop.eup %4424 }
 0x9a4   :  { %v1095_v46 = vmul.f32 %v4425_v10, %v4421_v27 }
 0x9a7   :  { %v4427_v14 = vpop.eup %4426 }
 0x9a8   :  { %v1096_v47 = vmul.f32 %v4427_v14, %v4423_v32 }
 0x9aa   :  { %v1097_v49 = vpack.c.bf16 %v1096_v47, %v1095_v46 }
 0x9ac   :  { %4060 = vmatmul.mubr.msk.bf16.vlgmr.msra.gmra.mxu1 %vm501_vm1, %v1097_v49 }
 0x9ad   :  { %4070 = vmatpush3.bf16.xpose.msra.mxu1 %v1206_v12  ;;  %4071 = vmatprep.mubr.msk.bf16.mxu1 %vm4722_vm0, %v4721_v62 }
 0x9ae   :  { %4081 = vmatprep.subr.bf16.mxu1 %v4721_v62 }
 0x9b4   :  { %4072 = vmatmul.mubr.msk.bf16.vlgmr.msra.gmra.mxu1 %vm501_vm1, %v1199_v19 }
 0x9b5   :  { %4083 = vmatprep.mubr.msk.bf16.mxu1 %vm4722_vm0, %v4721_v62 }
 0xa6c   :  { %v1138_v56 = vpop.f32.mrf.mxu1 }
 0xa6e   :  { %v4061_v57 = vpop.f32.mrf.mxu1 }
 0xa70   :  { %v1141_v60 = vpop.f32.mrf.mxu1 }
 0xa71   :  { %v1145_v61 = vpack.c.bf16 %v1141_v60, %v1138_v56 }
 0xa72   :  { %v4062_v0 = vpop.f32.mrf.mxu1 }
 0xa73   :  { %4066 = vmatmul.mubr.msk.bf16.vlgmr.msra.gmra.mxu0 %vm501_vm1, %v1145_v61 }
 0xa74   :  { %v1242_v1 = vpop.f32.mrf.mxu1  ;;  %4077 = vmatprep.mubr.msk.bf16.mxu0 %vm4722_vm0, %v4721_v62 }
 0xa75   :  { %v1249_v2 = vsel %vm498_vm2, -1e+18, %v1242_v1 }
 0xa76   :  { %v4073_v3 = vpop.f32.mrf.mxu1  ;;  %v1251_v4 = vsel %vm501_vm1, %v1249_v2, -inf }
 0xa77   :  { %1252 = vmax.xlane.f32.xlu1 %v1251_v4 }
 0xa78   :  { %v1245_v5 = vpop.f32.mrf.mxu1 }
 0xa79   :  { %v1250_v6 = vsel %vm499_vm3, -1e+18, %v1245_v5 }
 0xa7a   :  { %v4074_v7 = vpop.f32.mrf.mxu1  ;;  %v1254_v8 = vsel %vm501_vm1, %v1250_v6, -inf }
 0xa7b   :  { %1255 = vmax.xlane.f32.xlu0 %v1254_v8 }
 0xa88   :  { %1274 = vrot.lane.b32.xlu1 %v4866_v53, %s4711_s11 }
 0xa8c   :  { %1374 = vrot.lane.b32.xlu1 %v4838_v28, %s4726_s1 }
 0xb00   :  { %v1253_v9 = vpop.xlane.xlu1 %1252 }
 0xb01   :  { %v1257_v11 = vsub.f32 %v1249_v2, %v1253_v9 }
 0xb03   :  { %v1259_v13 = vmul.f32 1.442695, %v1257_v11 }
 0xb04   :  { %v1275_v17 = vpop.permute.xlu1 %1274  ;;  %v1256_v20 = vpop.xlane.xlu0 %1255 }
 0xb05   :  { %4428 = vpow2.f32 %v1259_v13  ;;  %v1258_v21 = vsub.f32 %v1250_v6, %v1256_v20  ;;  %4076 = vmatpush3.bf16.msra.mxu0 %v1275_v17 }
 0xb06   :  { %4087 = vmatprep.subr.bf16.mxu0 %v4721_v62 }
 0xb07   :  { %v1261_v23 = vmul.f32 1.442695, %v1258_v21 }
 0xb09   :  { %4430 = vpow2.f32 %v1261_v23 }
 0xb12   :  { %v4429_v24 = vpop.eup %4428 }
 0xb13   :  { %v1263_v25 = vsel %vm501_vm1, %v4429_v24, 0.0 }
 0xb14   :  { %1264 = vadd.xlane.f32.xlu0 %v1263_v25 }
 0xb16   :  { %v4431_v26 = vpop.eup %4430 }
 0xb17   :  { %v1266_v27 = vsel %vm501_vm1, %v4431_v26, 0.0 }
 0xb18   :  { %1267 = vadd.xlane.f32.xlu0 %v1266_v27 }
 0xb2e   :  { %1376 = vrot.lane.b32.xlu0 %v4841_v31, %s4726_s1 }
 0xb33   :  { %v1189_v30 = vpop.f32.mrf.mxu0 }
 0xb34   :  { %v1196_v32 = vadd.f32 %v1189_v30, %v4977_v36  ;;  %v1375_v36 = vpop.permute.xlu1 %1374 }
 0xb35   :  { %v4067_v33 = vpop.f32.mrf.mxu0 }
 0xb37   :  { %v1192_v34 = vpop.f32.mrf.mxu0 }
 0xb38   :  { %v1197_v35 = vadd.f32 %v1192_v34, %v4981_v40  ;;  %v5024_v40 = vld [vmem:[#allocation8 + $0x20] sm:$0xff]  }
 0xb39   :  { %v4068_v37 = vpop.f32.mrf.mxu0  ;;  %4082 = vmatpush3.bf16.msra.mxu1 %v5024_v40 }
 0xb3a   :  { %4093 = vmatprep.subr.bf16.mxu1 %v4721_v62 }
 0xb9d   :  { %v1265_v38 = vpop.xlane.xlu0 %1264 }
 0xb9e   :  { %4432 = vrcp.f32 %v1265_v38 }
 0xba1   :  { %v1268_v39 = vpop.xlane.xlu0 %1267 }
 0xba2   :  { %4434 = vrcp.f32 %v1268_v39 }
 0xba5   :  { %v1377_v10 = vpop.permute.xlu0 %1376 }
 0xba6   :  { %v1382_v46 = vsel %vm501_vm1, %v1377_v10, 0 }
 0xbab   :  { %v4433_v42 = vpop.eup %4432 }
 0xbac   :  { %v1271_v44 = vmul.f32 %v4433_v42, %v4429_v24 }
 0xbaf   :  { %v4435_v43 = vpop.eup %4434 }
 0xbb0   :  { %v1272_v45 = vmul.f32 %v4435_v43, %v4431_v26 }
 0xbb2   :  { %v1273_v14 = vpack.c.bf16 %v1272_v45, %v1271_v44  ;;  %v5058_v45 = vld [vmem:[#allocation8 + $0x28] sm:$0xff]  }
 0xbb4   :  { %4078 = vmatmul.mubr.msk.bf16.vlgmr.msra.gmra.mxu0 %vm501_vm1, %v1273_v14 }
 0xbb5   :  { %4088 = vmatpush3.bf16.xpose.msra.mxu0 %v1382_v46  ;;  %4089 = vmatprep.mubr.msk.bf16.mxu0 %vm4722_vm0, %v4721_v62 }
 0xbb6   :  { %4099 = vmatprep.subr.bf16.mxu0 %v4721_v62 }
 0xbbc   :  { %4090 = vmatmul.mubr.msk.bf16.vlgmr.msra.gmra.mxu0 %vm501_vm1, %v1375_v36 }
 0xbbd   :  { %4101 = vmatprep.mubr.msk.bf16.mxu0 %vm4722_vm0, %v4721_v62  ;;  %4100 = vmatpush3.bf16.msra.mxu0 %v5058_v45 }
 0xbbe   :  { %4111 = vmatprep.subr.bf16.mxu0 %v4721_v62 }
 0xc74   :  { %v1314_v47 = vpop.f32.mrf.mxu0 }
 0xc76   :  { %v4079_v48 = vpop.f32.mrf.mxu0 }
 0xc78   :  { %v1317_v49 = vpop.f32.mrf.mxu0 }
 0xc79   :  { %v1321_v12 = vpack.c.bf16 %v1317_v49, %v1314_v47 }
 0xc7a   :  { %v4080_v19 = vpop.f32.mrf.mxu0 }
 0xc7b   :  { %4084 = vmatmul.mubr.msk.bf16.vlgmr.msra.gmra.mxu1 %vm501_vm1, %v1321_v12 }
 0xc7c   :  { %v1418_v56 = vpop.f32.mrf.mxu0  ;;  %4095 = vmatprep.mubr.msk.bf16.mxu1 %vm4722_vm0, %v4721_v62 }
 0xc7d   :  { %v1425_v57 = vsel %vm498_vm2, -1e+18, %v1418_v56 }
 0xc7e   :  { %v4091_v60 = vpop.f32.mrf.mxu0  ;;  %v1427_v61 = vsel %vm501_vm1, %v1425_v57, -inf }
 0xc7f   :  { %1428 = vmax.xlane.f32.xlu1 %v1427_v61 }
 0xc80   :  { %v1421_v0 = vpop.f32.mrf.mxu0 }
 0xc81   :  { %v1426_v1 = vsel %vm499_vm3, -1e+18, %v1421_v0 }
 0xc82   :  { %v4092_v2 = vpop.f32.mrf.mxu0  ;;  %v1430_v3 = vsel %vm501_vm1, %v1426_v1, -inf }
 0xc83   :  { %1431 = vmax.xlane.f32.xlu0 %v1430_v3 }
 0xd08   :  { %v1429_v4 = vpop.xlane.xlu1 %1428 }
 0xd09   :  { %v1433_v5 = vsub.f32 %v1425_v57, %v1429_v4 }
 0xd0b   :  { %v1435_v6 = vmul.f32 1.442695, %v1433_v5 }
 0xd0c   :  { %v1432_v7 = vpop.xlane.xlu0 %1431 }
 0xd0d   :  { %4436 = vpow2.f32 %v1435_v6  ;;  %v1434_v8 = vsub.f32 %v1426_v1, %v1432_v7 }
 0xd0f   :  { %v1437_v9 = vmul.f32 1.442695, %v1434_v8 }
 0xd11   :  { %4438 = vpow2.f32 %v1437_v9 }
 0xd1a   :  { %v4437_v11 = vpop.eup %4436 }
 0xd1b   :  { %v1439_v13 = vsel %vm501_vm1, %v4437_v11, 0.0 }
 0xd1c   :  { %1440 = vadd.xlane.f32.xlu0 %v1439_v13 }
 0xd1e   :  { %v4439_v17 = vpop.eup %4438 }
 0xd1f   :  { %v1442_v20 = vsel %vm501_vm1, %v4439_v17, 0.0 }
 0xd20   :  { %1443 = vadd.xlane.f32.xlu1 %v1442_v20 }
 0xd31   :  { %1552 = vrot.lane.b32.xlu1 %v4841_v31, %s4727_s19 }
 0xd32   :  { %1450 = vrot.lane.b32.xlu0 %v4866_v53, %s4726_s1 }
 0xd35   :  { %1550 = vrot.lane.b32.xlu1 %v4838_v28, %s4727_s19 }
 0xd3b   :  { %v1365_v21 = vpop.f32.mrf.mxu1 }
 0xd3c   :  { %v5045_v23 = vadd.f32 %v1365_v21, %v1196_v32 }
 0xd3d   :  { %v4085_v24 = vpop.f32.mrf.mxu1 }
 0xd3f   :  { %v1368_v25 = vpop.f32.mrf.mxu1 }
 0xd40   :  { %v5047_v26 = vadd.f32 %v1368_v25, %v1197_v35 }
 0xd41   :  { %v4086_v27 = vpop.f32.mrf.mxu1 }
 0xda5   :  { %v1441_v30 = vpop.xlane.xlu0 %1440 }
 0xda6   :  { %4440 = vrcp.f32 %v1441_v30 }
 0xda9   :  { %v1444_v33 = vpop.xlane.xlu1 %1443  ;;  %v1451_v34 = vpop.permute.xlu0 %1450 }
 0xdaa   :  { %4442 = vrcp.f32 %v1444_v33  ;;  %4094 = vmatpush3.bf16.msra.mxu1 %v1451_v34 }
 0xdab   :  { %4105 = vmatprep.subr.bf16.mxu1 %v4721_v62 }
 0xdad   :  { %v1553_v43 = vpop.permute.xlu1 %1552 }
 0xdae   :  { %v1558_v44 = vsel %vm501_vm1, %v1553_v43, 0 }
 0xdb1   :  { %v1551_v35 = vpop.permute.xlu1 %1550 }
 0xdb3   :  { %v4441_v37 = vpop.eup %4440 }
 0xdb4   :  { %v1447_v39 = vmul.f32 %v4441_v37, %v4437_v11 }
 0xdb7   :  { %v4443_v38 = vpop.eup %4442 }
 0xdb8   :  { %v1448_v42 = vmul.f32 %v4443_v38, %v4439_v17 }
 0xdba   :  { %v1449_v32 = vpack.c.bf16 %v1448_v42, %v1447_v39 }
 0xdbc   :  { %4096 = vmatmul.mubr.msk.bf16.vlgmr.msra.gmra.mxu1 %vm501_vm1, %v1449_v32 }
 0xdbd   :  { %4106 = vmatpush3.bf16.xpose.msra.mxu1 %v1558_v44  ;;  %4107 = vmatprep.mubr.msk.bf16.mxu1 %vm4722_vm0, %v4721_v62 }
 0xdbe   :  { %4117 = vmatprep.subr.bf16.mxu1 %v4721_v62 }
 0xdc4   :  { %4108 = vmatmul.mubr.msk.bf16.vlgmr.msra.gmra.mxu1 %vm501_vm1, %v1551_v35 }
 0xdc5   :  { %4119 = vmatprep.mubr.msk.bf16.mxu1 %vm4722_vm0, %v4721_v62 }
 0xe7c   :  { %v1490_v10 = vpop.f32.mrf.mxu1 }
 0xe7e   :  { %v4097_v14 = vpop.f32.mrf.mxu1 }
 0xe80   :  { %v1493_v46 = vpop.f32.mrf.mxu1 }
 0xe81   :  { %v1497_v36 = vpack.c.bf16 %v1493_v46, %v1490_v10 }
 0xe82   :  { %v4098_v47 = vpop.f32.mrf.mxu1 }
 0xe83   :  { %4102 = vmatmul.mubr.msk.bf16.vlgmr.msra.gmra.mxu0 %vm501_vm1, %v1497_v36 }
 0xe84   :  { %v1594_v48 = vpop.f32.mrf.mxu1  ;;  %4113 = vmatprep.mubr.msk.bf16.mxu0 %vm4722_vm0, %v4721_v62 }
 0xe85   :  { %v1601_v49 = vsel %vm498_vm2, -1e+18, %v1594_v48 }
 0xe86   :  { %v4109_v12 = vpop.f32.mrf.mxu1  ;;  %v1603_v19 = vsel %vm501_vm1, %v1601_v49, -inf }
 0xe87   :  { %1604 = vmax.xlane.f32.xlu1 %v1603_v19 }
 0xe88   :  { %v1597_v56 = vpop.f32.mrf.mxu1 }
 0xe89   :  { %v1602_v57 = vsel %vm499_vm3, -1e+18, %v1597_v56 }
 0xe8a   :  { %v4110_v60 = vpop.f32.mrf.mxu1  ;;  %v1606_v61 = vsel %vm501_vm1, %v1602_v57, -inf }
 0xe8b   :  { %1607 = vmax.xlane.f32.xlu0 %v1606_v61 }
 0xe98   :  { %1626 = vrot.lane.b32.xlu1 %v4866_v53, %s4727_s19 }
 0xe9c   :  { %1726 = vrot.lane.b32.xlu1 %v4838_v28, %s4728_s20 }
 0xf10   :  { %v1605_v0 = vpop.xlane.xlu1 %1604 }
 0xf11   :  { %v1609_v1 = vsub.f32 %v1601_v49, %v1605_v0 }
 0xf13   :  { %v1611_v2 = vmul.f32 1.442695, %v1609_v1 }
 0xf14   :  { %v1627_v3 = vpop.permute.xlu1 %1626  ;;  %v1608_v4 = vpop.xlane.xlu0 %1607 }
 0xf15   :  { %4444 = vpow2.f32 %v1611_v2  ;;  %v1610_v5 = vsub.f32 %v1602_v57, %v1608_v4  ;;  %4112 = vmatpush3.bf16.msra.mxu0 %v1627_v3  ;;  %v427_v3 = vadd.f32 %v4910_v59, %v4835_v22  ;;  %v423_v4 = vadd.f32 %v4860_v41, %v4835_v22 }
 0xf16   :  { %4123 = vmatprep.subr.bf16.mxu0 %v4721_v62 }
 0xf17   :  { %v1613_v6 = vmul.f32 1.442695, %v1610_v5  ;;  %v5113_v5 = vpack.c.bf16 %v427_v3, %v423_v4 }
 0xf19   :  { %4446 = vpow2.f32 %v1613_v6 }
 0xf22   :  { %v4445_v7 = vpop.eup %4444 }
 0xf23   :  { %v1615_v8 = vsel %vm501_vm1, %v4445_v7, 0.0 }
 0xf24   :  { %1616 = vadd.xlane.f32.xlu0 %v1615_v8 }
 0xf26   :  { %v4447_v9 = vpop.eup %4446 }
 0xf27   :  { %v1618_v11 = vsel %vm501_vm1, %v4447_v9, 0.0 }
 0xf28   :  { %1619 = vadd.xlane.f32.xlu0 %v1618_v11 }
 0xf3e   :  { %1728 = vrot.lane.b32.xlu0 %v4841_v31, %s4728_s20 }
 0xf43   :  { %v1541_v28 = vpop.f32.mrf.mxu0 }
 0xf44   :  { %v5081_v13 = vadd.f32 %v1541_v28, %v5045_v23  ;;  %v1727_v23 = vpop.permute.xlu1 %1726 }
 0xf45   :  { %v4103_v17 = vpop.f32.mrf.mxu0 }
 0xf47   :  { %v1544_v20 = vpop.f32.mrf.mxu0 }
 0xf48   :  { %v5084_v21 = vadd.f32 %v1544_v20, %v5047_v26  ;;  %v5094_v26 = vld [vmem:[#allocation8 + $0x30] sm:$0xff]  }
 0xf49   :  { %v4104_v24 = vpop.f32.mrf.mxu0  ;;  %4118 = vmatpush3.bf16.msra.mxu1 %v5094_v26 }
 0xf4a   :  { %4129 = vmatprep.subr.bf16.mxu1 %v4721_v62 }
 0xfad   :  { %v1617_v25 = vpop.xlane.xlu0 %1616 }
 0xfae   :  { %4448 = vrcp.f32 %v1617_v25 }
 0xfb1   :  { %v1620_v27 = vpop.xlane.xlu0 %1619 }
 0xfb2   :  { %4450 = vrcp.f32 %v1620_v27 }
 0xfb5   :  { %v1729_v38 = vpop.permute.xlu0 %1728 }
 0xfb6   :  { %v1734_v39 = vsel %vm501_vm1, %v1729_v38, 0  ;;  %v5149_v38 = vld [vmem:[#allocation5 + $0x10] sm:$0xff] }
 0xfb7   :  { %vm1907_vm4 = vcmp.gt.s32.totalorder %v5149_v38, 0 }
 0xfbb   :  { %v4449_v30 = vpop.eup %4448 }
 0xfbc   :  { %v1623_v34 = vmul.f32 %v4449_v30, %v4445_v7 }
 0xfbf   :  { %v4451_v33 = vpop.eup %4450 }
 0xfc0   :  { %v1624_v37 = vmul.f32 %v4451_v33, %v4447_v9  ;;  %v5145_v33 = vld [vmem:[#allocation8 + $0x38] sm:$0xff]  }
 0xfc2   :  { %v1625_v31 = vpack.c.bf16 %v1624_v37, %v1623_v34 }
 0xfc4   :  { %4114 = vmatmul.mubr.msk.bf16.vlgmr.msra.gmra.mxu0 %vm501_vm1, %v1625_v31 }
 0xfc5   :  { %4124 = vmatpush3.bf16.xpose.msra.mxu0 %v1734_v39  ;;  %4125 = vmatprep.mubr.msk.bf16.mxu0 %vm4722_vm0, %v4721_v62 }
 0xfc6   :  { %4135 = vmatprep.subr.bf16.mxu0 %v4721_v62 }
 0xfcc   :  { %4126 = vmatmul.mubr.msk.bf16.vlgmr.msra.gmra.mxu0 %vm501_vm1, %v1727_v23 }
 0xfcd   :  { %4137 = vmatprep.mubr.msk.bf16.mxu0 %vm4722_vm0, %v4721_v62  ;;  %4136 = vmatpush3.bf16.msra.mxu0 %v5145_v33 }
 0xfce   :  { %4147 = vmatprep.subr.bf16.mxu0 %v4721_v62 }
0x1084   :  { %v1666_v42 = vpop.f32.mrf.mxu0 }
0x1086   :  { %v4115_v43 = vpop.f32.mrf.mxu0 }
0x1088   :  { %v1669_v32 = vpop.f32.mrf.mxu0 }
0x1089   :  { %v1673_v44 = vpack.c.bf16 %v1669_v32, %v1666_v42 }
0x108a   :  { %v4116_v35 = vpop.f32.mrf.mxu0 }
0x108b   :  { %4120 = vmatmul.mubr.msk.bf16.vlgmr.msra.gmra.mxu1 %vm501_vm1, %v1673_v44 }
0x108c   :  { %v1770_v10 = vpop.f32.mrf.mxu0  ;;  %4131 = vmatprep.mubr.msk.bf16.mxu1 %vm4722_vm0, %v4721_v62 }
0x108d   :  { %v1777_v14 = vsel %vm498_vm2, -1e+18, %v1770_v10 }
0x108e   :  { %v4127_v46 = vpop.f32.mrf.mxu0  ;;  %v1779_v36 = vsel %vm501_vm1, %v1777_v14, -inf }
0x108f   :  { %1780 = vmax.xlane.f32.xlu1 %v1779_v36 }
0x1090   :  { %v1773_v47 = vpop.f32.mrf.mxu0 }
0x1091   :  { %v1778_v48 = vsel %vm499_vm3, -1e+18, %v1773_v47 }
0x1092   :  { %v4128_v49 = vpop.f32.mrf.mxu0  ;;  %v1782_v12 = vsel %vm501_vm1, %v1778_v48, -inf }
0x1093   :  { %1783 = vmax.xlane.f32.xlu0 %v1782_v12 }
0x1118   :  { %v1781_v19 = vpop.xlane.xlu1 %1780 }
0x1119   :  { %v1785_v56 = vsub.f32 %v1777_v14, %v1781_v19 }
0x111b   :  { %v1787_v57 = vmul.f32 1.442695, %v1785_v56 }
0x111c   :  { %v1784_v60 = vpop.xlane.xlu0 %1783 }
0x111d   :  { %4452 = vpow2.f32 %v1787_v57  ;;  %v1786_v61 = vsub.f32 %v1778_v48, %v1784_v60 }
0x111f   :  { %v1789_v54 = vmul.f32 1.442695, %v1786_v61 }
0x1121   :  { %4454 = vpow2.f32 %v1789_v54 }
0x112a   :  { %v4453_v0 = vpop.eup %4452 }
0x112b   :  { %v1791_v1 = vsel %vm501_vm1, %v4453_v0, 0.0 }
0x112c   :  { %1792 = vadd.xlane.f32.xlu0 %v1791_v1 }
0x112e   :  { %v4455_v2 = vpop.eup %4454 }
0x112f   :  { %v1794_v55 = vsel %vm501_vm1, %v4455_v2, 0.0 }
0x1130   :  { %1795 = vadd.xlane.f32.xlu1 %v1794_v55 }
0x1141   :  { %2031 = vrot.lane.b32.xlu1 %v5113_v5, %s4723_s4 }
0x1142   :  { %1802 = vrot.lane.b32.xlu0 %v4866_v53, %s4728_s20 }
0x1145   :  { %2028 = vrot.lane.b32.xlu1 %v4862_v50, %s4723_s4 }
0x114b   :  { %v1717_v6 = vpop.f32.mrf.mxu1 }
0x114c   :  { %v5122_v7 = vadd.f32 %v1717_v6, %v5081_v13 }
0x114d   :  { %v4121_v8 = vpop.f32.mrf.mxu1 }
0x114f   :  { %v1720_v59 = vpop.f32.mrf.mxu1 }
0x1150   :  { %v5125_v9 = vadd.f32 %v1720_v59, %v5084_v21  ;;  %v1914_v21 = vsel %vm501_vm1, %v5113_v5, 0 }
0x1151   :  { %v4122_v22 = vpop.f32.mrf.mxu1 }
0x11b5   :  { %v1793_v41 = vpop.xlane.xlu0 %1792 }
0x11b6   :  { %4456 = vrcp.f32 %v1793_v41 }
0x11b9   :  { %v1796_v11 = vpop.xlane.xlu1 %1795  ;;  %v1803_v28 = vpop.permute.xlu0 %1802 }
0x11ba   :  { %4458 = vrcp.f32 %v1796_v11  ;;  %4130 = vmatpush3.bf16.msra.mxu1 %v1803_v28 }
0x11bb   :  { %4141 = vmatprep.subr.bf16.mxu1 %v4721_v62 }
0x11bd   :  { %v2032_v25 = vpop.permute.xlu1 %2031 }
0x11be   :  { %v2037_v27 = vsel %vm501_vm1, %v2032_v25, 0 }
0x11c1   :  { %v2029_v30 = vpop.permute.xlu1 %2028 }
0x11c3   :  { %v4457_v53 = vpop.eup %4456 }
0x11c4   :  { %v1799_v20 = vmul.f32 %v4457_v53, %v4453_v0 }
0x11c7   :  { %v4459_v17 = vpop.eup %4458 }
0x11c8   :  { %v1800_v24 = vmul.f32 %v4459_v17, %v4455_v2 }
0x11ca   :  { %v1801_v13 = vpack.c.bf16 %v1800_v24, %v1799_v20 }
0x11cc   :  { %4132 = vmatmul.mubr.msk.bf16.vlgmr.msra.gmra.mxu1 %vm501_vm1, %v1801_v13 }
0x11cd   :  { %4142 = vmatpush3.bf16.xpose.msra.mxu1 %v1914_v21  ;;  %4143 = vmatprep.mubr.msk.bf16.mxu1 %vm4722_vm0, %v4721_v62 }
0x11ce   :  { %4153 = vmatprep.subr.bf16.mxu1 %v4721_v62 }
0x11d4   :  { %4144 = vmatmul.mubr.msk.bf16.vlgmr.msra.gmra.mxu1 %vm501_vm1, %v4862_v50 }
0x11d5   :  { %4154 = vmatpush3.bf16.xpose.msra.mxu1 %v2037_v27  ;;  %4155 = vmatprep.mubr.msk.bf16.mxu1 %vm4722_vm0, %v4721_v62 }
0x11d6   :  { %4165 = vmatprep.subr.bf16.mxu1 %v4721_v62 }
0x11dc   :  { %4156 = vmatmul.mubr.msk.bf16.vlgmr.msra.gmra.mxu1 %vm501_vm1, %v2029_v30 }
0x11dd   :  { %4166 = vmatpush3.bf16.msra.mxu1 %v4906_v58  ;;  %4167 = vmatprep.mubr.msk.bf16.mxu1 %vm4722_vm0, %v4721_v62  ;;  %v5153_v58 = vld [vmem:[#allocation5 + $0x18] sm:$0xff] }
0x11de   :  { %4177 = vmatprep.subr.bf16.mxu1 %v4721_v62  ;;  %vm1908_vm5 = vcmp.gt.s32.totalorder %v5153_v58, 0  ;;  %v3807_v58 = vld [vmem:[#allocation13 + $0x5] ss:$0 sm:$0xff] }
0x128c   :  { %v1842_v34 = vpop.f32.mrf.mxu1 }
0x128e   :  { %v4133_v37 = vpop.f32.mrf.mxu1 }
0x1290   :  { %v1845_v31 = vpop.f32.mrf.mxu1 }
0x1291   :  { %v1849_v39 = vpack.c.bf16 %v1845_v31, %v1842_v34 }
0x1292   :  { %v4134_v23 = vpop.f32.mrf.mxu1 }
0x1293   :  { %4138 = vmatmul.mubr.msk.bf16.vlgmr.msra.gmra.mxu0 %vm501_vm1, %v1849_v39 }
0x1294   :  { %4148 = vmatpush3.bf16.msra.mxu0 %v4864_v51  ;;  %v1950_v42 = vpop.f32.mrf.mxu1  ;;  %4149 = vmatprep.mubr.msk.bf16.mxu0 %vm4722_vm0, %v4721_v62 }
0x1295   :  { %v1957_v43 = vsel %vm1907_vm4, -1e+18, %v1950_v42  ;;  %4159 = vmatprep.subr.bf16.mxu0 %v4721_v62 }
0x1296   :  { %v4145_v32 = vpop.f32.mrf.mxu1  ;;  %v1959_v44 = vsel %vm501_vm1, %v1957_v43, -inf }
0x1297   :  { %1960 = vmax.xlane.f32.xlu1 %v1959_v44 }
0x1298   :  { %v1953_v35 = vpop.f32.mrf.mxu1 }
0x1299   :  { %v1958_v10 = vsel %vm1908_vm5, -1e+18, %v1953_v35 }
0x129a   :  { %v4146_v14 = vpop.f32.mrf.mxu1  ;;  %v1962_v46 = vsel %vm501_vm1, %v1958_v10, -inf }
0x129b   :  { %1963 = vmax.xlane.f32.xlu0 %v1962_v46 }
0x129c   :  { %v2073_v36 = vpop.f32.mrf.mxu1 }
0x129d   :  { %v2080_v47 = vsel %vm1907_vm4, -1e+18, %v2073_v36 }
0x129e   :  { %v4157_v48 = vpop.f32.mrf.mxu1  ;;  %v2082_v49 = vsel %vm501_vm1, %v2080_v47, -inf }
0x129f   :  { %2083 = vmax.xlane.f32.xlu0 %v2082_v49 }
0x12a0   :  { %v2076_v12 = vpop.f32.mrf.mxu1 }
0x12a1   :  { %v2081_v19 = vsel %vm1908_vm5, -1e+18, %v2076_v12 }
0x12a2   :  { %v4158_v56 = vpop.f32.mrf.mxu1  ;;  %v2085_v57 = vsel %vm501_vm1, %v2081_v19, -inf }
0x12a3   :  { %2086 = vmax.xlane.f32.xlu0 %v2085_v57 }
0x1320   :  { %v1961_v60 = vpop.xlane.xlu1 %1960 }
0x1321   :  { %v1965_v61 = vsub.f32 %v1957_v43, %v1961_v60 }
0x1323   :  { %v1967_v54 = vmul.f32 1.442695, %v1965_v61 }
0x1324   :  { %v1964_v0 = vpop.xlane.xlu0 %1963 }
0x1325   :  { %4460 = vpow2.f32 %v1967_v54  ;;  %v1966_v1 = vsub.f32 %v1958_v10, %v1964_v0 }
0x1327   :  { %v1969_v2 = vmul.f32 1.442695, %v1966_v1 }
0x1328   :  { %v2084_v55 = vpop.xlane.xlu0 %2083 }
0x1329   :  { %4462 = vpow2.f32 %v1969_v2  ;;  %v2088_v3 = vsub.f32 %v2080_v47, %v2084_v55  ;;  %v4532_v47 = vld [vmem:[#allocation8] sm:$0xff]  }
0x132b   :  { %v2090_v4 = vmul.f32 1.442695, %v2088_v3 }
0x132c   :  { %v2087_v6 = vpop.xlane.xlu0 %2086 }
0x132d   :  { %4464 = vpow2.f32 %v2090_v4  ;;  %v2089_v8 = vsub.f32 %v2081_v19, %v2087_v6 }
0x132f   :  { %v2092_v59 = vmul.f32 1.442695, %v2089_v8 }
0x1331   :  { %4466 = vpow2.f32 %v2092_v59 }
0x1332   :  { %v4461_v22 = vpop.eup %4460 }
0x1333   :  { %v1971_v41 = vsel %vm501_vm1, %v4461_v22, 0.0 }
0x1334   :  { %1972 = vadd.xlane.f32.xlu1 %v1971_v41 }
0x1336   :  { %v4463_v11 = vpop.eup %4462 }
0x1337   :  { %v1974_v28 = vsel %vm501_vm1, %v4463_v11, 0.0 }
0x1338   :  { %1975 = vadd.xlane.f32.xlu0 %v1974_v28 }
0x133a   :  { %v4465_v53 = vpop.eup %4464 }
0x133b   :  { %v2094_v17 = vsel %vm501_vm1, %v4465_v53, 0.0 }
0x133c   :  { %2095 = vadd.xlane.f32.xlu1 %v2094_v17 }
0x133e   :  { %v4467_v20 = vpop.eup %4466 }
0x133f   :  { %v2097_v24 = vsel %vm501_vm1, %v4467_v20, 0.0 }
0x1340   :  { %2098 = vadd.xlane.f32.xlu0 %v2097_v24 }
0x134d   :  { %2106 = vrot.lane.b32.xlu1 %v4864_v51, %s4723_s4 }
0x1351   :  { %2242 = vrot.lane.b32.xlu1 %v4862_v50, %s4724_s6 }
0x1353   :  { %v1893_v13 = vpop.f32.mrf.mxu0 }
0x1354   :  { %v5181_v21 = vadd.f32 %v1893_v13, %v5122_v7 }
0x1355   :  { %v4139_v25 = vpop.f32.mrf.mxu0 }
0x1356   :  { %2244 = vrot.lane.b32.xlu0 %v5113_v5, %s4724_s6 }
0x1357   :  { %v1896_v27 = vpop.f32.mrf.mxu0 }
0x1358   :  { %v5186_v30 = vadd.f32 %v1896_v27, %v5125_v9 }
0x1359   :  { %v4140_v34 = vpop.f32.mrf.mxu0 }
0x13bd   :  { %v1973_v37 = vpop.xlane.xlu1 %1972 }
0x13be   :  { %4468 = vrcp.f32 %v1973_v37 }
0x13c1   :  { %v1976_v31 = vpop.xlane.xlu0 %1975 }
0x13c2   :  { %4470 = vrcp.f32 %v1976_v31 }
0x13c5   :  { %v2096_v39 = vpop.xlane.xlu1 %2095 }
0x13c6   :  { %4472 = vrcp.f32 %v2096_v39 }
0x13c9   :  { %v2099_v23 = vpop.xlane.xlu0 %2098  ;;  %v2107_v35 = vpop.permute.xlu1 %2106 }
0x13ca   :  { %4474 = vrcp.f32 %v2099_v23 }
0x13cb   :  { %v4469_v42 = vpop.eup %4468 }
0x13cc   :  { %v1979_v43 = vmul.f32 %v4469_v42, %v4461_v22 }
0x13cd   :  { %v2245_v61 = vpop.permute.xlu0 %2244  ;;  %v2243_v55 = vpop.permute.xlu1 %2242 }
0x13ce   :  { %v2250_v2 = vsel %vm501_vm1, %v2245_v61, 0 }
0x13cf   :  { %v4471_v7 = vpop.eup %4470 }
0x13d0   :  { %v1980_v32 = vmul.f32 %v4471_v7, %v4463_v11 }
0x13d2   :  { %v1981_v44 = vpack.c.bf16 %v1980_v32, %v1979_v43 }
0x13d3   :  { %v4473_v10 = vpop.eup %4472 }
0x13d4   :  { %4150 = vmatmul.mubr.msk.bf16.vlgmr.msra.gmra.mxu0 %vm501_vm1, %v1981_v44  ;;  %v2102_v14 = vmul.f32 %v4473_v10, %v4465_v53 }
0x13d5   :  { %4160 = vmatpush3.bf16.msra.mxu0 %v2107_v35  ;;  %4161 = vmatprep.mubr.msk.bf16.mxu0 %vm4722_vm0, %v4721_v62 }
0x13d6   :  { %4171 = vmatprep.subr.bf16.mxu0 %v4721_v62 }
0x13d7   :  { %v4475_v9 = vpop.eup %4474 }
0x13d8   :  { %v2103_v46 = vmul.f32 %v4475_v9, %v4467_v20 }
0x13da   :  { %v2104_v36 = vpack.c.bf16 %v2103_v46, %v2102_v14 }
0x13dc   :  { %4162 = vmatmul.mubr.msk.bf16.vlgmr.msra.gmra.mxu0 %vm501_vm1, %v2104_v36 }
0x13dd   :  { %4172 = vmatpush3.bf16.msra.mxu0 %v4532_v47  ;;  %4173 = vmatprep.mubr.msk.bf16.mxu0 %vm4722_vm0, %v4721_v62 }
0x13de   :  { %4183 = vmatprep.subr.bf16.mxu0 %v4721_v62 }
0x1494   :  { %v2019_v48 = vpop.f32.mrf.mxu0 }
0x1496   :  { %v4151_v49 = vpop.f32.mrf.mxu0 }
0x1498   :  { %v2022_v12 = vpop.f32.mrf.mxu0 }
0x1499   :  { %v2026_v19 = vpack.c.bf16 %v2022_v12, %v2019_v48 }
0x149a   :  { %v4152_v56 = vpop.f32.mrf.mxu0 }
0x149b   :  { %4174 = vmatmul.mubr.msk.bf16.vlgmr.msra.gmra.mxu0 %vm501_vm1, %v2026_v19 }
0x149c   :  { %v2146_v57 = vpop.f32.mrf.mxu0  ;;  %4185 = vmatprep.mubr.msk.bf16.mxu0 %vm4722_vm0, %v4721_v62 }
0x149e   :  { %v4163_v60 = vpop.f32.mrf.mxu0 }
0x14a0   :  { %v2149_v54 = vpop.f32.mrf.mxu0 }
0x14a1   :  { %v2153_v0 = vpack.c.bf16 %v2149_v54, %v2146_v57 }
0x14a2   :  { %v4164_v1 = vpop.f32.mrf.mxu0 }
0x14a3   :  { %4168 = vmatmul.mubr.msk.bf16.vlgmr.msra.gmra.mxu1 %vm501_vm1, %v2153_v0 }
0x14a4   :  { %4178 = vmatpush3.bf16.xpose.msra.mxu1 %v2250_v2  ;;  %4179 = vmatprep.mubr.msk.bf16.mxu1 %vm4722_vm0, %v4721_v62 }
0x14a5   :  { %4189 = vmatprep.subr.bf16.mxu1 %v4721_v62 }
0x14ab   :  { %4180 = vmatmul.mubr.msk.bf16.vlgmr.msra.gmra.mxu1 %vm501_vm1, %v2243_v55 }
0x14ac   :  { %4190 = vmatpush3.bf16.msra.mxu1 %v4954_v63  ;;  %4191 = vmatprep.mubr.msk.bf16.mxu1 %vm4722_vm0, %v4721_v62 }
0x14ad   :  { %4201 = vmatprep.subr.bf16.mxu1 %v4721_v62 }
0x155b   :  { %v2235_v3 = vpop.f32.mrf.mxu0 }
0x155d   :  { %v4175_v4 = vpop.f32.mrf.mxu0 }
0x155f   :  { %v2238_v6 = vpop.f32.mrf.mxu0 }
0x1561   :  { %v4176_v8 = vpop.f32.mrf.mxu0 }
0x1563   :  { %v2191_v59 = vpop.f32.mrf.mxu1 }
0x1564   :  { %v5209_v22 = vadd.f32 %v2235_v3, %v2191_v59 }
0x1565   :  { %v4169_v41 = vpop.f32.mrf.mxu1 }
0x1567   :  { %v2194_v11 = vpop.f32.mrf.mxu1 }
0x1568   :  { %v5211_v28 = vadd.f32 %v2238_v6, %v2194_v11 }
0x1569   :  { %v4170_v53 = vpop.f32.mrf.mxu1 }
0x156b   :  { %v2286_v17 = vpop.f32.mrf.mxu1 }
0x156c   :  { %v2293_v63 = vsel %vm1907_vm4, -1e+18, %v2286_v17 }
0x156d   :  { %v4181_v20 = vpop.f32.mrf.mxu1  ;;  %v2295_v24 = vsel %vm501_vm1, %v2293_v63, -inf }
0x156e   :  { %2296 = vmax.xlane.f32.xlu1 %v2295_v24 }
0x156f   :  { %v2289_v13 = vpop.f32.mrf.mxu1 }
0x1570   :  { %v2294_v25 = vsel %vm1908_vm5, -1e+18, %v2289_v13 }
0x1571   :  { %v4182_v27 = vpop.f32.mrf.mxu1  ;;  %v2298_v34 = vsel %vm501_vm1, %v2294_v25, -inf }
0x1572   :  { %2299 = vmax.xlane.f32.xlu0 %v2298_v34 }
0x15f7   :  { %v2297_v37 = vpop.xlane.xlu1 %2296 }
0x15f8   :  { %v2301_v31 = vsub.f32 %v2293_v63, %v2297_v37 }
0x15fa   :  { %v2303_v39 = vmul.f32 1.442695, %v2301_v31 }
0x15fb   :  { %v2300_v23 = vpop.xlane.xlu0 %2299 }
0x15fc   :  { %4476 = vpow2.f32 %v2303_v39  ;;  %v2302_v42 = vsub.f32 %v2294_v25, %v2300_v23 }
0x15fe   :  { %v2305_v7 = vmul.f32 1.442695, %v2302_v42 }
0x1600   :  { %4478 = vpow2.f32 %v2305_v7 }
0x1609   :  { %v4477_v43 = vpop.eup %4476 }
0x160a   :  { %v2307_v32 = vsel %vm501_vm1, %v4477_v43, 0.0 }
0x160b   :  { %2308 = vadd.xlane.f32.xlu0 %v2307_v32 }
0x160d   :  { %v4479_v44 = vpop.eup %4478 }
0x160e   :  { %v2310_v35 = vsel %vm501_vm1, %v4479_v44, 0.0 }
0x160f   :  { %2311 = vadd.xlane.f32.xlu1 %v2310_v35 }
0x1620   :  { %2414 = vrot.lane.b32.xlu1 %v5113_v5, %s4725_s18 }
0x1621   :  { %2318 = vrot.lane.b32.xlu0 %v4864_v51, %s4724_s6 }
0x1624   :  { %2412 = vrot.lane.b32.xlu1 %v4862_v50, %s4725_s18 }
0x1694   :  { %v2309_v10 = vpop.xlane.xlu0 %2308 }
0x1695   :  { %4480 = vrcp.f32 %v2309_v10 }
0x1698   :  { %v2312_v9 = vpop.xlane.xlu1 %2311  ;;  %v2319_v14 = vpop.permute.xlu0 %2318 }
0x1699   :  { %4482 = vrcp.f32 %v2312_v9  ;;  %4184 = vmatpush3.bf16.msra.mxu0 %v2319_v14 }
0x169a   :  { %4195 = vmatprep.subr.bf16.mxu0 %v4721_v62 }
0x169c   :  { %v2415_v49 = vpop.permute.xlu1 %2414 }
0x169d   :  { %v2420_v19 = vsel %vm501_vm1, %v2415_v49, 0 }
0x16a0   :  { %v2413_v56 = vpop.permute.xlu1 %2412 }
0x16a2   :  { %v4481_v46 = vpop.eup %4480 }
0x16a3   :  { %v2315_v47 = vmul.f32 %v4481_v46, %v4477_v43 }
0x16a6   :  { %v4483_v36 = vpop.eup %4482 }
0x16a7   :  { %v2316_v48 = vmul.f32 %v4483_v36, %v4479_v44 }
0x16a9   :  { %v2317_v12 = vpack.c.bf16 %v2316_v48, %v2315_v47 }
0x16ab   :  { %4186 = vmatmul.mubr.msk.bf16.vlgmr.msra.gmra.mxu0 %vm501_vm1, %v2317_v12 }
0x16ac   :  { %4196 = vmatpush3.bf16.xpose.msra.mxu0 %v2420_v19  ;;  %4197 = vmatprep.mubr.msk.bf16.mxu0 %vm4722_vm0, %v4721_v62 }
0x16ad   :  { %4207 = vmatprep.subr.bf16.mxu0 %v4721_v62 }
0x16b3   :  { %4198 = vmatmul.mubr.msk.bf16.vlgmr.msra.gmra.mxu0 %vm501_vm1, %v2413_v56 }
0x16b4   :  { %4208 = vmatpush3.bf16.msra.mxu0 %v4992_v52  ;;  %4209 = vmatprep.mubr.msk.bf16.mxu0 %vm4722_vm0, %v4721_v62 }
0x16b5   :  { %4219 = vmatprep.subr.bf16.mxu0 %v4721_v62 }
0x176b   :  { %v2358_v57 = vpop.f32.mrf.mxu0 }
0x176d   :  { %v4187_v60 = vpop.f32.mrf.mxu0 }
0x176f   :  { %v2361_v61 = vpop.f32.mrf.mxu0 }
0x1770   :  { %v2365_v54 = vpack.c.bf16 %v2361_v61, %v2358_v57 }
0x1771   :  { %v4188_v0 = vpop.f32.mrf.mxu0 }
0x1772   :  { %4192 = vmatmul.mubr.msk.bf16.vlgmr.msra.gmra.mxu1 %vm501_vm1, %v2365_v54 }
0x1773   :  { %v2456_v1 = vpop.f32.mrf.mxu0  ;;  %4203 = vmatprep.mubr.msk.bf16.mxu1 %vm4722_vm0, %v4721_v62 }
0x1774   :  { %v2463_v2 = vsel %vm1907_vm4, -1e+18, %v2456_v1 }
0x1775   :  { %v4199_v52 = vpop.f32.mrf.mxu0  ;;  %v2465_v55 = vsel %vm501_vm1, %v2463_v2, -inf }
0x1776   :  { %2466 = vmax.xlane.f32.xlu1 %v2465_v55 }
0x1777   :  { %v2459_v3 = vpop.f32.mrf.mxu0 }
0x1778   :  { %v2464_v4 = vsel %vm1908_vm5, -1e+18, %v2459_v3 }
0x1779   :  { %v4200_v6 = vpop.f32.mrf.mxu0  ;;  %v2468_v8 = vsel %vm501_vm1, %v2464_v4, -inf }
0x177a   :  { %2469 = vmax.xlane.f32.xlu0 %v2468_v8 }
0x1787   :  { %2488 = vrot.lane.b32.xlu1 %v4864_v51, %s4725_s18 }
0x178b   :  { %2582 = vrot.lane.b32.xlu1 %v4862_v50, %s4711_s11 }
0x17ff   :  { %v2467_v59 = vpop.xlane.xlu1 %2466 }
0x1800   :  { %v2471_v41 = vsub.f32 %v2463_v2, %v2467_v59 }
0x1802   :  { %v2473_v11 = vmul.f32 1.442695, %v2471_v41 }
0x1803   :  { %v2489_v53 = vpop.permute.xlu1 %2488  ;;  %v2470_v17 = vpop.xlane.xlu0 %2469 }
0x1804   :  { %4484 = vpow2.f32 %v2473_v11  ;;  %v2472_v63 = vsub.f32 %v2464_v4, %v2470_v17  ;;  %4202 = vmatpush3.bf16.msra.mxu1 %v2489_v53 }
0x1805   :  { %4213 = vmatprep.subr.bf16.mxu1 %v4721_v62 }
0x1806   :  { %v2475_v20 = vmul.f32 1.442695, %v2472_v63 }
0x1808   :  { %4486 = vpow2.f32 %v2475_v20 }
0x1811   :  { %v4485_v24 = vpop.eup %4484 }
0x1812   :  { %v2477_v13 = vsel %vm501_vm1, %v4485_v24, 0.0 }
0x1813   :  { %2478 = vadd.xlane.f32.xlu0 %v2477_v13 }
0x1815   :  { %v4487_v25 = vpop.eup %4486 }
0x1816   :  { %v2480_v27 = vsel %vm501_vm1, %v4487_v25, 0.0 }
0x1817   :  { %2481 = vadd.xlane.f32.xlu0 %v2480_v27 }
0x182d   :  { %2584 = vrot.lane.b32.xlu0 %v5113_v5, %s4711_s11 }
0x1832   :  { %v2403_v34 = vpop.f32.mrf.mxu1 }
0x1833   :  { %v2410_v37 = vadd.f32 %v2403_v34, %v5209_v22  ;;  %v2583_v22 = vpop.permute.xlu1 %2582 }
0x1834   :  { %v4193_v31 = vpop.f32.mrf.mxu1 }
0x1836   :  { %v2406_v39 = vpop.f32.mrf.mxu1 }
0x1837   :  { %v2411_v23 = vadd.f32 %v2406_v39, %v5211_v28 }
0x1838   :  { %v4194_v42 = vpop.f32.mrf.mxu1 }
0x189c   :  { %v2479_v7 = vpop.xlane.xlu0 %2478 }
0x189d   :  { %4488 = vrcp.f32 %v2479_v7 }
0x18a0   :  { %v2482_v43 = vpop.xlane.xlu0 %2481 }
0x18a1   :  { %4490 = vrcp.f32 %v2482_v43 }
0x18a4   :  { %v2585_v9 = vpop.permute.xlu0 %2584 }
0x18a5   :  { %v2590_v46 = vsel %vm501_vm1, %v2585_v9, 0 }
0x18aa   :  { %v4489_v32 = vpop.eup %4488 }
0x18ab   :  { %v2485_v35 = vmul.f32 %v4489_v32, %v4485_v24 }
0x18ae   :  { %v4491_v44 = vpop.eup %4490 }
0x18af   :  { %v2486_v10 = vmul.f32 %v4491_v44, %v4487_v25 }
0x18b1   :  { %v2487_v14 = vpack.c.bf16 %v2486_v10, %v2485_v35 }
0x18b3   :  { %4204 = vmatmul.mubr.msk.bf16.vlgmr.msra.gmra.mxu1 %vm501_vm1, %v2487_v14 }
0x18b4   :  { %4214 = vmatpush3.bf16.xpose.msra.mxu1 %v2590_v46  ;;  %4215 = vmatprep.mubr.msk.bf16.mxu1 %vm4722_vm0, %v4721_v62 }
0x18b5   :  { %4225 = vmatprep.subr.bf16.mxu1 %v4721_v62 }
0x18bb   :  { %4216 = vmatmul.mubr.msk.bf16.vlgmr.msra.gmra.mxu1 %vm501_vm1, %v2583_v22 }
0x18bc   :  { %4226 = vmatpush3.bf16.msra.mxu1 %v5024_v40  ;;  %4227 = vmatprep.mubr.msk.bf16.mxu1 %vm4722_vm0, %v4721_v62 }
0x18bd   :  { %4237 = vmatprep.subr.bf16.mxu1 %v4721_v62 }
0x1973   :  { %v2528_v28 = vpop.f32.mrf.mxu1 }
0x1975   :  { %v4205_v36 = vpop.f32.mrf.mxu1 }
0x1977   :  { %v2531_v47 = vpop.f32.mrf.mxu1 }
0x1978   :  { %v2535_v48 = vpack.c.bf16 %v2531_v47, %v2528_v28 }
0x1979   :  { %v4206_v49 = vpop.f32.mrf.mxu1 }
0x197a   :  { %4210 = vmatmul.mubr.msk.bf16.vlgmr.msra.gmra.mxu0 %vm501_vm1, %v2535_v48 }
0x197b   :  { %v2626_v12 = vpop.f32.mrf.mxu1  ;;  %4221 = vmatprep.mubr.msk.bf16.mxu0 %vm4722_vm0, %v4721_v62 }
0x197c   :  { %v2633_v19 = vsel %vm1907_vm4, -1e+18, %v2626_v12 }
0x197d   :  { %v4217_v40 = vpop.f32.mrf.mxu1  ;;  %v2635_v56 = vsel %vm501_vm1, %v2633_v19, -inf }
0x197e   :  { %2636 = vmax.xlane.f32.xlu1 %v2635_v56 }
0x197f   :  { %v2629_v57 = vpop.f32.mrf.mxu1 }
0x1980   :  { %v2634_v60 = vsel %vm1908_vm5, -1e+18, %v2629_v57 }
0x1981   :  { %v4218_v61 = vpop.f32.mrf.mxu1  ;;  %v2638_v54 = vsel %vm501_vm1, %v2634_v60, -inf }
0x1982   :  { %2639 = vmax.xlane.f32.xlu0 %v2638_v54 }
0x1a07   :  { %v2637_v0 = vpop.xlane.xlu1 %2636 }
0x1a08   :  { %v2641_v1 = vsub.f32 %v2633_v19, %v2637_v0 }
0x1a0a   :  { %v2643_v2 = vmul.f32 1.442695, %v2641_v1 }
0x1a0b   :  { %v2640_v52 = vpop.xlane.xlu0 %2639 }
0x1a0c   :  { %4492 = vpow2.f32 %v2643_v2  ;;  %v2642_v55 = vsub.f32 %v2634_v60, %v2640_v52 }
0x1a0e   :  { %v2645_v3 = vmul.f32 1.442695, %v2642_v55 }
0x1a10   :  { %4494 = vpow2.f32 %v2645_v3 }
0x1a19   :  { %v4493_v4 = vpop.eup %4492 }
0x1a1a   :  { %v2647_v6 = vsel %vm501_vm1, %v4493_v4, 0.0 }
0x1a1b   :  { %2648 = vadd.xlane.f32.xlu0 %v2647_v6 }
0x1a1d   :  { %v4495_v8 = vpop.eup %4494 }
0x1a1e   :  { %v2650_v59 = vsel %vm501_vm1, %v4495_v8, 0.0 }
0x1a1f   :  { %2651 = vadd.xlane.f32.xlu1 %v2650_v59 }
0x1a30   :  { %2754 = vrot.lane.b32.xlu1 %v5113_v5, %s4726_s1 }
0x1a31   :  { %2658 = vrot.lane.b32.xlu0 %v4864_v51, %s4711_s11  ;;  %s4729_s11 = smov [#allocation14]  }
0x1a32   :  { %s3710_s3 = sshll.u32 %s4729_s11, 4  ;;  %s3711_s3 = int_to_ptr.vmem [resolvable:$true] %s3710_s3 }
0x1a33   :  { %s4677_s21 = scalar_lea.vmem %s3711_s3, 512  ;;  %p4682_p8 = scmp.lt.s32.totalorder %s3711_s3, %s3711_s3 }
0x1a34   :  { %2752 = vrot.lane.b32.xlu1 %v4862_v50, %s4726_s1  ;;  %p4678_p7 = scmp.ne.s32.totalorder %s3711_s3, %s4677_s21  ;;  %p4683_p9 = scmp.lt.s32.totalorder %s4677_s21, %s4677_s21 }
0x1a36   :  { %p4684_p10 = por %p4683_p9, %p4682_p8 }
0x1a38   :  { %p4685_p11 = pnand %p4684_p10, %p4678_p7 }
0x1a3a   :  { %v2573_v41 = vpop.f32.mrf.mxu0 }
0x1a3b   :  { %v5285_v11 = vadd.f32 %v2573_v41, %v2410_v37 }
0x1a3c   :  { %v4211_v53 = vpop.f32.mrf.mxu0 }
0x1a3e   :  { %v2576_v17 = vpop.f32.mrf.mxu0 }
0x1a3f   :  { %v5287_v63 = vadd.f32 %v2576_v17, %v2411_v23 }
0x1a40   :  { %v4212_v20 = vpop.f32.mrf.mxu0 }
0x1aa4   :  { %v2649_v24 = vpop.xlane.xlu0 %2648 }
0x1aa5   :  { %4496 = vrcp.f32 %v2649_v24 }
0x1aa8   :  { %v2652_v13 = vpop.xlane.xlu1 %2651  ;;  %v2659_v25 = vpop.permute.xlu0 %2658 }
0x1aa9   :  { %4498 = vrcp.f32 %v2652_v13  ;;  %4220 = vmatpush3.bf16.msra.mxu0 %v2659_v25 }
0x1aaa   :  { %4231 = vmatprep.subr.bf16.mxu0 %v4721_v62 }
0x1aac   :  { %v2755_v42 = vpop.permute.xlu1 %2754 }
0x1aad   :  { %v2760_v7 = vsel %vm501_vm1, %v2755_v42, 0 }
0x1ab0   :  { %v2753_v23 = vpop.permute.xlu1 %2752 }
0x1ab2   :  { %v4497_v27 = vpop.eup %4496 }
0x1ab3   :  { %v2655_v31 = vmul.f32 %v4497_v27, %v4493_v4 }
0x1ab6   :  { %v4499_v34 = vpop.eup %4498 }
0x1ab7   :  { %v2656_v39 = vmul.f32 %v4499_v34, %v4495_v8 }
0x1ab9   :  { %v2657_v37 = vpack.c.bf16 %v2656_v39, %v2655_v31 }
0x1abb   :  { %4222 = vmatmul.mubr.msk.bf16.vlgmr.msra.gmra.mxu0 %vm501_vm1, %v2657_v37 }
0x1abc   :  { %4232 = vmatpush3.bf16.xpose.msra.mxu0 %v2760_v7  ;;  %4233 = vmatprep.mubr.msk.bf16.mxu0 %vm4722_vm0, %v4721_v62 }
0x1abd   :  { %4243 = vmatprep.subr.bf16.mxu0 %v4721_v62 }
0x1ac3   :  { %4234 = vmatmul.mubr.msk.bf16.vlgmr.msra.gmra.mxu0 %vm501_vm1, %v2753_v23 }
0x1ac4   :  { %4244 = vmatpush3.bf16.msra.mxu0 %v5058_v45  ;;  %4245 = vmatprep.mubr.msk.bf16.mxu0 %vm4722_vm0, %v4721_v62 }
0x1ac5   :  { %4255 = vmatprep.subr.bf16.mxu0 %v4721_v62 }
0x1b7b   :  { %v2698_v43 = vpop.f32.mrf.mxu0 }
0x1b7d   :  { %v4223_v32 = vpop.f32.mrf.mxu0 }
0x1b7f   :  { %v2701_v44 = vpop.f32.mrf.mxu0 }
0x1b80   :  { %v2705_v35 = vpack.c.bf16 %v2701_v44, %v2698_v43 }
0x1b81   :  { %v4224_v10 = vpop.f32.mrf.mxu0 }
0x1b82   :  { %4228 = vmatmul.mubr.msk.bf16.vlgmr.msra.gmra.mxu1 %vm501_vm1, %v2705_v35 }
0x1b83   :  { %v2796_v9 = vpop.f32.mrf.mxu0  ;;  %4239 = vmatprep.mubr.msk.bf16.mxu1 %vm4722_vm0, %v4721_v62 }
0x1b84   :  { %v2803_v14 = vsel %vm1907_vm4, -1e+18, %v2796_v9 }
0x1b85   :  { %v4235_v45 = vpop.f32.mrf.mxu0  ;;  %v2805_v46 = vsel %vm501_vm1, %v2803_v14, -inf }
0x1b86   :  { %2806 = vmax.xlane.f32.xlu1 %v2805_v46 }
0x1b87   :  { %v2799_v22 = vpop.f32.mrf.mxu0 }
0x1b88   :  { %v2804_v28 = vsel %vm1908_vm5, -1e+18, %v2799_v22 }
0x1b89   :  { %v4236_v36 = vpop.f32.mrf.mxu0  ;;  %v2808_v47 = vsel %vm501_vm1, %v2804_v28, -inf }
0x1b8a   :  { %2809 = vmax.xlane.f32.xlu0 %v2808_v47 }
0x1b97   :  { %2828 = vrot.lane.b32.xlu1 %v4864_v51, %s4726_s1 }
0x1b9b   :  { %2922 = vrot.lane.b32.xlu1 %v4862_v50, %s4727_s19 }
0x1c0f   :  { %v2807_v48 = vpop.xlane.xlu1 %2806 }
0x1c10   :  { %v2811_v49 = vsub.f32 %v2803_v14, %v2807_v48 }
0x1c12   :  { %v2813_v12 = vmul.f32 1.442695, %v2811_v49 }
0x1c13   :  { %v2829_v19 = vpop.permute.xlu1 %2828  ;;  %v2810_v40 = vpop.xlane.xlu0 %2809 }
0x1c14   :  { %4500 = vpow2.f32 %v2813_v12  ;;  %v2812_v56 = vsub.f32 %v2804_v28, %v2810_v40  ;;  %4238 = vmatpush3.bf16.msra.mxu1 %v2829_v19 }
0x1c15   :  { %4249 = vmatprep.subr.bf16.mxu1 %v4721_v62 }
0x1c16   :  { %v2815_v57 = vmul.f32 1.442695, %v2812_v56 }
0x1c18   :  { %4502 = vpow2.f32 %v2815_v57 }
0x1c21   :  { %v4501_v60 = vpop.eup %4500 }
0x1c22   :  { %v2817_v61 = vsel %vm501_vm1, %v4501_v60, 0.0 }
0x1c23   :  { %2818 = vadd.xlane.f32.xlu0 %v2817_v61 }
0x1c25   :  { %v4503_v54 = vpop.eup %4502 }
0x1c26   :  { %v2820_v0 = vsel %vm501_vm1, %v4503_v54, 0.0 }
0x1c27   :  { %2821 = vadd.xlane.f32.xlu0 %v2820_v0 }
0x1c3d   :  { %2924 = vrot.lane.b32.xlu0 %v5113_v5, %s4727_s19 }
0x1c42   :  { %v2743_v1 = vpop.f32.mrf.mxu1 }
0x1c43   :  { %v2750_v2 = vadd.f32 %v2743_v1, %v5285_v11  ;;  %v2923_v11 = vpop.permute.xlu1 %2922 }
0x1c44   :  { %v4229_v52 = vpop.f32.mrf.mxu1 }
0x1c46   :  { %v2746_v55 = vpop.f32.mrf.mxu1 }
0x1c47   :  { %v2751_v3 = vadd.f32 %v2746_v55, %v5287_v63 }
0x1c48   :  { %v4230_v4 = vpop.f32.mrf.mxu1 }
0x1cac   :  { %v2819_v6 = vpop.xlane.xlu0 %2818 }
0x1cad   :  { %4504 = vrcp.f32 %v2819_v6 }
0x1cb0   :  { %v2822_v8 = vpop.xlane.xlu0 %2821 }
0x1cb1   :  { %4506 = vrcp.f32 %v2822_v8 }
0x1cb4   :  { %v2925_v20 = vpop.permute.xlu0 %2924 }
0x1cb5   :  { %v2930_v13 = vsel %vm501_vm1, %v2925_v20, 0 }
0x1cba   :  { %v4505_v59 = vpop.eup %4504 }
0x1cbb   :  { %v2825_v53 = vmul.f32 %v4505_v59, %v4501_v60 }
0x1cbe   :  { %v4507_v41 = vpop.eup %4506 }
0x1cbf   :  { %v2826_v17 = vmul.f32 %v4507_v41, %v4503_v54 }
0x1cc1   :  { %v2827_v24 = vpack.c.bf16 %v2826_v17, %v2825_v53 }
0x1cc3   :  { %4240 = vmatmul.mubr.msk.bf16.vlgmr.msra.gmra.mxu1 %vm501_vm1, %v2827_v24 }
0x1cc4   :  { %4250 = vmatpush3.bf16.xpose.msra.mxu1 %v2930_v13  ;;  %4251 = vmatprep.mubr.msk.bf16.mxu1 %vm4722_vm0, %v4721_v62 }
0x1cc5   :  { %4261 = vmatprep.subr.bf16.mxu1 %v4721_v62 }
0x1ccb   :  { %4252 = vmatmul.mubr.msk.bf16.vlgmr.msra.gmra.mxu1 %vm501_vm1, %v2923_v11 }
0x1ccc   :  { %4262 = vmatpush3.bf16.msra.mxu1 %v5094_v26  ;;  %4263 = vmatprep.mubr.msk.bf16.mxu1 %vm4722_vm0, %v4721_v62 }
0x1ccd   :  { %4273 = vmatprep.subr.bf16.mxu1 %v4721_v62 }
0x1d83   :  { %v2868_v63 = vpop.f32.mrf.mxu1 }
0x1d85   :  { %v4241_v25 = vpop.f32.mrf.mxu1 }
0x1d87   :  { %v2871_v27 = vpop.f32.mrf.mxu1 }
0x1d88   :  { %v2875_v34 = vpack.c.bf16 %v2871_v27, %v2868_v63 }
0x1d89   :  { %v4242_v31 = vpop.f32.mrf.mxu1 }
0x1d8a   :  { %4246 = vmatmul.mubr.msk.bf16.vlgmr.msra.gmra.mxu0 %vm501_vm1, %v2875_v34 }
0x1d8b   :  { %v2966_v39 = vpop.f32.mrf.mxu1  ;;  %4257 = vmatprep.mubr.msk.bf16.mxu0 %vm4722_vm0, %v4721_v62 }
0x1d8c   :  { %v2973_v42 = vsel %vm1907_vm4, -1e+18, %v2966_v39 }
0x1d8d   :  { %v2975_v26 = vsel %vm501_vm1, %v2973_v42, -inf  ;;  %v4253_v37 = vpop.f32.mrf.mxu1 }
0x1d8e   :  { %2976 = vmax.xlane.f32.xlu1 %v2975_v26  ;;  %v3268_v26 = vadd.f32 %v3807_v58, %v5181_v21  ;;  %v3269_v37 = vadd.f32 %v3807_v58, %v5186_v30 }
0x1d8f   :  { %v2969_v7 = vpop.f32.mrf.mxu1 }
0x1d90   :  { %v2974_v23 = vsel %vm1908_vm5, -1e+18, %v2969_v7  ;;  %v4533_v7 = vld [vmem:[#allocation2] sm:$0xff] }
0x1d91   :  { %v2978_v43 = vsel %vm501_vm1, %v2974_v23, -inf  ;;  %v4254_v32 = vpop.f32.mrf.mxu1 }
0x1d92   :  { %2979 = vmax.xlane.f32.xlu0 %v2978_v43  ;;  %v4534_v43 = vld [vmem:[#allocation2 + $0x8] sm:$0xff] }
0x1d93   :  { %v5379_v32 = vadd.f32 %v4534_v43, %v3269_v37 }
0x1e17   :  { %v2977_v44 = vpop.xlane.xlu1 %2976 }
0x1e18   :  { %v2981_v35 = vsub.f32 %v2973_v42, %v2977_v44 }
0x1e1a   :  { %v2983_v10 = vmul.f32 1.442695, %v2981_v35 }
0x1e1b   :  { %v2980_v9 = vpop.xlane.xlu0 %2979 }
0x1e1c   :  { %4508 = vpow2.f32 %v2983_v10  ;;  %v2982_v14 = vsub.f32 %v2974_v23, %v2980_v9  ;;  %v5376_v23 = vadd.f32 %v4533_v7, %v3268_v26  ;;  %v4369_v26 = vld [vmem:[#allocation10] ss:$8 sps:$4 sm:$0xff]  }
0x1e1e   :  { %v2985_v45 = vmul.f32 1.442695, %v2982_v14 }
0x1e20   :  { %4510 = vpow2.f32 %v2985_v45 }
0x1e29   :  { %v4509_v46 = vpop.eup %4508 }
0x1e2a   :  { %v2987_v22 = vsel %vm501_vm1, %v4509_v46, 0.0 }
0x1e2b   :  { %2988 = vadd.xlane.f32.xlu0 %v2987_v22 }
0x1e2d   :  { %v4511_v28 = vpop.eup %4510 }
0x1e2e   :  { %v2990_v36 = vsel %vm501_vm1, %v4511_v28, 0.0 }
0x1e2f   :  { %2991 = vadd.xlane.f32.xlu1 %v2990_v36 }
0x1e40   :  { %3094 = vrot.lane.b32.xlu1 %v5113_v5, %s4728_s20 }
0x1e41   :  { %2998 = vrot.lane.b32.xlu0 %v4864_v51, %s4727_s19 }
0x1e44   :  { %3092 = vrot.lane.b32.xlu1 %v4862_v50, %s4728_s20 }
0x1e4a   :  { %v2913_v47 = vpop.f32.mrf.mxu0 }
0x1e4b   :  { %v5347_v48 = vadd.f32 %v2913_v47, %v2750_v2 }
0x1e4c   :  { %v4247_v49 = vpop.f32.mrf.mxu0 }
0x1e4e   :  { %v2916_v12 = vpop.f32.mrf.mxu0 }
0x1e4f   :  { %v5349_v19 = vadd.f32 %v2916_v12, %v2751_v3 }
0x1e50   :  { %v4248_v40 = vpop.f32.mrf.mxu0 }
0x1eb4   :  { %v2989_v56 = vpop.xlane.xlu0 %2988 }
0x1eb5   :  { %4512 = vrcp.f32 %v2989_v56 }
0x1eb8   :  { %v2992_v57 = vpop.xlane.xlu1 %2991  ;;  %v2999_v60 = vpop.permute.xlu0 %2998 }
0x1eb9   :  { %4514 = vrcp.f32 %v2992_v57  ;;  %4256 = vmatpush3.bf16.msra.mxu0 %v2999_v60 }
0x1eba   :  { %4267 = vmatprep.subr.bf16.mxu0 %v4721_v62 }
0x1ebc   :  { %v3095_v0 = vpop.permute.xlu1 %3094 }
0x1ebd   :  { %v3100_v2 = vsel %vm501_vm1, %v3095_v0, 0 }
0x1ec0   :  { %v3093_v52 = vpop.permute.xlu1 %3092 }
0x1ec2   :  { %v4513_v5 = vpop.eup %4512 }
0x1ec3   :  { %v2995_v54 = vmul.f32 %v4513_v5, %v4509_v46 }
0x1ec6   :  { %v4515_v61 = vpop.eup %4514 }
0x1ec7   :  { %v2996_v50 = vmul.f32 %v4515_v61, %v4511_v28 }
0x1ec9   :  { %v2997_v1 = vpack.c.bf16 %v2996_v50, %v2995_v54 }
0x1ecb   :  { %4258 = vmatmul.mubr.msk.bf16.vlgmr.msra.gmra.mxu0 %vm501_vm1, %v2997_v1 }
0x1ecc   :  { %4268 = vmatpush3.bf16.xpose.msra.mxu0 %v3100_v2  ;;  %4269 = vmatprep.mubr.msk.bf16.mxu0 %vm4722_vm0, %v4721_v62 }
0x1ecd   :  { %4279 = vmatprep.subr.bf16.mxu0 %v4721_v62 }
0x1ed3   :  { %4270 = vmatmul.mubr.msk.bf16.vlgmr.msra.gmra.mxu0 %vm501_vm1, %v3093_v52 }
0x1ed4   :  { %4280 = vmatpush3.bf16.msra.mxu0 %v5145_v33  ;;  %4281 = vmatprep.mubr.msk.bf16.mxu0 %vm4722_vm0, %v4721_v62 }
0x1f8b   :  { %v3038_v55 = vpop.f32.mrf.mxu0 }
0x1f8d   :  { %v4259_v3 = vpop.f32.mrf.mxu0 }
0x1f8e   :  { %v4535_v3 = vld [vmem:[#allocation2 + $0x10] sm:$0xff] }
0x1f8f   :  { %v3041_v4 = vpop.f32.mrf.mxu0 }
0x1f90   :  { %v3045_v6 = vpack.c.bf16 %v3041_v4, %v3038_v55 }
0x1f91   :  { %v4260_v8 = vpop.f32.mrf.mxu0 }
0x1f92   :  { %4264 = vmatmul.mubr.msk.bf16.vlgmr.msra.gmra.mxu1 %vm501_vm1, %v3045_v6 }
0x1f93   :  { %v3136_v59 = vpop.f32.mrf.mxu0  ;;  %4275 = vmatprep.mubr.msk.bf16.mxu1 %vm4722_vm0, %v4721_v62 }
0x1f94   :  { %v3143_v41 = vsel %vm1907_vm4, -1e+18, %v3136_v59 }
0x1f95   :  { %v3145_v53 = vsel %vm501_vm1, %v3143_v41, -inf  ;;  %v4271_v33 = vpop.f32.mrf.mxu0 }
0x1f96   :  { %3146 = vmax.xlane.f32.xlu1 %v3145_v53 }
0x1f97   :  { %v3139_v17 = vpop.f32.mrf.mxu0 }
0x1f98   :  { %v3144_v20 = vsel %vm1908_vm5, -1e+18, %v3139_v17  ;;  %v4350_v17 = vld [vmem:[#allocation10 + $0x74] ss:$8 sps:$4 sm:$0xff]  }
0x1f99   :  { %v3148_v24 = vsel %vm501_vm1, %v3144_v20, -inf  ;;  %v4272_v13 = vpop.f32.mrf.mxu0 }
0x1f9a   :  { %3149 = vmax.xlane.f32.xlu0 %v3148_v24  ;;  %v4353_v24 = vld [vmem:[#allocation10 + $0x64] ss:$8 sps:$4 sm:$0xff]   ;;  %v4351_v13 = vld [vmem:[#allocation10 + $0x60] ss:$8 sps:$4 sm:$0xff]  }
0x1fa7   :  { %3168 = vrot.lane.b32.xlu1 %v4864_v51, %s4728_s20 }
0x201f   :  { %v3147_v11 = vpop.xlane.xlu1 %3146 }
0x2020   :  { %v3151_v62 = vsub.f32 %v3143_v41, %v3147_v11  ;;  %v4536_v41 = vld [vmem:[#allocation2 + $0x18] sm:$0xff] }
0x2021   :  { %v4356_v11 = vld [vmem:[#allocation10 + $0x54] ss:$8 sps:$4 sm:$0xff]  }
0x2022   :  { %v3153_v63 = vmul.f32 1.442695, %v3151_v62  ;;  %v4354_v62 = vld [vmem:[#allocation10 + $0x50] ss:$8 sps:$4 sm:$0xff]  }
0x2023   :  { %v3169_v38 = vpop.permute.xlu1 %3168  ;;  %v3150_v25 = vpop.xlane.xlu0 %3149 }
0x2024   :  { %4516 = vpow2.f32 %v3153_v63  ;;  %v3152_v27 = vsub.f32 %v3144_v20, %v3150_v25  ;;  %4274 = vmatpush3.bf16.msra.mxu1 %v3169_v38  ;;  %v4348_v20 = vld [vmem:[#allocation10 + $0x70] ss:$8 sps:$4 sm:$0xff]   ;;  %v4357_v63 = vld [vmem:[#allocation10 + $0x40] ss:$8 sps:$4 sm:$0xff]   ;;  %v4359_v38 = vld [vmem:[#allocation10 + $0x44] ss:$8 sps:$4 sm:$0xff]  }
0x2025   :  { %3449 = vmatprep.subr.bf16.mxu1 %v4350_v17  ;;  %v4362_v25 = vld [vmem:[#allocation10 + $0x34] ss:$8 sps:$4 sm:$0xff]  }
0x2026   :  { %v3155_v34 = vmul.f32 1.442695, %v3152_v27  ;;  %v4360_v27 = vld [vmem:[#allocation10 + $0x30] ss:$8 sps:$4 sm:$0xff]  }
0x2028   :  { %4518 = vpow2.f32 %v3155_v34  ;;  %v4365_v34 = vld [vmem:[#allocation10 + $0x24] ss:$8 sps:$4 sm:$0xff]  }
0x2031   :  { %v4517_v31 = vpop.eup %4516 }
0x2032   :  { %v3157_v39 = vsel %vm501_vm1, %v4517_v31, 0.0 }
0x2033   :  { %3158 = vadd.xlane.f32.xlu0 %v3157_v39  ;;  %v4366_v39 = vld [vmem:[#allocation10 + $0x10] ss:$8 sps:$4 sm:$0xff]  }
0x2035   :  { %v4519_v42 = vpop.eup %4518 }
0x2036   :  { %v3160_v51 = vsel %vm501_vm1, %v4519_v42, 0.0 }
0x2037   :  { %3161 = vadd.xlane.f32.xlu0 %v3160_v51 }
0x203b   :  { %3276 = vadd.xlane.f32.xlu0 %v5376_v23 }
0x203f   :  { %3278 = vadd.xlane.f32.xlu0 %v5379_v32 }
0x2052   :  { %v3083_v44 = vpop.f32.mrf.mxu1 }
0x2053   :  { %v3090_v35 = vadd.f32 %v3083_v44, %v5347_v48 }
0x2054   :  { %v4265_v10 = vpop.f32.mrf.mxu1 }
0x2056   :  { %v3086_v21 = vpop.f32.mrf.mxu1 }
0x2057   :  { %v3091_v9 = vadd.f32 %v3086_v21, %v5349_v19 }
0x2058   :  { %v4266_v14 = vpop.f32.mrf.mxu1 }
0x20bc   :  { %v3159_v45 = vpop.xlane.xlu0 %3158 }
0x20bd   :  { %4520 = vrcp.f32 %v3159_v45 }
0x20c0   :  { %v3162_v30 = vpop.xlane.xlu0 %3161 }
0x20c1   :  { %4522 = vrcp.f32 %v3162_v30 }
0x20c4   :  { %v3277_v46 = vpop.xlane.xlu0 %3276 }
0x20c5   :  { %v3284_v22 = vmul.f32 0.0078125, %v3277_v46 }
0x20c7   :  { %v5385_v28 = vsub.f32 %v5376_v23, %v3284_v22 }
0x20c8   :  { %v3279_v50 = vpop.xlane.xlu0 %3278 }
0x20c9   :  { %v3292_v36 = vmul.f32 %v5385_v28, %v5385_v28  ;;  %v3285_v52 = vmul.f32 0.0078125, %v3279_v50  ;;  %v4374_v50 = vld [vmem:[#allocation11 + $0x70] sm:$0xff]  }
0x20ca   :  { %v4521_v47 = vpop.eup %4520 }
0x20cb   :  { %3296 = vadd.xlane.f32.xlu1 %v3292_v36  ;;  %v3165_v49 = vmul.f32 %v4521_v47, %v4517_v31  ;;  %v3289_v59 = vsub.f32 %v5379_v32, %v3285_v52  ;;  %v4363_v31 = vld [vmem:[#allocation10 + $0x20] ss:$8 sps:$4 sm:$0xff]  }
0x20cc   :  { %v4379_v52 = vld [vmem:[#allocation11 + $0x20] sm:$0xff]  }
0x20cd   :  { %v3293_v33 = vmul.f32 %v3289_v59, %v3289_v59 }
0x20ce   :  { %v4523_v48 = vpop.eup %4522 }
0x20cf   :  { %v3166_v12 = vmul.f32 %v4523_v48, %v4519_v42  ;;  %v4371_v42 = vld [vmem:[#allocation10 + $0x4] ss:$8 sps:$4 sm:$0xff]  }
0x20d0   :  { %v3808_v48 = vld [vmem:[#allocation13 + $0x6] ss:$0 sm:$0xff] }
0x20d1   :  { %v3167_v40 = vpack.c.bf16 %v3166_v12, %v3165_v49 }
0x20d3   :  { %4276 = vmatmul.mubr.msk.bf16.vlgmr.msra.gmra.mxu1 %vm501_vm1, %v3167_v40 }
0x20d4   :  { %3481 = vmatprep.mubr.bf16.mxu1 %v4720_v29  ;;  %3450 = vmatpush1.bf16.msra.mxu1 %v4348_v20 }
0x20d5   :  { %3451 = vmatprep.subr.bf16.mxu1 %v4353_v24 }
0x20d8   :  { %3452 = vmatpush1.bf16.msra.mxu1 %v4351_v13 }
0x20d9   :  { %3453 = vmatprep.subr.bf16.mxu1 %v4356_v11 }
0x20dc   :  { %3454 = vmatpush1.bf16.msra.mxu1 %v4354_v62 }
0x20dd   :  { %3455 = vmatprep.subr.bf16.mxu1 %v4359_v38 }
0x20e0   :  { %3456 = vmatpush1.bf16.msra.mxu1 %v4357_v63 }
0x20e1   :  { %3457 = vmatprep.subr.bf16.mxu1 %v4362_v25 }
0x20e4   :  { %3458 = vmatpush1.bf16.msra.mxu1 %v4360_v27 }
0x20e5   :  { %3459 = vmatprep.subr.bf16.mxu1 %v4365_v34 }
0x20e8   :  { %3460 = vmatpush1.bf16.msra.mxu1 %v4363_v31 }
0x2154   :  { %v3297_v51 = vpop.xlane.xlu1 %3296 }
0x2155   :  { %v3304_v37 = vmul.f32 0.0078125, %v3297_v51 }
0x2157   :  { %v3308_v44 = vadd.f32 1e-06, %v3304_v37 }
0x2159   :  { %4524 = vrsqrt.f32 %v3308_v44 }
0x2166   :  { %v4525_v36 = vpop.eup %4524 }
0x2167   :  { %v3316_v47 = vmul.f32 %v4525_v36, %v5385_v28  ;;  %v4376_v28 = vld [vmem:[#allocation11 + $0x68] sm:$0xff]  }
0x2169   :  { %v3326_v40 = vmul.f32 %v3808_v48, %v3316_v47 }
0x2193   :  { %v3208_v19 = vpop.f32.mrf.mxu1 }
0x2195   :  { %v4277_v56 = vpop.f32.mrf.mxu1 }
0x2197   :  { %v3211_v57 = vpop.f32.mrf.mxu1 }
0x2198   :  { %v3215_v60 = vpack.c.bf16 %v3211_v57, %v3208_v19  ;;  %v3809_v19 = vld [vmem:[#allocation13 + $0x7] ss:$0 sm:$0xff] }
0x2199   :  { %v4278_v5 = vpop.f32.mrf.mxu1  ;;  %v3336_v57 = vadd.f32 %v3809_v19, %v3326_v40 }
0x219a   :  { %4282 = vmatmul.mubr.msk.bf16.vlgmr.msra.gmra.mxu0 %vm501_vm1, %v3215_v60 }
0x225a   :  { %v3253_v61 = vpop.f32.mrf.mxu0 }
0x225b   :  { %v3260_v54 = vadd.f32 %v3253_v61, %v3090_v35  ;;  %v4372_v61 = vld [vmem:[#allocation11 + $0x78] sm:$0xff]  }
0x225c   :  { %v4283_v0 = vpop.f32.mrf.mxu0  ;;  %3949 = vmatprep.subr.bf16.mxu0 %v4372_v61 }
0x225d   :  { %v3270_v1 = vadd.f32 %v3807_v58, %v3260_v54  ;;  %v4373_v54 = vld [vmem:[#allocation11 + $0x38] sm:$0xff]   ;;  %v4375_v0 = vld [vmem:[#allocation11 + $0x30] sm:$0xff]  }
0x225e   :  { %v3256_v2 = vpop.f32.mrf.mxu0  ;;  %3950 = vmatpush3.bf16.msra.mxu0 %v4373_v54 }
0x225f   :  { %v3261_v55 = vadd.f32 %v3256_v2, %v3091_v9  ;;  %v5392_v4 = vadd.f32 %v4535_v3, %v3270_v1  ;;  %3951 = vmatprep.subr.bf16.mxu0 %v4374_v50  ;;  %v4377_v1 = vld [vmem:[#allocation11 + $0x28] sm:$0xff]   ;;  %v4378_v2 = vld [vmem:[#allocation11 + $0x60] sm:$0xff]   ;;  %v4381_v3 = vld [vmem:[#allocation11 + $0x18] sm:$0xff]  }
0x2260   :  { %v4284_v6 = vpop.f32.mrf.mxu0 }
0x2261   :  { %v3271_v8 = vadd.f32 %v3807_v58, %v3261_v55  ;;  %3280 = vadd.xlane.f32.xlu0 %v5392_v4  ;;  %v4368_v58 = vld [vmem:[#allocation10 + $0x14] ss:$8 sps:$4 sm:$0xff]  }
0x2262   :  { %3461 = vmatprep.subr.bf16.mxu1 %v4368_v58  ;;  %3952 = vmatpush3.bf16.msra.mxu0 %v4375_v0  ;;  %v4380_v55 = vld [vmem:[#allocation11 + $0x58] sm:$0xff]   ;;  %v4383_v6 = vld [vmem:[#allocation11 + $0x10] sm:$0xff]   ;;  %v3826_v0 = vld [vmem:[#allocation13 + $0xa] ss:$0 sm:$0xff] }
0x2263   :  { %v5396_v53 = vadd.f32 %v4536_v41, %v3271_v8  ;;  %3462 = vmatpush1.bf16.msra.mxu1 %v4366_v39  ;;  %3953 = vmatprep.subr.bf16.mxu0 %v4376_v28  ;;  %v4384_v8 = vld [vmem:[#allocation11 + $0x48] sm:$0xff]   ;;  %v4386_v41 = vld [vmem:[#allocation11 + $0x40] sm:$0xff]  }
0x2264   :  { %3463 = vmatprep.subr.bf16.mxu1 %v4371_v42 }
0x2265   :  { %3282 = vadd.xlane.f32.xlu0 %v5396_v53 }
0x2266   :  { %3954 = vmatpush3.bf16.msra.mxu0 %v4377_v1 }
0x2267   :  { %3464 = vmatpush1.bf16.msra.mxu1 %v4369_v26  ;;  %3955 = vmatprep.subr.bf16.mxu0 %v4378_v2  ;;  %v131_v26 = vld [vmem:[#allocation13 + $0x8] sm:$0x3] }
0x2268   :  { %v3366_v37 = vrot.slane %v131_v26, %v239_v18 }
0x2269   :  { %3298 = vadd.xlane.f32.xlu0 %v3293_v33  ;;  %v4387_v33 = vld [vmem:[#allocation11] sm:$0xff]  }
0x226a   :  { %3956 = vmatpush3.bf16.msra.mxu0 %v4379_v52 }
0x226b   :  { %3957 = vmatprep.subr.bf16.mxu0 %v4380_v55 }
0x226e   :  { %3958 = vmatpush3.bf16.msra.mxu0 %v4381_v3 }
0x22ea   :  { %v3281_v7 = vpop.xlane.xlu0 %3280 }
0x22eb   :  { %v3286_v43 = vmul.f32 0.0078125, %v3281_v7  ;;  %v3362_v7 = vrot.slane %v131_v26, %v235_v16 }
0x22ed   :  { %v5400_v35 = vsub.f32 %v5392_v4, %v3286_v43 }
0x22ee   :  { %v3283_v10 = vpop.xlane.xlu0 %3282 }
0x22ef   :  { %v3287_v21 = vmul.f32 0.0078125, %v3283_v10  ;;  %v3294_v9 = vmul.f32 %v5400_v35, %v5400_v35 }
0x22f1   :  { %v5405_v14 = vsub.f32 %v5396_v53, %v3287_v21  ;;  %3300 = vadd.xlane.f32.xlu0 %v3294_v9 }
0x22f2   :  { %v3299_v45 = vpop.xlane.xlu0 %3298 }
0x22f3   :  { %v3305_v30 = vmul.f32 0.0078125, %v3299_v45  ;;  %v3295_v46 = vmul.f32 %v5405_v14, %v5405_v14 }
0x22f5   :  { %v3309_v22 = vadd.f32 1e-06, %v3305_v30  ;;  %3302 = vadd.xlane.f32.xlu0 %v3295_v46 }
0x22f7   :  { %4526 = vrsqrt.f32 %v3309_v22 }
0x2304   :  { %v4527_v49 = vpop.eup %4526 }
0x2305   :  { %v3317_v12 = vmul.f32 %v4527_v49, %v3289_v59  ;;  %v4385_v59 = vld [vmem:[#allocation11 + $0x8] sm:$0xff]  }
0x2307   :  { %v3327_v56 = vmul.f32 %v3808_v48, %v3317_v12 }
0x2309   :  { %v3337_v60 = vadd.f32 %v3809_v19, %v3327_v56 }
0x230b   :  { %v3340_v5 = vpack.c.bf16 %v3337_v60, %v3336_v57 }
0x230d   :  { %3482 = vmatmul.mubr.bf16.vlgmr.msra.gmra.mxu1 %v3340_v5 }
0x230e   :  { %3491 = vmatprep.mubr.bf16.mxu1 %v4720_v29  ;;  %v4382_v29 = vld [vmem:[#allocation11 + $0x50] sm:$0xff]  }
0x230f   :  { %3959 = vmatprep.subr.bf16.mxu0 %v4382_v29 }
0x2310   :  { %3960 = vmatpush3.bf16.msra.mxu0 %v4383_v6 }
0x2311   :  { %3961 = vmatprep.subr.bf16.mxu0 %v4384_v8 }
0x2314   :  { %3962 = vmatpush3.bf16.msra.mxu0 %v4385_v59 }
0x2315   :  { %3963 = vmatprep.subr.bf16.mxu0 %v4386_v41 }
0x2318   :  { %3964 = vmatpush3.bf16.msra.mxu0 %v4387_v33 }
0x237a   :  { %v3301_v17 = vpop.xlane.xlu0 %3300 }
0x237b   :  { %v3306_v20 = vmul.f32 0.0078125, %v3301_v17 }
0x237d   :  { %v3310_v24 = vadd.f32 1e-06, %v3306_v20 }
0x237e   :  { %v3303_v13 = vpop.xlane.xlu0 %3302 }
0x237f   :  { %4528 = vrsqrt.f32 %v3310_v24  ;;  %v3307_v11 = vmul.f32 0.0078125, %v3303_v13 }
0x2381   :  { %v3311_v62 = vadd.f32 1e-06, %v3307_v11 }
0x2383   :  { %4530 = vrsqrt.f32 %v3311_v62 }
0x238c   :  { %v4529_v63 = vpop.eup %4528 }
0x238d   :  { %v3318_v38 = vmul.f32 %v4529_v63, %v5400_v35 }
0x238f   :  { %v3328_v34 = vmul.f32 %v3808_v48, %v3318_v38 }
0x2390   :  { %v4531_v25 = vpop.eup %4530 }
0x2391   :  { %v3319_v27 = vmul.f32 %v4531_v25, %v5405_v14  ;;  %v3338_v58 = vadd.f32 %v3809_v19, %v3328_v34 }
0x2393   :  { %v3329_v31 = vmul.f32 %v3808_v48, %v3319_v27 }
0x2395   :  { %v3339_v39 = vadd.f32 %v3809_v19, %v3329_v31 }
0x2397   :  { %v3341_v42 = vpack.c.bf16 %v3339_v39, %v3338_v58 }
0x2399   :  { %3492 = vmatmul.mubr.bf16.gmra.mxu1 %v3341_v42 }
0x23cd   :  { %v3483_v51 = vpop.f32.mrf.mxu1 }
0x23ce   :  { %v3484_v21 = vadd.f32 %v3483_v51, %v3362_v7 }
0x23cf   :  { %v3485_v43 = vpop.f32.mrf.mxu1 }
0x23d0   :  { %v3486_v35 = vadd.f32 %v3485_v43, %v3366_v37  ;;  %v3502_v22 = vmax.f32 %v3484_v21, 0.0 }
0x23d1   :  { %v3487_v44 = vpop.f32.mrf.mxu1 }
0x23d2   :  { %v3488_v10 = vadd.f32 %v3487_v44, %v3362_v7  ;;  %v3503_v30 = vmax.f32 %v3486_v35, 0.0 }
0x23d3   :  { %v3489_v9 = vpop.f32.mrf.mxu1 }
0x23d4   :  { %v3490_v14 = vadd.f32 %v3489_v9, %v3366_v37  ;;  %v3504_v45 = vmax.f32 %v3488_v10, 0.0 }
0x23d6   :  { %v3505_v46 = vmax.f32 %v3490_v14, 0.0  ;;  %v3510_v47 = vpack.c.bf16 %v3504_v45, %v3502_v22 }
0x23d8   :  { %v3511_v36 = vpack.c.bf16 %v3505_v46, %v3503_v30 }
0x23da   :  { %3680 = vmatprep.mubr.bf16.mxu0 %v3511_v36 }
0x23db   :  { %3681 = vmatmul.mubr.bf16.vlgmr.msra.gmra.mxu0 %v3510_v47 }
0x2459   :  { %v3493_v48 = vpop.f32.mrf.mxu1 }
0x245a   :  { %v3494_v12 = vadd.f32 %v3493_v48, %v3362_v7 }
0x245b   :  { %v3495_v18 = vpop.f32.mrf.mxu1 }
0x245c   :  { %v3496_v15 = vadd.f32 %v3495_v18, %v3366_v37  ;;  %v3506_v5 = vmax.f32 %v3494_v12, 0.0 }
0x245d   :  { %v3497_v49 = vpop.f32.mrf.mxu1 }
0x245e   :  { %v3498_v16 = vadd.f32 %v3497_v49, %v3362_v7  ;;  %v3507_v57 = vmax.f32 %v3496_v15, 0.0 }
0x245f   :  { %v3499_v40 = vpop.f32.mrf.mxu1 }
0x2460   :  { %v3500_v19 = vadd.f32 %v3499_v40, %v3366_v37  ;;  %v3508_v56 = vmax.f32 %v3498_v16, 0.0 }
0x2462   :  { %v3509_v60 = vmax.f32 %v3500_v19, 0.0  ;;  %v3512_v54 = vpack.c.bf16 %v3508_v56, %v3506_v5 }
0x2464   :  { %v3513_v61 = vpack.c.bf16 %v3509_v60, %v3507_v57 }
0x2466   :  { %3688 = vmatprep.mubr.bf16.mxu0 %v3513_v61 }
0x2467   :  { %3689 = vmatmul.mubr.bf16.gmra.mxu0 %v3512_v54 }
0x249b   :  { %v3965_v50 = vpop.f32.mrf.mxu0 }
0x249d   :  { %v3966_v28 = vpop.f32.mrf.mxu0 }
0x249e   :  { %v3967_v1 = vadd.f32 %v3966_v28, %v3965_v50 }
0x249f   :  { %v3968_v2 = vpop.f32.mrf.mxu0 }
0x24a0   :  { %v3683_v52 = vadd.f32 %v3967_v1, %v3826_v0 }
0x24a1   :  { %v3969_v55 = vpop.f32.mrf.mxu0 }
0x24a2   :  { %v3697_v3 = vadd.f32 %v3683_v52, %v5376_v23  ;;  %v3970_v29 = vadd.f32 %v3969_v55, %v3968_v2 }
0x24a4   :  { %3701 = vst [vmem:[#allocation14] sm:$0xff] %v3697_v3  ;;  %v3686_v6 = vadd.f32 %v3970_v29, %v3826_v0 }
0x24a6   :  { %v3698_v8 = vadd.f32 %v3686_v6, %v5379_v32 }
0x24a8   :  { %3702 = vst [vmem:[#allocation14 + $0x8] sm:$0xff] %v3698_v8 }
0x2527   :  { %v3971_v59 = vpop.f32.mrf.mxu0 }
0x2529   :  { %v3972_v41 = vpop.f32.mrf.mxu0 }
0x252a   :  { %v3973_v33 = vadd.f32 %v3972_v41, %v3971_v59 }
0x252b   :  { %v3974_v17 = vpop.f32.mrf.mxu0 }
0x252c   :  { %v3691_v20 = vadd.f32 %v3973_v33, %v3826_v0 }
0x252d   :  { %v3975_v24 = vpop.f32.mrf.mxu0 }
0x252e   :  { %v3699_v13 = vadd.f32 %v3691_v20, %v5392_v4  ;;  %v3976_v11 = vadd.f32 %v3975_v24, %v3974_v17 }
0x2530   :  { %3703 = vst [vmem:[#allocation14 + $0x10] sm:$0xff] %v3699_v13  ;;  %v3694_v62 = vadd.f32 %v3976_v11, %v3826_v0 }
0x2532   :  { %v3700_v23 = vadd.f32 %v3694_v62, %v5396_v53 }
0x2534   :  { %3704 = vst [vmem:[#allocation14 + $0x18] sm:$0xff] %v3700_v23 }
0x2535   :  { %4688 = shalt.err (!%p4685_p11)
}
0x2536   :  { %3716 = dma.vmem_to_hbm [thread:$0]  %s3711_s3, 512, %s5434_s7, [#allocation4], %s4709_s29, %s4709_s29, %s4710_s30  }
0x2537   :  { %4705 = dma.done.wait [#allocation4], 512  }
0x2538   :  { %4706 = vsyncadd [#allocation4], 4294966784 }
0x2539   :  { %3720 = vsyncpa [#allocation3], 1 }
0x253a   :  { %3721 = vsyncpa [#allocation6], 1 }
0x253b   :  { %3722 = vsyncpa [#allocation9], 1 }
0x253c   :  { %3723 = vsyncpa [#allocation12], 1 }
0x253d   :  { %3724 = vsyncpa [#allocation4], 1 }

</bundles_post_ra>
